<compile_context>
chip_gen: v6e
topology: v6e:2x2x1
jax: 0.10.0
libtpu: 0.0.40
codegen_flags: <defaults>
</compile_context>

<pallas_src>
import jax
import jax.numpy as jnp
from jax.experimental import pallas as pl
from jax.experimental.pallas import tpu as pltpu

IN_DIM = 50
IN_PAD = 128       # 50 -> 128: lane-dense x block / layer-1 K dim
HID = 1024
OUT_DIM = 10
OUT_PAD = 128      # lane-dense output slab; sliced back to 10 in the wrapper
BN_EPS = 1e-5


def _round_up(x, m):
    return (x + m - 1) // m * m


def _choose_tile_m(n):
    """Batch tile: multiple of 8, capped at 512, >=2 grid steps when n >= 16."""
    n8 = _round_up(n, 8)
    tile = min(512, n8)
    if n8 <= tile and n >= 16:
        # Single grid step would leave one v7x TensorCore idle -> split in two.
        tile = _round_up(-(-n8 // 2), 8)
    return max(tile, 8)


def mlp_kernel(x_ref, w1_ref, w2_ref, s2_ref, w3_ref, b3_ref, o_ref):
    # Layer 1: Linear(50->1024) + ReLU.  b1 is folded into row 50 of w1 via the
    # ones-column of the padded x, so a single bf16 MXU matmul (f32 accumulate)
    # does Linear + bias.
    h1 = jnp.dot(x_ref[...], w1_ref[...], preferred_element_type=jnp.float32)
    h1 = jnp.maximum(h1, 0.0)

    # Layer 2: Linear(1024->1024) with eval-mode BN scale pre-folded into the
    # columns of w2; (bias, BN shift) folded into a single f32 shift row.
    h2 = jnp.dot(h1.astype(jnp.bfloat16), w2_ref[...],
                 preferred_element_type=jnp.float32) + s2_ref[...]
    h2 = jnp.maximum(h2, 0.0)

    # Layer 3: Linear(1024 -> 128) (zero-padded from 10) -> lane-dense store.
    o_ref[...] = jnp.dot(h2.astype(jnp.bfloat16), w3_ref[...],
                         preferred_element_type=jnp.float32) + b3_ref[...]


def mlp_forward(x, params):
    (w1, b1, w2, b2, bn_gamma, bn_beta, bn_mean, bn_var, w3, b3) = params
    n = x.shape[0]

    # ---- host-side prep (one-time folds / padding / dtype casts) ----
    # Fold eval-mode BatchNorm1d into layer-2: y = (h1@w2 + b2 - mu)*s + beta
    #   => w2' = w2 * s  (per output column),  shift2 = (b2 - mu)*s + beta
    inv_std = jax.lax.rsqrt(bn_var + BN_EPS)
    bn_scale = bn_gamma * inv_std
    w2f = (w2 * bn_scale[None, :]).astype(jnp.bfloat16)
    shift2 = ((b2 - bn_mean) * bn_scale + bn_beta).reshape(1, HID)

    # Pad IN_DIM 50 -> 128 and fold b1 into row IN_DIM of w1 (ones column in x).
    w1p = jnp.pad(w1, ((0, IN_PAD - IN_DIM), (0, 0)))
    w1p = w1p.at[IN_DIM, :].set(b1).astype(jnp.bfloat16)
    # Pad OUT_DIM 10 -> 128 (zeros), cast weights to bf16, keep bias row f32.
    w3p = jnp.pad(w3, ((0, 0), (0, OUT_PAD - OUT_DIM))).astype(jnp.bfloat16)
    b3p = jnp.pad(b3, (0, OUT_PAD - OUT_DIM)).reshape(1, OUT_PAD)

    # Tile the batch; pad rows so n divides evenly into tile_m blocks.
    tile_m = _choose_tile_m(n)
    n_pad = _round_up(n, tile_m)
    xp = jnp.pad(x, ((0, n_pad - n), (0, IN_PAD - IN_DIM)))
    xp = xp.at[:, IN_DIM].set(1.0).astype(jnp.bfloat16)   # ones column -> bias
    grid = (n_pad // tile_m,)

    # Activation blocks follow the grid; weights/biases are grid-invariant and
    # single-buffered (they never change, so no double-buffer copy is needed).
    def act_map(i):
        return (i, 0)

    def const_map(i):
        return (0, 0)

    one_buf = pl.Buffered(1)
    in_specs = [
        pl.BlockSpec((tile_m, IN_PAD), act_map),                            # x  (bf16)
        pl.BlockSpec((IN_PAD, HID), const_map, pipeline_mode=one_buf),      # w1+b1 (bf16)
        pl.BlockSpec((HID, HID), const_map, pipeline_mode=one_buf),         # w2*bn_scale (bf16)
        pl.BlockSpec((1, HID), const_map, pipeline_mode=one_buf),           # folded shift (f32)
        pl.BlockSpec((HID, OUT_PAD), const_map, pipeline_mode=one_buf),     # w3 padded (bf16)
        pl.BlockSpec((1, OUT_PAD), const_map, pipeline_mode=one_buf),       # b3 padded (f32)
    ]
    out_spec = pl.BlockSpec((tile_m, OUT_PAD), act_map)

    flops = 2 * n_pad * (IN_PAD * HID + HID * HID + HID * OUT_PAD)
    bytes_accessed = (
        2 * (IN_PAD * HID + HID * HID + HID * OUT_PAD)       # bf16 weights
        + 4 * (HID + OUT_PAD)                                # f32 bias rows
        + 2 * n_pad * IN_PAD                                 # bf16 x
        + 4 * n_pad * OUT_PAD                                # f32 output slab
    )

    out_pad = pl.pallas_call(
        mlp_kernel,
        out_shape=jax.ShapeDtypeStruct((n_pad, OUT_PAD), jnp.float32),
        grid=grid,
        in_specs=in_specs,
        out_specs=out_spec,
        compiler_params=pltpu.CompilerParams(
            dimension_semantics=("parallel",),
            vmem_limit_bytes=32 << 20,
        ),
        cost_estimate=pl.CostEstimate(
            flops=flops, transcendentals=0, bytes_accessed=bytes_accessed),
    )(xp, w1p, w2f, shift2, w3p, b3p)

    return out_pad[:n, :OUT_DIM]


def reference_forward(x, params):
    (w1, b1, w2, b2, bn_gamma, bn_beta, bn_mean, bn_var, w3, b3) = params
    h1 = jnp.maximum(x @ w1 + b1, 0.0)
    h2 = h1 @ w2 + b2
    h2 = (h2 - bn_mean) * jax.lax.rsqrt(bn_var + BN_EPS) * bn_gamma + bn_beta
    h2 = jnp.maximum(h2, 0.0)
    return h2 @ w3 + b3


def init_params(key):
    ks = jax.random.split(key, 8)

    def lin(kw, kb, fan_in, fan_out):
        bound = 1.0 / jnp.sqrt(fan_in)
        w = jax.random.uniform(kw, (fan_in, fan_out), jnp.float32, -bound, bound)
        b = jax.random.uniform(kb, (fan_out,), jnp.float32, -bound, bound)
        return w, b

    w1, b1 = lin(ks[0], ks[1], IN_DIM, HID)
    w2, b2 = lin(ks[2], ks[3], HID, HID)
    w3, b3 = lin(ks[4], ks[5], HID, OUT_DIM)
    bn_gamma = jnp.ones((HID,), jnp.float32)
    bn_beta = jnp.zeros((HID,), jnp.float32)
    bn_mean = 0.1 * jax.random.normal(ks[6], (HID,), jnp.float32)
    bn_var = 1.0 + 0.05 * jax.random.uniform(ks[7], (HID,), jnp.float32)
    return (w1, b1, w2, b2, bn_gamma, bn_beta, bn_mean, bn_var, w3, b3)


if __name__ == "__main__":
    key = jax.random.PRNGKey(0)
    k_x, k_p = jax.random.split(key)
    batch = 8
    x = jax.random.normal(k_x, (batch, IN_DIM), jnp.float32)
    params = init_params(k_p)

    out = jax.block_until_ready(mlp_forward(x, params))
    ref = jax.block_until_ready(reference_forward(x, params))

    assert out.shape == (batch, OUT_DIM)
    # bf16 matmul operands (x/w in bf16, f32 accumulate) vs. f32 reference
    # -> loose tolerance.
    assert jnp.allclose(out, ref, atol=5e-2, rtol=5e-2), "mismatch vs. reference"
    print("KERNEL_OK")
</pallas_src>

<mosaic_0001>
module attributes {stable_mosaic.version = 11 : i64} {
  func.func @mlp_kernel(%arg0: i32, %arg1: memref<8x128xbf16, #tpu.memory_space<vmem>>, %arg2: memref<128x1024xbf16, #tpu.memory_space<vmem>>, %arg3: memref<1024x1024xbf16, #tpu.memory_space<vmem>>, %arg4: memref<1x1024xf32, #tpu.memory_space<vmem>>, %arg5: memref<1024x128xbf16, #tpu.memory_space<vmem>>, %arg6: memref<1x128xf32, #tpu.memory_space<vmem>>, %arg7: memref<8x128xf32, #tpu.memory_space<vmem>>) attributes {dimension_semantics = [#tpu.dimension_semantics<parallel>], iteration_bounds = array<i64: 1>, scalar_prefetch = 0 : i64, scratch_operands = 0 : i64, tpu.core_type = #tpu.core_type<tc>, window_params = [{transform_indices = @transform_0, window_bounds = array<i64: 8, 128>}, {pipeline_mode = #tpu.pipeline_mode<synchronous>, transform_indices = @transform_1, window_bounds = array<i64: 128, 1024>}, {pipeline_mode = #tpu.pipeline_mode<synchronous>, transform_indices = @transform_2, window_bounds = array<i64: 1024, 1024>}, {pipeline_mode = #tpu.pipeline_mode<synchronous>, transform_indices = @transform_3, window_bounds = array<i64: 1, 1024>}, {pipeline_mode = #tpu.pipeline_mode<synchronous>, transform_indices = @transform_4, window_bounds = array<i64: 1024, 128>}, {pipeline_mode = #tpu.pipeline_mode<synchronous>, transform_indices = @transform_5, window_bounds = array<i64: 1, 128>}, {transform_indices = @transform_6, window_bounds = array<i64: 8, 128>}]} {
    %c0 = arith.constant 0 : index
    %c0_0 = arith.constant 0 : index
    %0 = vector.load %arg1[%c0, %c0_0] : memref<8x128xbf16, #tpu.memory_space<vmem>>, vector<8x128xbf16>
    %c0_1 = arith.constant 0 : index
    %c0_2 = arith.constant 0 : index
    %1 = vector.load %arg2[%c0_1, %c0_2] : memref<128x1024xbf16, #tpu.memory_space<vmem>>, vector<128x1024xbf16>
    %cst = arith.constant dense<0.000000e+00> : vector<8x1024xf32>
    %2 = tpu.matmul %0, %1, %cst {dimension_numbers = #tpu.dot_dimension_numbers<[1], [0], [0], [1], [0, 0, 1, 1], [], []>} : vector<8x128xbf16>, vector<128x1024xbf16>, vector<8x1024xf32> -> vector<8x1024xf32>
    %cst_3 = arith.constant 0.000000e+00 : f32
    %3 = vector.broadcast %cst_3 : f32 to vector<8x1024xf32>
    %4 = arith.maximumf %2, %3 : vector<8x1024xf32>
    %5 = arith.truncf %4 : vector<8x1024xf32> to vector<8x1024xbf16>
    %c0_4 = arith.constant 0 : index
    %c0_5 = arith.constant 0 : index
    %6 = vector.load %arg3[%c0_4, %c0_5] : memref<1024x1024xbf16, #tpu.memory_space<vmem>>, vector<1024x1024xbf16>
    %cst_6 = arith.constant dense<0.000000e+00> : vector<8x1024xf32>
    %7 = tpu.matmul %5, %6, %cst_6 {dimension_numbers = #tpu.dot_dimension_numbers<[1], [0], [0], [1], [0, 0, 1, 1], [], []>} : vector<8x1024xbf16>, vector<1024x1024xbf16>, vector<8x1024xf32> -> vector<8x1024xf32>
    %c0_7 = arith.constant 0 : index
    %c0_8 = arith.constant 0 : index
    %8 = vector.load %arg4[%c0_7, %c0_8] : memref<1x1024xf32, #tpu.memory_space<vmem>>, vector<1x1024xf32>
    %9 = vector.broadcast %8 : vector<1x1024xf32> to vector<8x1024xf32>
    %10 = arith.addf %7, %9 : vector<8x1024xf32>
    %cst_9 = arith.constant 0.000000e+00 : f32
    %11 = vector.broadcast %cst_9 : f32 to vector<8x1024xf32>
    %12 = arith.maximumf %10, %11 : vector<8x1024xf32>
    %13 = arith.truncf %12 : vector<8x1024xf32> to vector<8x1024xbf16>
    %c0_10 = arith.constant 0 : index
    %c0_11 = arith.constant 0 : index
    %14 = vector.load %arg5[%c0_10, %c0_11] : memref<1024x128xbf16, #tpu.memory_space<vmem>>, vector<1024x128xbf16>
    %cst_12 = arith.constant dense<0.000000e+00> : vector<8x128xf32>
    %15 = tpu.matmul %13, %14, %cst_12 {dimension_numbers = #tpu.dot_dimension_numbers<[1], [0], [0], [1], [0, 0, 1, 1], [], []>} : vector<8x1024xbf16>, vector<1024x128xbf16>, vector<8x128xf32> -> vector<8x128xf32>
    %c0_13 = arith.constant 0 : index
    %c0_14 = arith.constant 0 : index
    %16 = vector.load %arg6[%c0_13, %c0_14] : memref<1x128xf32, #tpu.memory_space<vmem>>, vector<1x128xf32>
    %17 = vector.broadcast %16 : vector<1x128xf32> to vector<8x128xf32>
    %18 = arith.addf %15, %17 : vector<8x128xf32>
    %c0_15 = arith.constant 0 : index
    %c0_16 = arith.constant 0 : index
    %19 = vector.load %arg7[%c0_15, %c0_16] : memref<8x128xf32, #tpu.memory_space<vmem>>, vector<8x128xf32>
    tpu.vector_store %arg7[%c0_15, %c0_16], %18 {strides = array<i32>} : memref<8x128xf32, #tpu.memory_space<vmem>>, vector<8x128xf32>,
    return
  }
  func.func @transform_0(%arg0: i32) -> (i32, i32) {
    %c0_i32 = arith.constant 0 : i32
    %c0_i32_0 = arith.constant 0 : i32
    return %arg0, %c0_i32 : i32, i32
  }
  func.func @transform_1(%arg0: i32) -> (i32, i32) {
    %c0_i32 = arith.constant 0 : i32
    %c0_i32_0 = arith.constant 0 : i32
    %c0_i32_1 = arith.constant 0 : i32
    return %c0_i32, %c0_i32_0 : i32, i32
  }
  func.func @transform_2(%arg0: i32) -> (i32, i32) {
    %c0_i32 = arith.constant 0 : i32
    %c0_i32_0 = arith.constant 0 : i32
    %c0_i32_1 = arith.constant 0 : i32
    return %c0_i32, %c0_i32_0 : i32, i32
  }
  func.func @transform_3(%arg0: i32) -> (i32, i32) {
    %c0_i32 = arith.constant 0 : i32
    %c0_i32_0 = arith.constant 0 : i32
    %c0_i32_1 = arith.constant 0 : i32
    return %c0_i32, %c0_i32_0 : i32, i32
  }
  func.func @transform_4(%arg0: i32) -> (i32, i32) {
    %c0_i32 = arith.constant 0 : i32
    %c0_i32_0 = arith.constant 0 : i32
    %c0_i32_1 = arith.constant 0 : i32
    return %c0_i32, %c0_i32_0 : i32, i32
  }
  func.func @transform_5(%arg0: i32) -> (i32, i32) {
    %c0_i32 = arith.constant 0 : i32
    %c0_i32_0 = arith.constant 0 : i32
    %c0_i32_1 = arith.constant 0 : i32
    return %c0_i32, %c0_i32_0 : i32, i32
  }
  func.func @transform_6(%arg0: i32) -> (i32, i32) {
    %c0_i32 = arith.constant 0 : i32
    %c0_i32_0 = arith.constant 0 : i32
    return %arg0, %c0_i32 : i32, i32
  }
}

</mosaic_0001>

<bundles_post_ra>
// kernel: tpu_custom_call.1
= control target key start
LH: loop header
LB: loop body
LE: loop exit
PB: predicated region body
PF: predicated region fallthrough
CT: control target
= control target key end

     0   :  { %11 = vsyncpa [#allocation3], 0  ;;  %s6321_s0 = inlined_call_operand.hbm [shape: bf16[8,128], index: 0, kind: input, shape index: {}]   ;;  %s6322_s1 = inlined_call_operand.hbm [shape: bf16[128,1024], index: 1, kind: input, shape index: {}]   ;;  %s6323_s2 = inlined_call_operand.hbm [shape: bf16[1024,1024], index: 2, kind: input, shape index: {}]   ;;  %s6324_s3 = inlined_call_operand.hbm [shape: f32[1,1024], index: 3, kind: input, shape index: {}]   ;;  %s6325_s4 = inlined_call_operand.hbm [shape: bf16[1024,128], index: 4, kind: input, shape index: {}]   ;;  %s6326_s5 = inlined_call_operand.hbm [shape: f32[1,128], index: 5, kind: input, shape index: {}]   ;;  %s6327_s6 = inlined_call_operand.hbm [shape: f32[8,128], index: 6, kind: output, shape index: {}]  }
   0x1   :  { %12 = vsyncpa [#allocation6], 0 }
   0x2   :  { %13 = vsyncpa [#allocation9], 0 }
   0x3   :  { %14 = vsyncpa [#allocation12], 0 }
   0x4   :  { %15 = vsyncpa [#allocation4], 0  ;;  %s6106_s21 = smov [#allocation5]  }
   0x5   :  { %s31_s22 = sshll.u32 %s6106_s21, 4  ;;  %s32_s22 = int_to_ptr.vmem [resolvable:$true] %s31_s22 }
   0x6   :  { %s5964_s23 = scalar_lea.vmem %s32_s22, 8192  ;;  %p5969_p1 = scmp.lt.s32.totalorder %s32_s22, %s32_s22 }
   0x7   :  { %p5965_p0 = scmp.ne.s32.totalorder %s32_s22, %s5964_s23  ;;  %p5970_p2 = scmp.lt.s32.totalorder %s5964_s23, %s5964_s23 }
   0x9   :  { %p5971_p3 = por %p5970_p2, %p5969_p1 }
   0xb   :  { %p5972_p4 = pnand %p5971_p3, %p5965_p0 }
   0xd   :  { %5975 = shalt.err (!%p5972_p4)
}
   0xe   :  { %s6107_s24 = smov 512   ;;  %s6108_s25 = smov 32  }
   0xf   :  { %37 = dma.hbm_to_vmem [thread:$0]  %s6322_s1, 8192, %s32_s22, [#allocation6], %s6107_s24, %s6107_s24, %s6108_s25  }
  0x10   :  { %s6109_s28 = smov [#allocation8]   ;;  %s6110_s30 = smov [#allocation2]  }
  0x11   :  { %s56_s29 = sshll.u32 %s6109_s28, 4  ;;  %s22_s7 = sshll.u32 %s6110_s30, 4  ;;  %s57_s29 = int_to_ptr.vmem [resolvable:$true] %s56_s29  ;;  %s23_s7 = int_to_ptr.vmem [resolvable:$true] %s22_s7 }
  0x12   :  { %s5984_s8 = scalar_lea.vmem %s57_s29, 128  ;;  %p5989_p6 = scmp.lt.s32.totalorder %s57_s29, %s57_s29 }
  0x13   :  { %p5985_p5 = scmp.ne.s32.totalorder %s57_s29, %s5984_s8  ;;  %p5990_p7 = scmp.lt.s32.totalorder %s5984_s8, %s5984_s8 }
  0x15   :  { %p5991_p8 = por %p5990_p7, %p5989_p6 }
  0x17   :  { %p5992_p9 = pnand %p5991_p8, %p5985_p5 }
  0x19   :  { %5995 = shalt.err (!%p5992_p9)
}
  0x1a   :  { %59 = dma.hbm_to_vmem [thread:$0]  %s6324_s3, 128, %s57_s29, [#allocation9]  }
  0x1b   :  { %s6004_s11 = scalar_lea.vmem %s23_s7, 64  ;;  %p6009_p11 = scmp.lt.s32.totalorder %s23_s7, %s23_s7 }
  0x1c   :  { %p6005_p10 = scmp.ne.s32.totalorder %s23_s7, %s6004_s11  ;;  %p6010_p12 = scmp.lt.s32.totalorder %s6004_s11, %s6004_s11 }
  0x1e   :  { %p6011_p13 = por %p6010_p12, %p6009_p11 }
  0x20   :  { %p6012_p0 = pnand %p6011_p13, %p6005_p10 }
  0x22   :  { %6015 = shalt.err (!%p6012_p0)
}
  0x23   :  { %25 = dma.hbm_to_vmem [thread:$0]  %s6321_s0, 64, %s23_s7, [#allocation3]  }
  0x24   :  { %s6111_s13 = smov [#allocation7]   ;;  %s6112_s15 = smov [#allocation10]  }
  0x25   :  { %s43_s14 = sshll.u32 %s6111_s13, 4  ;;  %s65_s16 = sshll.u32 %s6112_s15, 4  ;;  %s44_s14 = int_to_ptr.vmem [resolvable:$true] %s43_s14  ;;  %s66_s16 = int_to_ptr.vmem [resolvable:$true] %s65_s16 }
  0x26   :  { %s6024_s17 = scalar_lea.vmem %s44_s14, 65536  ;;  %p6029_p2 = scmp.lt.s32.totalorder %s44_s14, %s44_s14 }
  0x27   :  { %p6025_p1 = scmp.ne.s32.totalorder %s44_s14, %s6024_s17  ;;  %p6030_p3 = scmp.lt.s32.totalorder %s6024_s17, %s6024_s17 }
  0x29   :  { %p6031_p4 = por %p6030_p3, %p6029_p2 }
  0x2b   :  { %p6032_p5 = pnand %p6031_p4, %p6025_p1 }
  0x2d   :  { %6035 = shalt.err (!%p6032_p5)
}
  0x2e   :  { %49 = dma.hbm_to_vmem [thread:$0]  %s6323_s2, 65536, %s44_s14, [#allocation6], %s6107_s24, %s6107_s24, %s6108_s25  }
  0x2f   :  { %s6044_s0 = scalar_lea.vmem %s66_s16, 8192  ;;  %p6049_p7 = scmp.lt.s32.totalorder %s66_s16, %s66_s16 }
  0x30   :  { %p6045_p6 = scmp.ne.s32.totalorder %s66_s16, %s6044_s0  ;;  %p6050_p8 = scmp.lt.s32.totalorder %s6044_s0, %s6044_s0 }
  0x32   :  { %p6051_p9 = por %p6050_p8, %p6049_p7 }
  0x34   :  { %p6052_p10 = pnand %p6051_p9, %p6045_p6 }
  0x36   :  { %6055 = shalt.err (!%p6052_p10)
}
  0x37   :  { %s6113_s19 = smov 64   ;;  %s6114_s20 = smov 4  }
  0x38   :  { %71 = dma.hbm_to_vmem [thread:$0]  %s6325_s4, 8192, %s66_s16, [#allocation9], %s6113_s19, %s6113_s19, %s6114_s20  }
  0x39   :  { %s6115_s23 = smov [#allocation11]  }
  0x3a   :  { %s78_s26 = sshll.u32 %s6115_s23, 4  ;;  %s79_s26 = int_to_ptr.vmem [resolvable:$true] %s78_s26 }
  0x3b   :  { %s6064_s27 = scalar_lea.vmem %s79_s26, 16  ;;  %s6068_s2 = scalar_lea.vmem %s79_s26, 32 }
  0x3c   :  { %p6065_p11 = scmp.ne.s32.totalorder %s79_s26, %s6064_s27  ;;  %p6069_p12 = scmp.lt.s32.totalorder %s79_s26, %s79_s26 }
  0x3d   :  { %p6070_p13 = scmp.lt.s32.totalorder %s6068_s2, %s6064_s27 }
  0x3f   :  { %p6071_p0 = por %p6070_p13, %p6069_p12 }
  0x41   :  { %p6072_p1 = pnand %p6071_p0, %p6065_p11 }
  0x43   :  { %6075 = shalt.err (!%p6072_p1)
}
  0x44   :  { %81 = dma.hbm_to_vmem [thread:$0]  %s6326_s5, 16, %s79_s26, [#allocation12]  }
  0x45   :  { %6096 = dma.done.wait [#allocation3], 64  }
  0x46   :  { %6097 = vsyncadd [#allocation3], 4294967232 }
  0x47   :  { %6098 = dma.done.wait [#allocation6], 73728  }
  0x48   :  { %6099 = vsyncadd [#allocation6], 4294893568 }
  0x49   :  { %6100 = dma.done.wait [#allocation9], 8320  }
  0x4a   :  { %6101 = vsyncadd [#allocation9], 4294958976 }
  0x4b   :  { %6102 = dma.done.wait [#allocation12], 16  }
  0x4c   :  { %6103 = vsyncadd [#allocation12], 4294967280  ;;  %v6116_v0 = vmov 0   ;;  %v158_v1 = vld [vmem:[#allocation5 + $0x1c0] sm:$0xff]  ;;  %v159_v3 = vld [vmem:[#allocation5 + $0x1c8] sm:$0xff]  ;;  %s6117_s4 = smov [#allocation13]  }
  0x4d   :  { %518 = vmatprep.mubr.bf16.mxu0 %v6116_v0  ;;  %559 = vmatprep.mubr.bf16.mxu1 %v6116_v0  ;;  %v162_v2 = vld [vmem:[#allocation5 + $0x1e0] sm:$0xff]  ;;  %v163_v5 = vld [vmem:[#allocation5 + $0x1e8] sm:$0xff]  ;;  %v160_v63 = vld [vmem:[#allocation5 + $0x1d0] sm:$0xff]  ;;  %s5138_s5 = sshll.u32 %s6117_s4, 4  ;;  %s5139_s5 = int_to_ptr.vmem [resolvable:$true] %s5138_s5 }
  0x4e   :  { %v5207_v4 = vcombine.high %v158_v1, %v162_v2  ;;  %v5206_v6 = vcombine.low %v158_v1, %v162_v2  ;;  %v150_v7 = vld [vmem:[#allocation5 + $0x180] sm:$0xff]  ;;  %v5209_v9 = vcombine.high %v159_v3, %v163_v5  ;;  %v5208_v10 = vcombine.low %v159_v3, %v163_v5  ;;  %v151_v12 = vld [vmem:[#allocation5 + $0x188] sm:$0xff]  ;;  %v164_v1 = vld [vmem:[#allocation5 + $0x1f0] sm:$0xff]  ;;  %s6076_s28 = scalar_lea.vmem %s5139_s5, 128  ;;  %p6081_p3 = scmp.lt.s32.totalorder %s5139_s5, %s5139_s5 }
  0x4f   :  { %v154_v8 = vld [vmem:[#allocation5 + $0x1a0] sm:$0xff]  ;;  %v155_v13 = vld [vmem:[#allocation5 + $0x1a8] sm:$0xff]  ;;  %v161_v2 = vld [vmem:[#allocation5 + $0x1d8] sm:$0xff]  ;;  %p6077_p2 = scmp.ne.s32.totalorder %s5139_s5, %s6076_s28  ;;  %p6082_p4 = scmp.lt.s32.totalorder %s6076_s28, %s6076_s28 }
  0x50   :  { %v5199_v11 = vcombine.high %v150_v7, %v154_v8  ;;  %v142_v14 = vld [vmem:[#allocation5 + $0x140] sm:$0xff]  ;;  %486 = vmatprep.subr.bf16.mxu0 %v5207_v4  ;;  %v5201_v15 = vcombine.high %v151_v12, %v155_v13  ;;  %v143_v17 = vld [vmem:[#allocation5 + $0x148] sm:$0xff]  ;;  %527 = vmatprep.subr.bf16.mxu1 %v5209_v9  ;;  %v5198_v19 = vcombine.low %v150_v7, %v154_v8  ;;  %v165_v3 = vld [vmem:[#allocation5 + $0x1f8] sm:$0xff] }
  0x51   :  { %v146_v16 = vld [vmem:[#allocation5 + $0x160] sm:$0xff]  ;;  %v147_v18 = vld [vmem:[#allocation5 + $0x168] sm:$0xff]  ;;  %487 = vmatpush1.bf16.msra.mxu0 %v5206_v6  ;;  %528 = vmatpush1.bf16.msra.mxu1 %v5208_v10  ;;  %v5200_v20 = vcombine.low %v151_v12, %v155_v13  ;;  %v5211_v6 = vcombine.high %v160_v63, %v164_v1  ;;  %v5213_v7 = vcombine.high %v161_v2, %v165_v3  ;;  %v152_v8 = vld [vmem:[#allocation5 + $0x190] sm:$0xff]  ;;  %p6083_p5 = por %p6082_p4, %p6081_p3 }
  0x52   :  { %488 = vmatprep.subr.bf16.mxu0 %v5199_v11  ;;  %v5191_v21 = vcombine.high %v142_v14, %v146_v16  ;;  %529 = vmatprep.subr.bf16.mxu1 %v5201_v15  ;;  %v5193_v22 = vcombine.high %v143_v17, %v147_v18  ;;  %v134_v23 = vld [vmem:[#allocation5 + $0x100] sm:$0xff]  ;;  %v135_v25 = vld [vmem:[#allocation5 + $0x108] sm:$0xff]  ;;  %v5190_v27 = vcombine.low %v142_v14, %v146_v16  ;;  %v156_v9 = vld [vmem:[#allocation5 + $0x1b0] sm:$0xff] }
  0x53   :  { %v138_v24 = vld [vmem:[#allocation5 + $0x120] sm:$0xff]  ;;  %v139_v26 = vld [vmem:[#allocation5 + $0x128] sm:$0xff]  ;;  %v5192_v28 = vcombine.low %v143_v17, %v147_v18  ;;  %v153_v10 = vld [vmem:[#allocation5 + $0x198] sm:$0xff]  ;;  %v5210_v13 = vcombine.low %v160_v63, %v164_v1  ;;  %v5212_v14 = vcombine.low %v161_v2, %v165_v3  ;;  %v5203_v15 = vcombine.high %v152_v8, %v156_v9  ;;  %p6084_p6 = pnand %p6083_p5, %p6077_p2 }
  0x54   :  { %v5183_v29 = vcombine.high %v134_v23, %v138_v24  ;;  %v5185_v30 = vcombine.high %v135_v25, %v139_v26  ;;  %v126_v31 = vld [vmem:[#allocation5 + $0xc0] sm:$0xff]  ;;  %v127_v33 = vld [vmem:[#allocation5 + $0xc8] sm:$0xff]  ;;  %v5182_v35 = vcombine.low %v134_v23, %v138_v24  ;;  %v5184_v36 = vcombine.low %v135_v25, %v139_v26  ;;  %v157_v11 = vld [vmem:[#allocation5 + $0x1b8] sm:$0xff] }
  0x55   :  { %489 = vmatpush1.bf16.msra.mxu0 %v5198_v19  ;;  %530 = vmatpush1.bf16.msra.mxu1 %v5200_v20  ;;  %v130_v32 = vld [vmem:[#allocation5 + $0xe0] sm:$0xff]  ;;  %v131_v34 = vld [vmem:[#allocation5 + $0xe8] sm:$0xff]  ;;  %v6179_v12 = vld [vmem:[#allocation2] sm:$0xf]  ;;  %v5205_v16 = vcombine.high %v153_v10, %v157_v11 }
  0x56   :  { %490 = vmatprep.subr.bf16.mxu0 %v5191_v21  ;;  %531 = vmatprep.subr.bf16.mxu1 %v5193_v22  ;;  %v5175_v37 = vcombine.high %v126_v31, %v130_v32  ;;  %v5177_v38 = vcombine.high %v127_v33, %v131_v34  ;;  %v118_v39 = vld [vmem:[#allocation5 + $0x80] sm:$0xff]  ;;  %v119_v41 = vld [vmem:[#allocation5 + $0x88] sm:$0xff]  ;;  %v5174_v43 = vcombine.low %v126_v31, %v130_v32  ;;  %v144_v17 = vld [vmem:[#allocation5 + $0x150] sm:$0xff] }
  0x57   :  { %v122_v40 = vld [vmem:[#allocation5 + $0xa0] sm:$0xff]  ;;  %v123_v42 = vld [vmem:[#allocation5 + $0xa8] sm:$0xff]  ;;  %v5176_v44 = vcombine.low %v127_v33, %v131_v34  ;;  %v148_v18 = vld [vmem:[#allocation5 + $0x170] sm:$0xff]  ;;  %v5202_v21 = vcombine.low %v152_v8, %v156_v9  ;;  %v5204_v22 = vcombine.low %v153_v10, %v157_v11 }
  0x58   :  { %v5167_v45 = vcombine.high %v118_v39, %v122_v40  ;;  %v5169_v46 = vcombine.high %v119_v41, %v123_v42  ;;  %v110_v47 = vld [vmem:[#allocation5 + $0x40] sm:$0xff]  ;;  %v111_v49 = vld [vmem:[#allocation5 + $0x48] sm:$0xff]  ;;  %v5166_v51 = vcombine.low %v118_v39, %v122_v40  ;;  %v5168_v52 = vcombine.low %v119_v41, %v123_v42  ;;  %v145_v19 = vld [vmem:[#allocation5 + $0x158] sm:$0xff] }
  0x59   :  { %491 = vmatpush1.bf16.msra.mxu0 %v5190_v27  ;;  %532 = vmatpush1.bf16.msra.mxu1 %v5192_v28  ;;  %v114_v48 = vld [vmem:[#allocation5 + $0x60] sm:$0xff]  ;;  %v115_v50 = vld [vmem:[#allocation5 + $0x68] sm:$0xff]  ;;  %v149_v20 = vld [vmem:[#allocation5 + $0x178] sm:$0xff]  ;;  %v5195_v23 = vcombine.high %v144_v17, %v148_v18 }
  0x5a   :  { %492 = vmatprep.subr.bf16.mxu0 %v5183_v29  ;;  %533 = vmatprep.subr.bf16.mxu1 %v5185_v30  ;;  %v5159_v53 = vcombine.high %v110_v47, %v114_v48  ;;  %v5161_v54 = vcombine.high %v111_v49, %v115_v50  ;;  %v102_v55 = vld [vmem:[#allocation5] sm:$0xff]  ;;  %v103_v57 = vld [vmem:[#allocation5 + $0x8] sm:$0xff]  ;;  %v5158_v59 = vcombine.low %v110_v47, %v114_v48  ;;  %v136_v25 = vld [vmem:[#allocation5 + $0x110] sm:$0xff] }
  0x5b   :  { %v106_v56 = vld [vmem:[#allocation5 + $0x20] sm:$0xff]  ;;  %v107_v58 = vld [vmem:[#allocation5 + $0x28] sm:$0xff]  ;;  %v5160_v60 = vcombine.low %v111_v49, %v115_v50  ;;  %v5197_v24 = vcombine.high %v145_v19, %v149_v20  ;;  %v140_v26 = vld [vmem:[#allocation5 + $0x130] sm:$0xff]  ;;  %v5194_v29 = vcombine.low %v144_v17, %v148_v18  ;;  %v5196_v32 = vcombine.low %v145_v19, %v149_v20 }
  0x5c   :  { %v5151_v61 = vcombine.high %v102_v55, %v106_v56  ;;  %v5153_v62 = vcombine.high %v103_v57, %v107_v58  ;;  %v5150_v4 = vcombine.low %v102_v55, %v106_v56  ;;  %v5152_v5 = vcombine.low %v103_v57, %v107_v58  ;;  %v137_v27 = vld [vmem:[#allocation5 + $0x118] sm:$0xff]  ;;  %v128_v30 = vld [vmem:[#allocation5 + $0xd0] sm:$0xff]  ;;  %v850_v2 = vld [vmem:[#allocation7 + $0x5c0] sm:$0xff] }
  0x5d   :  { %493 = vmatpush1.bf16.msra.mxu0 %v5182_v35  ;;  %534 = vmatpush1.bf16.msra.mxu1 %v5184_v36  ;;  %v141_v28 = vld [vmem:[#allocation5 + $0x138] sm:$0xff]  ;;  %v132_v31 = vld [vmem:[#allocation5 + $0xf0] sm:$0xff]  ;;  %v5187_v33 = vcombine.high %v136_v25, %v140_v26  ;;  %v854_v3 = vld [vmem:[#allocation7 + $0x5e0] sm:$0xff] }
  0x5e   :  { %494 = vmatprep.subr.bf16.mxu0 %v5175_v37  ;;  %535 = vmatprep.subr.bf16.mxu1 %v5177_v38  ;;  %v129_v34 = vld [vmem:[#allocation5 + $0xd8] sm:$0xff]  ;;  %v5189_v36 = vcombine.high %v137_v27, %v141_v28  ;;  %v5186_v37 = vcombine.low %v136_v25, %v140_v26  ;;  %v120_v38 = vld [vmem:[#allocation5 + $0x90] sm:$0xff]  ;;  %v5188_v40 = vcombine.low %v137_v27, %v141_v28  ;;  %v842_v10 = vld [vmem:[#allocation7 + $0x580] sm:$0xff] }
  0x5f   :  { %v133_v35 = vld [vmem:[#allocation5 + $0xf8] sm:$0xff]  ;;  %v124_v39 = vld [vmem:[#allocation5 + $0xb0] sm:$0xff]  ;;  %v846_v11 = vld [vmem:[#allocation7 + $0x5a0] sm:$0xff]  ;;  %v5398_v17 = vcombine.low %v850_v2, %v854_v3 }
  0x60   :  { %v121_v41 = vld [vmem:[#allocation5 + $0x98] sm:$0xff]  ;;  %v5180_v47 = vcombine.low %v129_v34, %v133_v35  ;;  %v5171_v48 = vcombine.high %v120_v38, %v124_v39  ;;  %v834_v19 = vld [vmem:[#allocation7 + $0x540] sm:$0xff]  ;;  %v5390_v25 = vcombine.low %v842_v10, %v846_v11 }
  0x61   :  { %495 = vmatpush1.bf16.msra.mxu0 %v5174_v43  ;;  %536 = vmatpush1.bf16.msra.mxu1 %v5176_v44  ;;  %v125_v42 = vld [vmem:[#allocation5 + $0xb8] sm:$0xff]  ;;  %v5181_v43 = vcombine.high %v129_v34, %v133_v35  ;;  %v5178_v44 = vcombine.low %v128_v30, %v132_v31  ;;  %v838_v20 = vld [vmem:[#allocation7 + $0x560] sm:$0xff] }
  0x62   :  { %496 = vmatprep.subr.bf16.mxu0 %v5167_v45  ;;  %537 = vmatprep.subr.bf16.mxu1 %v5169_v46  ;;  %v112_v45 = vld [vmem:[#allocation5 + $0x50] sm:$0xff]  ;;  %v113_v49 = vld [vmem:[#allocation5 + $0x58] sm:$0xff]  ;;  %v5172_v55 = vcombine.low %v121_v41, %v125_v42  ;;  %v826_v27 = vld [vmem:[#allocation7 + $0x500] sm:$0xff] }
  0x63   :  { %v116_v46 = vld [vmem:[#allocation5 + $0x70] sm:$0xff]  ;;  %v117_v50 = vld [vmem:[#allocation5 + $0x78] sm:$0xff]  ;;  %v830_v28 = vld [vmem:[#allocation7 + $0x520] sm:$0xff] }
  0x64   :  { %v5163_v56 = vcombine.high %v112_v45, %v116_v46  ;;  %v105_v57 = vld [vmem:[#allocation5 + $0x18] sm:$0xff]  ;;  %v5164_v63 = vcombine.low %v113_v49, %v117_v50  ;;  %v818_v34 = vld [vmem:[#allocation7 + $0x4c0] sm:$0xff] }
  0x65   :  { %497 = vmatpush1.bf16.msra.mxu0 %v5166_v51  ;;  %538 = vmatpush1.bf16.msra.mxu1 %v5168_v52  ;;  %v5173_v51 = vcombine.high %v121_v41, %v125_v42  ;;  %v5170_v52 = vcombine.low %v120_v38, %v124_v39  ;;  %v109_v58 = vld [vmem:[#allocation5 + $0x38] sm:$0xff]  ;;  %v822_v35 = vld [vmem:[#allocation7 + $0x4e0] sm:$0xff] }
  0x66   :  { %498 = vmatprep.subr.bf16.mxu0 %v5159_v53  ;;  %539 = vmatprep.subr.bf16.mxu1 %v5161_v54  ;;  %v104_v53 = vld [vmem:[#allocation5 + $0x10] sm:$0xff]  ;;  %v5156_v8 = vcombine.low %v105_v57, %v109_v58  ;;  %v682_v38 = vld [vmem:[#allocation7 + $0x80] sm:$0xff] }
  0x67   :  { %v108_v54 = vld [vmem:[#allocation5 + $0x30] sm:$0xff]  ;;  %v686_v39 = vld [vmem:[#allocation7 + $0xa0] sm:$0xff] }
  0x68   :  { %v5155_v1 = vcombine.high %v104_v53, %v108_v54  ;;  %v810_v41 = vld [vmem:[#allocation7 + $0x480] sm:$0xff] }
  0x69   :  { %499 = vmatpush1.bf16.msra.mxu0 %v5158_v59  ;;  %540 = vmatpush1.bf16.msra.mxu1 %v5160_v60  ;;  %v5165_v59 = vcombine.high %v113_v49, %v117_v50  ;;  %v5162_v60 = vcombine.low %v112_v45, %v116_v46  ;;  %v814_v42 = vld [vmem:[#allocation7 + $0x4a0] sm:$0xff] }
  0x6a   :  { %500 = vmatprep.subr.bf16.mxu0 %v5151_v61  ;;  %541 = vmatprep.subr.bf16.mxu1 %v5153_v62  ;;  %v722_v61 = vld [vmem:[#allocation7 + $0x1c0] sm:$0xff] }
  0x6b   :  { %v726_v62 = vld [vmem:[#allocation7 + $0x1e0] sm:$0xff] }
  0x6c   :  { %v5271_v9 = vcombine.high %v722_v61, %v726_v62  ;;  %v674_v45 = vld [vmem:[#allocation7 + $0x40] sm:$0xff] }
  0x6d   :  { %501 = vmatpush1.bf16.msra.mxu0 %v5150_v4  ;;  %542 = vmatpush1.bf16.msra.mxu1 %v5152_v5  ;;  %v5157_v4 = vcombine.high %v105_v57, %v109_v58  ;;  %v5154_v5 = vcombine.low %v104_v53, %v108_v54  ;;  %v678_v46 = vld [vmem:[#allocation7 + $0x60] sm:$0xff]  ;;  %v5358_v53 = vcombine.low %v810_v41, %v814_v42 }
  0x6e   :  { %568 = vmatprep.subr.bf16.mxu0 %v5211_v6  ;;  %609 = vmatprep.subr.bf16.mxu1 %v5213_v7  ;;  %v714_v6 = vld [vmem:[#allocation7 + $0x180] sm:$0xff]  ;;  %v5223_v54 = vcombine.high %v674_v45, %v678_v46 }
  0x6f   :  { %v718_v7 = vld [vmem:[#allocation7 + $0x1a0] sm:$0xff] }
  0x70   :  { %519 = vmatmul.mubr.bf16.vlgmr.msra.gmra.mxu0 %v6179_v12  ;;  %560 = vmatmul.mubr.bf16.vlgmr.msra.gmra.mxu1 %v6179_v12  ;;  %v5263_v18 = vcombine.high %v714_v6, %v718_v7  ;;  %v802_v49 = vld [vmem:[#allocation7 + $0x440] sm:$0xff] }
  0x71   :  { %569 = vmatpush1.bf16.msra.mxu0 %v5210_v13  ;;  %610 = vmatpush1.bf16.msra.mxu1 %v5212_v14  ;;  %v5399_v13 = vcombine.high %v850_v2, %v854_v3  ;;  %v5270_v14 = vcombine.low %v722_v61, %v726_v62  ;;  %v806_v50 = vld [vmem:[#allocation7 + $0x460] sm:$0xff] }
  0x72   :  { %570 = vmatprep.subr.bf16.mxu0 %v5203_v15  ;;  %611 = vmatprep.subr.bf16.mxu1 %v5205_v16  ;;  %v706_v15 = vld [vmem:[#allocation7 + $0x140] sm:$0xff]  ;;  %v5350_v61 = vcombine.low %v802_v49, %v806_v50 }
  0x73   :  { %600 = vmatprep.mubr.bf16.mxu0 %v6116_v0  ;;  %641 = vmatprep.mubr.bf16.mxu1 %v6116_v0  ;;  %v5179_v0 = vcombine.high %v128_v30, %v132_v31  ;;  %v710_v16 = vld [vmem:[#allocation7 + $0x160] sm:$0xff] }
  0x74   :  { %v5255_v26 = vcombine.high %v706_v15, %v710_v16  ;;  %v5254_v30 = vcombine.low %v706_v15, %v710_v16  ;;  %v690_v31 = vld [vmem:[#allocation7 + $0xc0] sm:$0xff] }
  0x75   :  { %571 = vmatpush1.bf16.msra.mxu0 %v5202_v21  ;;  %612 = vmatpush1.bf16.msra.mxu1 %v5204_v22  ;;  %v5391_v21 = vcombine.high %v842_v10, %v846_v11  ;;  %v5262_v22 = vcombine.low %v714_v6, %v718_v7  ;;  %v670_v57 = vld [vmem:[#allocation7 + $0x20] sm:$0xff] }
  0x76   :  { %572 = vmatprep.subr.bf16.mxu0 %v5195_v23  ;;  %613 = vmatprep.subr.bf16.mxu1 %v5197_v24  ;;  %v698_v23 = vld [vmem:[#allocation7 + $0x100] sm:$0xff] }
  0x77   :  { %v702_v24 = vld [vmem:[#allocation7 + $0x120] sm:$0xff] }
  0x78   :  { %v794_v58 = vld [vmem:[#allocation7 + $0x400] sm:$0xff] }
  0x79   :  { %573 = vmatpush1.bf16.msra.mxu0 %v5194_v29  ;;  %614 = vmatpush1.bf16.msra.mxu1 %v5196_v32  ;;  %v5383_v29 = vcombine.high %v834_v19, %v838_v20  ;;  %v694_v32 = vld [vmem:[#allocation7 + $0xe0] sm:$0xff] }
  0x7a   :  { %574 = vmatprep.subr.bf16.mxu0 %v5187_v33  ;;  %615 = vmatprep.subr.bf16.mxu1 %v5189_v36  ;;  %v5382_v33 = vcombine.low %v834_v19, %v838_v20  ;;  %v5375_v36 = vcombine.high %v826_v27, %v830_v28  ;;  %v790_v2 = vld [vmem:[#allocation7 + $0x3e0] sm:$0xff] }
  0x7b   :  { %v914_v3 = vld [vmem:[#allocation7 + $0x7c0] sm:$0xff] }
  0x7c   :  { %v782_v10 = vld [vmem:[#allocation7 + $0x3a0] sm:$0xff] }
  0x7d   :  { %575 = vmatpush1.bf16.msra.mxu0 %v5186_v37  ;;  %616 = vmatpush1.bf16.msra.mxu1 %v5188_v40  ;;  %v5246_v37 = vcombine.low %v698_v23, %v702_v24  ;;  %v5374_v40 = vcombine.low %v826_v27, %v830_v28  ;;  %v906_v11 = vld [vmem:[#allocation7 + $0x780] sm:$0xff] }
  0x7e   :  { %576 = vmatprep.subr.bf16.mxu0 %v5179_v0  ;;  %617 = vmatprep.subr.bf16.mxu1 %v5181_v43  ;;  %v5239_v0 = vcombine.high %v690_v31, %v694_v32  ;;  %v5367_v43 = vcombine.high %v818_v34, %v822_v35  ;;  %v774_v19 = vld [vmem:[#allocation7 + $0x360] sm:$0xff] }
  0x7f   :  { %v898_v20 = vld [vmem:[#allocation7 + $0x740] sm:$0xff] }
  0x80   :  { %v766_v27 = vld [vmem:[#allocation7 + $0x320] sm:$0xff] }
  0x81   :  { %577 = vmatpush1.bf16.msra.mxu0 %v5178_v44  ;;  %618 = vmatpush1.bf16.msra.mxu1 %v5180_v47  ;;  %v5238_v44 = vcombine.low %v690_v31, %v694_v32  ;;  %v5366_v47 = vcombine.low %v818_v34, %v822_v35  ;;  %v890_v28 = vld [vmem:[#allocation7 + $0x700] sm:$0xff] }
  0x82   :  { %578 = vmatprep.subr.bf16.mxu0 %v5171_v48  ;;  %619 = vmatprep.subr.bf16.mxu1 %v5173_v51  ;;  %v5231_v48 = vcombine.high %v682_v38, %v686_v39  ;;  %v5359_v51 = vcombine.high %v810_v41, %v814_v42  ;;  %v6187_v31 = vld [vmem:[#allocation7 + $0x9c0] sm:$0xff] }
  0x83   :  { %v6189_v32 = vld [vmem:[#allocation7 + $0x9e0] sm:$0xff] }
  0x84   :  { %v6193_v35 = vld [vmem:[#allocation7 + $0xde0] sm:$0xff] }
  0x85   :  { %579 = vmatpush1.bf16.msra.mxu0 %v5170_v52  ;;  %620 = vmatpush1.bf16.msra.mxu1 %v5172_v55  ;;  %v5230_v52 = vcombine.low %v682_v38, %v686_v39  ;;  %v5351_v55 = vcombine.high %v802_v49, %v806_v50  ;;  %v758_v38 = vld [vmem:[#allocation7 + $0x2e0] sm:$0xff]  ;;  %v5526_v39 = vcombine.low %v6187_v31, %v6189_v32 }
  0x86   :  { %580 = vmatprep.subr.bf16.mxu0 %v5163_v56  ;;  %621 = vmatprep.subr.bf16.mxu1 %v5165_v59  ;;  %v666_v56 = vld [vmem:[#allocation7] sm:$0xff] }
  0x87   :  { %v798_v59 = vld [vmem:[#allocation7 + $0x420] sm:$0xff]  ;;  %v5215_v62 = vcombine.high %v666_v56, %v670_v57 }
  0x88   :  { %v5342_v6 = vcombine.low %v794_v58, %v798_v59  ;;  %v886_v41 = vld [vmem:[#allocation7 + $0x6e0] sm:$0xff] }
  0x89   :  { %581 = vmatpush1.bf16.msra.mxu0 %v5162_v60  ;;  %622 = vmatpush1.bf16.msra.mxu1 %v5164_v63  ;;  %v5222_v60 = vcombine.low %v674_v45, %v678_v46  ;;  %v5343_v63 = vcombine.high %v794_v58, %v798_v59  ;;  %v746_v46 = vld [vmem:[#allocation7 + $0x280] sm:$0xff] }
  0x8a   :  { %582 = vmatprep.subr.bf16.mxu0 %v5155_v1  ;;  %623 = vmatprep.subr.bf16.mxu1 %v5157_v4  ;;  %v786_v1 = vld [vmem:[#allocation7 + $0x3c0] sm:$0xff] }
  0x8b   :  { %v918_v4 = vld [vmem:[#allocation7 + $0x7e0] sm:$0xff]  ;;  %v5335_v7 = vcombine.high %v786_v1, %v790_v2 }
  0x8c   :  { %v5462_v15 = vcombine.low %v914_v3, %v918_v4  ;;  %v878_v49 = vld [vmem:[#allocation7 + $0x6a0] sm:$0xff] }
  0x8d   :  { %583 = vmatpush1.bf16.msra.mxu0 %v5154_v5  ;;  %624 = vmatpush1.bf16.msra.mxu1 %v5156_v8  ;;  %v5214_v5 = vcombine.low %v666_v56, %v670_v57  ;;  %v5463_v8 = vcombine.high %v914_v3, %v918_v4  ;;  %v866_v56 = vld [vmem:[#allocation7 + $0x640] sm:$0xff] }
  0x8e   :  { %3780 = vmatprep.subr.bf16.mxu0 %v5271_v9  ;;  %3821 = vmatprep.subr.bf16.mxu1 %v5399_v13  ;;  %v778_v9 = vld [vmem:[#allocation7 + $0x380] sm:$0xff] }
  0x8f   :  { %v910_v13 = vld [vmem:[#allocation7 + $0x7a0] sm:$0xff]  ;;  %v5327_v16 = vcombine.high %v778_v9, %v782_v10 }
  0x90   :  { %601 = vmatmul.mubr.bf16.vlgmr.msra.gmra.mxu0 %v6179_v12  ;;  %642 = vmatmul.mubr.bf16.vlgmr.msra.gmra.mxu1 %v6179_v12  ;;  %v5247_v12 = vcombine.high %v698_v23, %v702_v24  ;;  %v5454_v23 = vcombine.low %v906_v11, %v910_v13  ;;  %v870_v57 = vld [vmem:[#allocation7 + $0x660] sm:$0xff] }
  0x91   :  { %3781 = vmatpush1.bf16.msra.mxu0 %v5270_v14  ;;  %3822 = vmatpush1.bf16.msra.mxu1 %v5398_v17  ;;  %v5334_v14 = vcombine.low %v786_v1, %v790_v2  ;;  %v5455_v17 = vcombine.high %v906_v11, %v910_v13  ;;  %v858_v1 = vld [vmem:[#allocation7 + $0x600] sm:$0xff]  ;;  %v5414_v4 = vcombine.low %v866_v56, %v870_v57 }
  0x92   :  { %3782 = vmatprep.subr.bf16.mxu0 %v5263_v18  ;;  %3823 = vmatprep.subr.bf16.mxu1 %v5391_v21  ;;  %v770_v18 = vld [vmem:[#allocation7 + $0x340] sm:$0xff] }
  0x93   :  { %v902_v21 = vld [vmem:[#allocation7 + $0x760] sm:$0xff]  ;;  %v5319_v24 = vcombine.high %v770_v18, %v774_v19 }
  0x94   :  { %v862_v2 = vld [vmem:[#allocation7 + $0x620] sm:$0xff] }
  0x95   :  { %3783 = vmatpush1.bf16.msra.mxu0 %v5262_v22  ;;  %3824 = vmatpush1.bf16.msra.mxu1 %v5390_v25  ;;  %v5326_v22 = vcombine.low %v778_v9, %v782_v10  ;;  %v5447_v25 = vcombine.high %v898_v20, %v902_v21  ;;  %v5527_v9 = vcombine.high %v6187_v31, %v6189_v32 }
  0x96   :  { %3784 = vmatprep.subr.bf16.mxu0 %v5255_v26  ;;  %3825 = vmatprep.subr.bf16.mxu1 %v5383_v29  ;;  %v762_v26 = vld [vmem:[#allocation7 + $0x300] sm:$0xff] }
  0x97   :  { %v894_v29 = vld [vmem:[#allocation7 + $0x720] sm:$0xff]  ;;  %v5311_v34 = vcombine.high %v762_v26, %v766_v27  ;;  %v5310_v42 = vcombine.low %v762_v26, %v766_v27 }
  0x99   :  { %3785 = vmatpush1.bf16.msra.mxu0 %v5254_v30  ;;  %3826 = vmatpush1.bf16.msra.mxu1 %v5382_v33  ;;  %v5318_v30 = vcombine.low %v770_v18, %v774_v19  ;;  %v6191_v33 = vld [vmem:[#allocation7 + $0xdc0] sm:$0xff] }
  0x9a   :  { %3786 = vmatprep.subr.bf16.mxu0 %v5247_v12  ;;  %3827 = vmatprep.subr.bf16.mxu1 %v5375_v36  ;;  %v5446_v12 = vcombine.low %v898_v20, %v902_v21  ;;  %v5439_v36 = vcombine.high %v890_v28, %v894_v29  ;;  %v5655_v10 = vcombine.high %v6191_v33, %v6193_v35  ;;  %v970_v19 = vld [vmem:[#allocation7 + $0x980] sm:$0xff] }
  0x9b   :  { %v974_v20 = vld [vmem:[#allocation7 + $0x9a0] sm:$0xff] }
  0x9d   :  { %3787 = vmatpush1.bf16.msra.mxu0 %v5246_v37  ;;  %3828 = vmatpush1.bf16.msra.mxu1 %v5374_v40  ;;  %v754_v37 = vld [vmem:[#allocation7 + $0x2c0] sm:$0xff]  ;;  %v5654_v40 = vcombine.low %v6191_v33, %v6193_v35 }
  0x9e   :  { %3788 = vmatprep.subr.bf16.mxu0 %v5239_v0  ;;  %3829 = vmatprep.subr.bf16.mxu1 %v5367_v43  ;;  %v882_v0 = vld [vmem:[#allocation7 + $0x6c0] sm:$0xff]  ;;  %v5438_v43 = vcombine.low %v890_v28, %v894_v29  ;;  %v5302_v50 = vcombine.low %v754_v37, %v758_v38 }
  0x9f   :  { %v5431_v45 = vcombine.high %v882_v0, %v886_v41  ;;  %v950_v33 = vld [vmem:[#allocation7 + $0x8e0] sm:$0xff] }
  0xa0   :  { %v1074_v35 = vld [vmem:[#allocation7 + $0xcc0] sm:$0xff] }
  0xa1   :  { %3789 = vmatpush1.bf16.msra.mxu0 %v5238_v44  ;;  %3830 = vmatpush1.bf16.msra.mxu1 %v5366_v47  ;;  %v5303_v44 = vcombine.high %v754_v37, %v758_v38  ;;  %v750_v47 = vld [vmem:[#allocation7 + $0x2a0] sm:$0xff] }
  0xa2   :  { %3790 = vmatprep.subr.bf16.mxu0 %v5231_v48  ;;  %3831 = vmatprep.subr.bf16.mxu1 %v5359_v51  ;;  %v874_v48 = vld [vmem:[#allocation7 + $0x680] sm:$0xff]  ;;  %v5430_v51 = vcombine.low %v882_v0, %v886_v41  ;;  %v5294_v58 = vcombine.low %v746_v46, %v750_v47 }
  0xa3   :  { %v5422_v59 = vcombine.low %v874_v48, %v878_v49  ;;  %v962_v37 = vld [vmem:[#allocation7 + $0x940] sm:$0xff] }
  0xa4   :  { %v966_v38 = vld [vmem:[#allocation7 + $0x960] sm:$0xff] }
  0xa5   :  { %3791 = vmatpush1.bf16.msra.mxu0 %v5230_v52  ;;  %3832 = vmatpush1.bf16.msra.mxu1 %v5358_v53  ;;  %v5295_v52 = vcombine.high %v746_v46, %v750_v47  ;;  %v5423_v53 = vcombine.high %v874_v48, %v878_v49  ;;  %v1090_v0 = vld [vmem:[#allocation7 + $0xd40] sm:$0xff] }
  0xa6   :  { %3792 = vmatprep.subr.bf16.mxu0 %v5223_v54  ;;  %3833 = vmatprep.subr.bf16.mxu1 %v5351_v55  ;;  %v738_v54 = vld [vmem:[#allocation7 + $0x240] sm:$0xff] }
  0xa7   :  { %v742_v55 = vld [vmem:[#allocation7 + $0x260] sm:$0xff] }
  0xa8   :  { %v5286_v3 = vcombine.low %v738_v54, %v742_v55  ;;  %v1094_v41 = vld [vmem:[#allocation7 + $0xd60] sm:$0xff] }
  0xa9   :  { %3793 = vmatpush1.bf16.msra.mxu0 %v5222_v60  ;;  %3834 = vmatpush1.bf16.msra.mxu1 %v5350_v61  ;;  %v5287_v60 = vcombine.high %v738_v54, %v742_v55  ;;  %v5415_v61 = vcombine.high %v866_v56, %v870_v57  ;;  %v954_v46 = vld [vmem:[#allocation7 + $0x900] sm:$0xff]  ;;  %v5638_v31 = vcombine.low %v1090_v0, %v1094_v41 }
  0xaa   :  { %3794 = vmatprep.subr.bf16.mxu0 %v5215_v62  ;;  %3835 = vmatprep.subr.bf16.mxu1 %v5343_v63  ;;  %v730_v62 = vld [vmem:[#allocation7 + $0x200] sm:$0xff] }
  0xab   :  { %v734_v63 = vld [vmem:[#allocation7 + $0x220] sm:$0xff] }
  0xac   :  { %v958_v47 = vld [vmem:[#allocation7 + $0x920] sm:$0xff] }
  0xad   :  { %3795 = vmatpush1.bf16.msra.mxu0 %v5214_v5  ;;  %3836 = vmatpush1.bf16.msra.mxu1 %v5342_v6  ;;  %v5279_v5 = vcombine.high %v730_v62, %v734_v63  ;;  %v5407_v6 = vcombine.high %v858_v1, %v862_v2  ;;  %v1082_v48 = vld [vmem:[#allocation7 + $0xd00] sm:$0xff]  ;;  %v5503_v32 = vcombine.high %v954_v46, %v958_v47 }
  0xae   :  { %3796 = vmatprep.subr.bf16.mxu0 %v5335_v7  ;;  %3837 = vmatprep.subr.bf16.mxu1 %v5463_v8  ;;  %v5278_v7 = vcombine.low %v730_v62, %v734_v63  ;;  %v5406_v8 = vcombine.low %v858_v1, %v862_v2  ;;  %v1086_v49 = vld [vmem:[#allocation7 + $0xd20] sm:$0xff] }
  0xaf   :  { %v938_v56 = vld [vmem:[#allocation7 + $0x880] sm:$0xff] }
  0xb0   :  { %v942_v57 = vld [vmem:[#allocation7 + $0x8a0] sm:$0xff] }
  0xb1   :  { %3797 = vmatpush2.bf16.msra.mxu0 %v5334_v14  ;;  %3838 = vmatpush2.bf16.msra.mxu1 %v5462_v15  ;;  %v5487_v62 = vcombine.high %v938_v56, %v942_v57  ;;  %v930_v1 = vld [vmem:[#allocation7 + $0x840] sm:$0xff] }
  0xb2   :  { %3798 = vmatprep.subr.bf16.mxu0 %v5327_v16  ;;  %3839 = vmatprep.subr.bf16.mxu1 %v5455_v17  ;;  %v934_v2 = vld [vmem:[#allocation7 + $0x860] sm:$0xff] }
  0xb5   :  { %3799 = vmatpush2.bf16.msra.mxu0 %v5326_v22  ;;  %3840 = vmatpush2.bf16.msra.mxu1 %v5454_v23  ;;  %v1098_v23 = vld [vmem:[#allocation7 + $0xd80] sm:$0xff] }
  0xb6   :  { %3800 = vmatprep.subr.bf16.mxu0 %v5319_v24  ;;  %3841 = vmatprep.subr.bf16.mxu1 %v5447_v25  ;;  %v1102_v24 = vld [vmem:[#allocation7 + $0xda0] sm:$0xff] }
  0xb9   :  { %3801 = vmatpush2.bf16.msra.mxu0 %v5318_v30  ;;  %3842 = vmatpush2.bf16.msra.mxu1 %v5446_v12  ;;  %v5519_v12 = vcombine.high %v970_v19, %v974_v20 }
  0xba   :  { %3802 = vmatprep.subr.bf16.mxu0 %v5311_v34  ;;  %3843 = vmatprep.subr.bf16.mxu1 %v5439_v36  ;;  %v5647_v36 = vcombine.high %v1098_v23, %v1102_v24 }
  0xbd   :  { %3803 = vmatpush2.bf16.msra.mxu0 %v5310_v42  ;;  %3844 = vmatpush2.bf16.msra.mxu1 %v5438_v43  ;;  %v5518_v42 = vcombine.low %v970_v19, %v974_v20  ;;  %v5646_v43 = vcombine.low %v1098_v23, %v1102_v24  ;;  %v1046_v19 = vld [vmem:[#allocation7 + $0xbe0] sm:$0xff] }
  0xbe   :  { %3804 = vmatprep.subr.bf16.mxu0 %v5303_v44  ;;  %3845 = vmatprep.subr.bf16.mxu1 %v5431_v45  ;;  %v5511_v44 = vcombine.high %v962_v37, %v966_v38  ;;  %v5639_v45 = vcombine.high %v1090_v0, %v1094_v41  ;;  %v1170_v20 = vld [vmem:[#allocation7 + $0xfc0] sm:$0xff] }
  0xbf   :  { %v1162_v41 = vld [vmem:[#allocation7 + $0xf80] sm:$0xff] }
  0xc1   :  { %3805 = vmatpush2.bf16.msra.mxu0 %v5302_v50  ;;  %3846 = vmatpush2.bf16.msra.mxu1 %v5430_v51  ;;  %v5510_v50 = vcombine.low %v962_v37, %v966_v38  ;;  %v946_v51 = vld [vmem:[#allocation7 + $0x8c0] sm:$0xff] }
  0xc2   :  { %3806 = vmatprep.subr.bf16.mxu0 %v5295_v52  ;;  %3847 = vmatprep.subr.bf16.mxu1 %v5423_v53  ;;  %v5502_v52 = vcombine.low %v954_v46, %v958_v47  ;;  %v5630_v53 = vcombine.low %v1082_v48, %v1086_v49  ;;  %v5495_v54 = vcombine.high %v946_v51, %v950_v33  ;;  %v1038_v37 = vld [vmem:[#allocation7 + $0xba0] sm:$0xff] }
  0xc5   :  { %3807 = vmatpush2.bf16.msra.mxu0 %v5294_v58  ;;  %3848 = vmatpush2.bf16.msra.mxu1 %v5422_v59  ;;  %v1066_v58 = vld [vmem:[#allocation7 + $0xc80] sm:$0xff] }
  0xc6   :  { %3808 = vmatprep.subr.bf16.mxu0 %v5287_v60  ;;  %3849 = vmatprep.subr.bf16.mxu1 %v5415_v61  ;;  %v1070_v59 = vld [vmem:[#allocation7 + $0xca0] sm:$0xff]  ;;  %v5494_v60 = vcombine.low %v946_v51, %v950_v33 }
  0xc7   :  { %v5615_v63 = vcombine.high %v1066_v58, %v1070_v59  ;;  %v1030_v51 = vld [vmem:[#allocation7 + $0xb60] sm:$0xff] }
  0xc9   :  { %3809 = vmatpush2.bf16.msra.mxu0 %v5286_v3  ;;  %3850 = vmatpush2.bf16.msra.mxu1 %v5414_v4  ;;  %v1058_v3 = vld [vmem:[#allocation7 + $0xc40] sm:$0xff] }
  0xca   :  { %3810 = vmatprep.subr.bf16.mxu0 %v5279_v5  ;;  %3851 = vmatprep.subr.bf16.mxu1 %v5407_v6  ;;  %v1062_v4 = vld [vmem:[#allocation7 + $0xc60] sm:$0xff]  ;;  %v5486_v5 = vcombine.low %v938_v56, %v942_v57  ;;  %v5614_v6 = vcombine.low %v1066_v58, %v1070_v59 }
  0xcb   :  { %v1018_v56 = vld [vmem:[#allocation7 + $0xb00] sm:$0xff] }
  0xcc   :  { %v1022_v57 = vld [vmem:[#allocation7 + $0xb20] sm:$0xff] }
  0xcd   :  { %3811 = vmatpush2.bf16.msra.mxu0 %v5278_v7  ;;  %3852 = vmatpush2.bf16.msra.mxu1 %v5406_v8  ;;  %v5479_v7 = vcombine.high %v930_v1, %v934_v2  ;;  %v5607_v8 = vcombine.high %v1058_v3, %v1062_v4  ;;  %v1146_v58 = vld [vmem:[#allocation7 + $0xf00] sm:$0xff] }
  0xce   :  { %3862 = vmatprep.subr.bf16.mxu0 %v5527_v9  ;;  %3903 = vmatprep.subr.bf16.mxu1 %v5655_v10  ;;  %v922_v9 = vld [vmem:[#allocation7 + $0x800] sm:$0xff] }
  0xcf   :  { %v926_v10 = vld [vmem:[#allocation7 + $0x820] sm:$0xff] }
  0xd0   :  { %v5470_v23 = vcombine.low %v922_v9, %v926_v10  ;;  %v1150_v59 = vld [vmem:[#allocation7 + $0xf20] sm:$0xff] }
 0x130   :  { %v520_v11 = vpop.f32.mrf.mxu0  ;;  %v561_v13 = vpop.f32.mrf.mxu1 }
 0x131   :  { %v650_v14 = vmax.f32 %v520_v11, 0.0  ;;  %v652_v15 = vmax.f32 %v561_v13, 0.0  ;;  %v1050_v11 = vld [vmem:[#allocation7 + $0xc00] sm:$0xff] }
 0x132   :  { %v522_v16 = vpop.f32.mrf.mxu0  ;;  %v563_v18 = vpop.f32.mrf.mxu1  ;;  %v1054_v13 = vld [vmem:[#allocation7 + $0xc20] sm:$0xff] }
 0x133   :  { %v651_v17 = vmax.f32 %v522_v16, 0.0  ;;  %v653_v21 = vmax.f32 %v563_v18, 0.0  ;;  %v6203_v25 = vpack.c.bf16 %v652_v15, %v652_v15  ;;  %v6207_v28 = vpack.c.bf16 %v650_v14, %v650_v14  ;;  %v1042_v18 = vld [vmem:[#allocation7 + $0xbc0] sm:$0xff] }
 0x134   :  { %v524_v22 = vpop.f32.mrf.mxu0  ;;  %v565_v27 = vpop.f32.mrf.mxu1  ;;  %v5478_v14 = vcombine.low %v930_v1, %v934_v2  ;;  %v5606_v15 = vcombine.low %v1058_v3, %v1062_v4  ;;  %v5471_v16 = vcombine.high %v922_v9, %v926_v10  ;;  %v1010_v1 = vld [vmem:[#allocation7 + $0xac0] sm:$0xff] }
 0x135   :  { %v6205_v26 = vpack.c.bf16 %v651_v17, %v651_v17  ;;  %v6209_v29 = vpack.c.bf16 %v653_v21, %v653_v21  ;;  %v5599_v17 = vcombine.high %v1050_v11, %v1054_v13  ;;  %v1174_v21 = vld [vmem:[#allocation7 + $0xfe0] sm:$0xff]  ;;  %v5598_v27 = vcombine.low %v1050_v11, %v1054_v13 }
 0x136   :  { %v525_v30 = vpop.f32.mrf.mxu0  ;;  %v566_v34 = vpop.f32.mrf.mxu1  ;;  %v1014_v2 = vld [vmem:[#allocation7 + $0xae0] sm:$0xff] }
 0x137   :  { %3812 = vmatprep.mubr.bf16.mxu0 %v6205_v26  ;;  %3853 = vmatprep.mubr.bf16.mxu1 %v6209_v29  ;;  %v5591_v30 = vcombine.high %v1042_v18, %v1046_v19  ;;  %v5719_v34 = vcombine.high %v1170_v20, %v1174_v21  ;;  %v1138_v3 = vld [vmem:[#allocation7 + $0xec0] sm:$0xff] }
 0x138   :  { %3813 = vmatmul.mubr.bf16.vlgmr.msra.gmra.mxu0 %v6207_v28  ;;  %3854 = vmatmul.mubr.bf16.vlgmr.msra.gmra.mxu1 %v6203_v25  ;;  %v1142_v4 = vld [vmem:[#allocation7 + $0xee0] sm:$0xff] }
 0x139   :  { %3863 = vmatpush1.bf16.msra.mxu0 %v5526_v39  ;;  %3904 = vmatpush1.bf16.msra.mxu1 %v5654_v40  ;;  %v5631_v39 = vcombine.high %v1082_v48, %v1086_v49  ;;  %v1078_v40 = vld [vmem:[#allocation7 + $0xce0] sm:$0xff]  ;;  %v5718_v48 = vcombine.low %v1170_v20, %v1174_v21 }
 0x13a   :  { %3864 = vmatprep.subr.bf16.mxu0 %v5519_v12  ;;  %3905 = vmatprep.subr.bf16.mxu1 %v5647_v36  ;;  %v5623_v55 = vcombine.high %v1074_v35, %v1078_v40  ;;  %v5622_v61 = vcombine.low %v1074_v35, %v1078_v40  ;;  %v1034_v36 = vld [vmem:[#allocation7 + $0xb80] sm:$0xff] }
 0x13b   :  { %v5583_v49 = vcombine.high %v1034_v36, %v1038_v37  ;;  %v1154_v35 = vld [vmem:[#allocation7 + $0xf40] sm:$0xff] }
 0x13c   :  { %v1158_v40 = vld [vmem:[#allocation7 + $0xf60] sm:$0xff] }
 0x13d   :  { %3865 = vmatpush1.bf16.msra.mxu0 %v5518_v42  ;;  %3906 = vmatpush1.bf16.msra.mxu1 %v5646_v43  ;;  %v1166_v42 = vld [vmem:[#allocation7 + $0xfa0] sm:$0xff] }
 0x13e   :  { %3866 = vmatprep.subr.bf16.mxu0 %v5511_v44  ;;  %3907 = vmatprep.subr.bf16.mxu1 %v5639_v45  ;;  %v5590_v45 = vcombine.low %v1042_v18, %v1046_v19  ;;  %v1002_v9 = vld [vmem:[#allocation7 + $0xa80] sm:$0xff] }
 0x13f   :  { %v1006_v10 = vld [vmem:[#allocation7 + $0xaa0] sm:$0xff] }
 0x140   :  { %v1130_v11 = vld [vmem:[#allocation7 + $0xe80] sm:$0xff] }
 0x141   :  { %3867 = vmatpush1.bf16.msra.mxu0 %v5510_v50  ;;  %3908 = vmatpush1.bf16.msra.mxu1 %v5638_v31  ;;  %v1134_v13 = vld [vmem:[#allocation7 + $0xea0] sm:$0xff] }
 0x142   :  { %3868 = vmatprep.subr.bf16.mxu0 %v5503_v32  ;;  %3909 = vmatprep.subr.bf16.mxu1 %v5631_v39  ;;  %v5711_v32 = vcombine.high %v1162_v41, %v1166_v42  ;;  %v1026_v39 = vld [vmem:[#allocation7 + $0xb40] sm:$0xff] }
 0x143   :  { %v994_v18 = vld [vmem:[#allocation7 + $0xa40] sm:$0xff] }
 0x144   :  { %v998_v19 = vld [vmem:[#allocation7 + $0xa60] sm:$0xff] }
 0x145   :  { %3869 = vmatpush1.bf16.msra.mxu0 %v5502_v52  ;;  %3910 = vmatpush1.bf16.msra.mxu1 %v5630_v53  ;;  %v5582_v52 = vcombine.low %v1034_v36, %v1038_v37  ;;  %v5710_v53 = vcombine.low %v1162_v41, %v1166_v42  ;;  %v1122_v20 = vld [vmem:[#allocation7 + $0xe40] sm:$0xff] }
 0x146   :  { %3870 = vmatprep.subr.bf16.mxu0 %v5495_v54  ;;  %3911 = vmatprep.subr.bf16.mxu1 %v5623_v55  ;;  %v5575_v54 = vcombine.high %v1026_v39, %v1030_v51  ;;  %v5703_v55 = vcombine.high %v1154_v35, %v1158_v40  ;;  %v1126_v21 = vld [vmem:[#allocation7 + $0xe60] sm:$0xff] }
 0x147   :  { %v990_v36 = vld [vmem:[#allocation7 + $0xa20] sm:$0xff]  ;;  %v5670_v41 = vcombine.low %v1122_v20, %v1126_v21 }
 0x148   :  { %v1114_v37 = vld [vmem:[#allocation7 + $0xe00] sm:$0xff] }
 0x149   :  { %3871 = vmatpush1.bf16.msra.mxu0 %v5494_v60  ;;  %3912 = vmatpush1.bf16.msra.mxu1 %v5622_v61  ;;  %v5574_v60 = vcombine.low %v1026_v39, %v1030_v51  ;;  %v5702_v61 = vcombine.low %v1154_v35, %v1158_v40  ;;  %v715_v35 = vld [vmem:[#allocation7 + $0x188] sm:$0xff] }
 0x14a   :  { %3872 = vmatprep.subr.bf16.mxu0 %v5487_v62  ;;  %3913 = vmatprep.subr.bf16.mxu1 %v5615_v63  ;;  %v5567_v62 = vcombine.high %v1018_v56, %v1022_v57  ;;  %v5695_v63 = vcombine.high %v1146_v58, %v1150_v59  ;;  %v719_v40 = vld [vmem:[#allocation7 + $0x1a8] sm:$0xff] }
 0x14d   :  { %3873 = vmatpush1.bf16.msra.mxu0 %v5486_v5  ;;  %3914 = vmatpush1.bf16.msra.mxu1 %v5614_v6  ;;  %v5566_v5 = vcombine.low %v1018_v56, %v1022_v57  ;;  %v5694_v6 = vcombine.low %v1146_v58, %v1150_v59  ;;  %v707_v57 = vld [vmem:[#allocation7 + $0x148] sm:$0xff] }
 0x14e   :  { %3874 = vmatprep.subr.bf16.mxu0 %v5479_v7  ;;  %3915 = vmatprep.subr.bf16.mxu1 %v5607_v8  ;;  %v5559_v7 = vcombine.high %v1010_v1, %v1014_v2  ;;  %v5687_v8 = vcombine.high %v1138_v3, %v1142_v4  ;;  %v711_v58 = vld [vmem:[#allocation7 + $0x168] sm:$0xff] }
 0x150   :  { %v6221_v22 = vpop.f32.mrf.mxu0  ;;  %v6223_v24 = vpop.f32.mrf.mxu1 }
 0x151   :  { %3875 = vmatpush1.bf16.msra.mxu0 %v5478_v14  ;;  %3916 = vmatpush1.bf16.msra.mxu1 %v5606_v15  ;;  %v5558_v14 = vcombine.low %v1010_v1, %v1014_v2  ;;  %v5686_v15 = vcombine.low %v1138_v3, %v1142_v4  ;;  %v5257_v1 = vcombine.high %v707_v57, %v711_v58  ;;  %v699_v3 = vld [vmem:[#allocation7 + $0x108] sm:$0xff] }
 0x152   :  { %3876 = vmatprep.subr.bf16.mxu0 %v5471_v16  ;;  %v604_v12 = vpop.f32.mrf.mxu0  ;;  %3917 = vmatprep.subr.bf16.mxu1 %v5599_v17  ;;  %v645_v0 = vpop.f32.mrf.mxu1  ;;  %v5551_v16 = vcombine.high %v1002_v9, %v1006_v10  ;;  %v5679_v17 = vcombine.high %v1130_v11, %v1134_v13  ;;  %v703_v4 = vld [vmem:[#allocation7 + $0x128] sm:$0xff] }
 0x153   :  { %v655_v38 = vmax.f32 %v604_v12, 0.0  ;;  %v657_v44 = vmax.f32 %v645_v0, 0.0  ;;  %v5671_v12 = vcombine.high %v1122_v20, %v1126_v21  ;;  %v5542_v0 = vcombine.low %v994_v18, %v998_v19  ;;  %v683_v20 = vld [vmem:[#allocation7 + $0x88] sm:$0xff] }
 0x154   :  { %v606_v43 = vpop.f32.mrf.mxu0  ;;  %v647_v47 = vpop.f32.mrf.mxu1  ;;  %v687_v21 = vld [vmem:[#allocation7 + $0xa8] sm:$0xff] }
 0x155   :  { %3877 = vmatpush1.bf16.msra.mxu0 %v5470_v23  ;;  %v6225_v46 = vpack.c.bf16 %v655_v38, %v655_v38  ;;  %3918 = vmatpush1.bf16.msra.mxu1 %v5598_v27  ;;  %v6227_v50 = vpack.c.bf16 %v657_v44, %v657_v44  ;;  %v5550_v23 = vcombine.low %v1002_v9, %v1006_v10  ;;  %v1118_v38 = vld [vmem:[#allocation7 + $0xe20] sm:$0xff]  ;;  %v723_v44 = vld [vmem:[#allocation7 + $0x1c8] sm:$0xff] }
 0x156   :  { %3878 = vmatprep.subr.bf16.mxu0 %v5591_v30  ;;  %v607_v31 = vpop.f32.mrf.mxu0  ;;  %3919 = vmatprep.subr.bf16.mxu1 %v5719_v34  ;;  %v648_v33 = vpop.f32.mrf.mxu1  ;;  %v5678_v27 = vcombine.low %v1130_v11, %v1134_v13  ;;  %v5543_v30 = vcombine.high %v994_v18, %v998_v19  ;;  %v986_v34 = vld [vmem:[#allocation7 + $0xa00] sm:$0xff]  ;;  %v5663_v43 = vcombine.high %v1114_v37, %v1118_v38  ;;  %v851_v47 = vld [vmem:[#allocation7 + $0x5c8] sm:$0xff] }
 0x157   :  { %3894 = vmatprep.mubr.bf16.mxu0 %v6225_v46  ;;  %3935 = vmatprep.mubr.bf16.mxu1 %v6227_v50  ;;  %v5535_v42 = vcombine.high %v986_v34, %v990_v36  ;;  %v5534_v31 = vcombine.low %v986_v34, %v990_v36  ;;  %v5662_v39 = vcombine.low %v1114_v37, %v1118_v38  ;;  %v691_v11 = vld [vmem:[#allocation7 + $0xc8] sm:$0xff] }
 0x158   :  { %v5249_v9 = vcombine.high %v699_v3, %v703_v4  ;;  %v695_v13 = vld [vmem:[#allocation7 + $0xe8] sm:$0xff]  ;;  %v5233_v34 = vcombine.high %v683_v20, %v687_v21 }
 0x159   :  { %3879 = vmatpush2.bf16.msra.mxu0 %v5590_v45  ;;  %3920 = vmatpush2.bf16.msra.mxu1 %v5718_v48  ;;  %v727_v45 = vld [vmem:[#allocation7 + $0x1e8] sm:$0xff]  ;;  %v5241_v18 = vcombine.high %v691_v11, %v695_v13 }
 0x15a   :  { %3880 = vmatprep.subr.bf16.mxu0 %v5583_v49  ;;  %3921 = vmatprep.subr.bf16.mxu1 %v5711_v32  ;;  %v855_v48 = vld [vmem:[#allocation7 + $0x5e8] sm:$0xff]  ;;  %v656_v49 = vmax.f32 %v6223_v24, 0.0  ;;  %v654_v32 = vmax.f32 %v6221_v22, 0.0  ;;  %v5273_v51 = vcombine.high %v723_v44, %v727_v45  ;;  %v5265_v22 = vcombine.high %v715_v35, %v719_v40 }
 0x15b   :  { %v5401_v33 = vcombine.high %v851_v47, %v855_v48  ;;  %v5400_v24 = vcombine.low %v851_v47, %v855_v48  ;;  %v675_v37 = vld [vmem:[#allocation7 + $0x48] sm:$0xff] }
 0x15c   :  { %v6235_v56 = vpack.c.bf16 %v654_v32, %v654_v32  ;;  %v679_v38 = vld [vmem:[#allocation7 + $0x68] sm:$0xff] }
 0x15d   :  { %3881 = vmatpush2.bf16.msra.mxu0 %v5582_v52  ;;  %3922 = vmatpush2.bf16.msra.mxu1 %v5710_v53  ;;  %v6233_v52 = vpack.c.bf16 %v656_v49, %v656_v49  ;;  %v5272_v53 = vcombine.low %v723_v44, %v727_v45  ;;  %v5225_v44 = vcombine.high %v675_v37, %v679_v38  ;;  %v667_v47 = vld [vmem:[#allocation7 + $0x8] sm:$0xff] }
 0x15e   :  { %3882 = vmatprep.subr.bf16.mxu0 %v5575_v54  ;;  %3923 = vmatprep.subr.bf16.mxu1 %v5703_v55  ;;  %v843_v54 = vld [vmem:[#allocation7 + $0x588] sm:$0xff]  ;;  %v5224_v32 = vcombine.low %v675_v37, %v679_v38 }
 0x15f   :  { %v847_v55 = vld [vmem:[#allocation7 + $0x5a8] sm:$0xff] }
 0x160   :  { %v5393_v59 = vcombine.high %v843_v54, %v847_v55  ;;  %v671_v48 = vld [vmem:[#allocation7 + $0x28] sm:$0xff] }
 0x161   :  { %3883 = vmatpush2.bf16.msra.mxu0 %v5574_v60  ;;  %3924 = vmatpush2.bf16.msra.mxu1 %v5702_v61  ;;  %v835_v60 = vld [vmem:[#allocation7 + $0x548] sm:$0xff] }
 0x162   :  { %3884 = vmatprep.subr.bf16.mxu0 %v5567_v62  ;;  %3925 = vmatprep.subr.bf16.mxu1 %v5695_v63  ;;  %v839_v61 = vld [vmem:[#allocation7 + $0x568] sm:$0xff]  ;;  %v5264_v62 = vcombine.low %v715_v35, %v719_v40  ;;  %v5392_v63 = vcombine.low %v843_v54, %v847_v55  ;;  %v5216_v55 = vcombine.low %v667_v47, %v671_v48 }
 0x163   :  { %v5385_v2 = vcombine.high %v835_v60, %v839_v61  ;;  %v795_v49 = vld [vmem:[#allocation7 + $0x408] sm:$0xff] }
 0x164   :  { %v787_v35 = vld [vmem:[#allocation7 + $0x3c8] sm:$0xff] }
 0x165   :  { %3885 = vmatpush2.bf16.msra.mxu0 %v5566_v5  ;;  %3926 = vmatpush2.bf16.msra.mxu1 %v5694_v6  ;;  %v827_v5 = vld [vmem:[#allocation7 + $0x508] sm:$0xff] }
 0x166   :  { %3886 = vmatprep.subr.bf16.mxu0 %v5559_v7  ;;  %3927 = vmatprep.subr.bf16.mxu1 %v5687_v8  ;;  %v831_v6 = vld [vmem:[#allocation7 + $0x528] sm:$0xff]  ;;  %v5256_v7 = vcombine.low %v707_v57, %v711_v58  ;;  %v5384_v8 = vcombine.low %v835_v60, %v839_v61 }
 0x167   :  { %v5377_v10 = vcombine.high %v827_v5, %v831_v6  ;;  %v791_v40 = vld [vmem:[#allocation7 + $0x3e8] sm:$0xff] }
 0x168   :  { %v919_v54 = vld [vmem:[#allocation7 + $0x7e8] sm:$0xff] }
 0x169   :  { %3887 = vmatpush2.bf16.msra.mxu0 %v5558_v14  ;;  %3928 = vmatpush2.bf16.msra.mxu1 %v5686_v15  ;;  %v819_v14 = vld [vmem:[#allocation7 + $0x4c8] sm:$0xff] }
 0x16a   :  { %3888 = vmatprep.subr.bf16.mxu0 %v5551_v16  ;;  %3929 = vmatprep.subr.bf16.mxu1 %v5679_v17  ;;  %v823_v15 = vld [vmem:[#allocation7 + $0x4e8] sm:$0xff]  ;;  %v5248_v16 = vcombine.low %v699_v3, %v703_v4  ;;  %v5376_v17 = vcombine.low %v827_v5, %v831_v6 }
 0x16b   :  { %v5369_v19 = vcombine.high %v819_v14, %v823_v15  ;;  %v779_v58 = vld [vmem:[#allocation7 + $0x388] sm:$0xff] }
 0x16c   :  { %v907_v60 = vld [vmem:[#allocation7 + $0x788] sm:$0xff] }
 0x16d   :  { %3889 = vmatpush2.bf16.msra.mxu0 %v5550_v23  ;;  %3930 = vmatpush2.bf16.msra.mxu1 %v5678_v27  ;;  %v811_v23 = vld [vmem:[#allocation7 + $0x488] sm:$0xff] }
 0x16e   :  { %3890 = vmatprep.subr.bf16.mxu0 %v5543_v30  ;;  %3931 = vmatprep.subr.bf16.mxu1 %v5671_v12  ;;  %v815_v27 = vld [vmem:[#allocation7 + $0x4a8] sm:$0xff]  ;;  %v5240_v30 = vcombine.low %v691_v11, %v695_v13  ;;  %v5368_v12 = vcombine.low %v819_v14, %v823_v15 }
 0x16f   :  { %v5361_v36 = vcombine.high %v811_v23, %v815_v27  ;;  %v911_v61 = vld [vmem:[#allocation7 + $0x7a8] sm:$0xff] }
 0x170   :  { %v771_v3 = vld [vmem:[#allocation7 + $0x348] sm:$0xff] }
 0x171   :  { %3891 = vmatpush2.bf16.msra.mxu0 %v5542_v0  ;;  %3932 = vmatpush2.bf16.msra.mxu1 %v5670_v41  ;;  %v803_v0 = vld [vmem:[#allocation7 + $0x448] sm:$0xff] }
 0x172   :  { %3892 = vmatprep.subr.bf16.mxu0 %v5535_v42  ;;  %3933 = vmatprep.subr.bf16.mxu1 %v5663_v43  ;;  %v807_v41 = vld [vmem:[#allocation7 + $0x468] sm:$0xff]  ;;  %v5232_v42 = vcombine.low %v683_v20, %v687_v21  ;;  %v5360_v43 = vcombine.low %v811_v23, %v815_v27 }
 0x173   :  { %v5353_v45 = vcombine.high %v803_v0, %v807_v41  ;;  %v775_v4 = vld [vmem:[#allocation7 + $0x368] sm:$0xff] }
 0x174   :  { %v899_v5 = vld [vmem:[#allocation7 + $0x748] sm:$0xff] }
 0x175   :  { %3893 = vmatpush2.bf16.msra.mxu0 %v5534_v31  ;;  %3934 = vmatpush2.bf16.msra.mxu1 %v5662_v39  ;;  %v799_v31 = vld [vmem:[#allocation7 + $0x428] sm:$0xff]  ;;  %v5352_v39 = vcombine.low %v803_v0, %v807_v41 }
 0x176   :  { %3944 = vmatprep.subr.bf16.mxu0 %v5273_v51  ;;  %3985 = vmatprep.subr.bf16.mxu1 %v5401_v33  ;;  %v5217_v51 = vcombine.high %v667_v47, %v671_v48  ;;  %v5345_v33 = vcombine.high %v795_v49, %v799_v31  ;;  %v903_v6 = vld [vmem:[#allocation7 + $0x768] sm:$0xff] }
 0x177   :  { %v763_v11 = vld [vmem:[#allocation7 + $0x308] sm:$0xff] }
 0x178   :  { %3895 = vmatmul.mubr.bf16.vlgmr.msra.gmra.mxu0 %v6235_v56  ;;  %3936 = vmatmul.mubr.bf16.vlgmr.msra.gmra.mxu1 %v6233_v52  ;;  %v767_v13 = vld [vmem:[#allocation7 + $0x328] sm:$0xff] }
 0x179   :  { %3945 = vmatpush1.bf16.msra.mxu0 %v5272_v53  ;;  %3976 = vmatprep.mubr.bf16.mxu0 %v6205_v26  ;;  %v915_v53 = vld [vmem:[#allocation7 + $0x7c8] sm:$0xff] }
 0x17a   :  { %3986 = vmatpush1.bf16.msra.mxu1 %v5400_v24  ;;  %4017 = vmatprep.mubr.bf16.mxu1 %v6209_v29  ;;  %v5344_v24 = vcombine.low %v795_v49, %v799_v31  ;;  %v5465_v57 = vcombine.high %v915_v53, %v919_v54  ;;  %v891_v14 = vld [vmem:[#allocation7 + $0x708] sm:$0xff] }
 0x17b   :  { %3946 = vmatprep.subr.bf16.mxu0 %v5265_v22  ;;  %3987 = vmatprep.subr.bf16.mxu1 %v5393_v59  ;;  %v5337_v22 = vcombine.high %v787_v35, %v791_v40  ;;  %v783_v59 = vld [vmem:[#allocation7 + $0x3a8] sm:$0xff] }
 0x17c   :  { %v895_v15 = vld [vmem:[#allocation7 + $0x728] sm:$0xff] }
 0x17d   :  { %3947 = vmatpush1.bf16.msra.mxu0 %v5264_v62  ;;  %v5336_v62 = vcombine.low %v787_v35, %v791_v40  ;;  %v755_v20 = vld [vmem:[#allocation7 + $0x2c8] sm:$0xff] }
 0x17e   :  { %3988 = vmatpush1.bf16.msra.mxu1 %v5392_v63  ;;  %3948 = vmatprep.subr.bf16.mxu0 %v5257_v1  ;;  %v5464_v63 = vcombine.low %v915_v53, %v919_v54  ;;  %v5329_v1 = vcombine.high %v779_v58, %v783_v59  ;;  %v759_v21 = vld [vmem:[#allocation7 + $0x2e8] sm:$0xff] }
 0x17f   :  { %3989 = vmatprep.subr.bf16.mxu1 %v5385_v2  ;;  %v5457_v2 = vcombine.high %v907_v60, %v911_v61  ;;  %v883_v23 = vld [vmem:[#allocation7 + $0x6c8] sm:$0xff] }
 0x180   :  { %v887_v27 = vld [vmem:[#allocation7 + $0x6e8] sm:$0xff] }
 0x181   :  { %3949 = vmatpush1.bf16.msra.mxu0 %v5256_v7  ;;  %v5328_v7 = vcombine.low %v779_v58, %v783_v59  ;;  %v747_v37 = vld [vmem:[#allocation7 + $0x288] sm:$0xff] }
 0x182   :  { %3990 = vmatpush1.bf16.msra.mxu1 %v5384_v8  ;;  %3950 = vmatprep.subr.bf16.mxu0 %v5249_v9  ;;  %v5456_v8 = vcombine.low %v907_v60, %v911_v61  ;;  %v5321_v9 = vcombine.high %v771_v3, %v775_v4  ;;  %v751_v38 = vld [vmem:[#allocation7 + $0x2a8] sm:$0xff] }
 0x183   :  { %3991 = vmatprep.subr.bf16.mxu1 %v5377_v10  ;;  %v5449_v10 = vcombine.high %v899_v5, %v903_v6  ;;  %v875_v0 = vld [vmem:[#allocation7 + $0x688] sm:$0xff] }
 0x184   :  { %v879_v41 = vld [vmem:[#allocation7 + $0x6a8] sm:$0xff] }
 0x185   :  { %3951 = vmatpush1.bf16.msra.mxu0 %v5248_v16  ;;  %v5320_v16 = vcombine.low %v771_v3, %v775_v4  ;;  %v739_v47 = vld [vmem:[#allocation7 + $0x248] sm:$0xff] }
 0x186   :  { %3992 = vmatpush1.bf16.msra.mxu1 %v5376_v17  ;;  %3952 = vmatprep.subr.bf16.mxu0 %v5241_v18  ;;  %v5448_v17 = vcombine.low %v899_v5, %v903_v6  ;;  %v5313_v18 = vcombine.high %v763_v11, %v767_v13  ;;  %v743_v48 = vld [vmem:[#allocation7 + $0x268] sm:$0xff] }
 0x187   :  { %3993 = vmatprep.subr.bf16.mxu1 %v5369_v19  ;;  %v5441_v19 = vcombine.high %v891_v14, %v895_v15  ;;  %v867_v49 = vld [vmem:[#allocation7 + $0x648] sm:$0xff] }
 0x188   :  { %v871_v31 = vld [vmem:[#allocation7 + $0x668] sm:$0xff] }
 0x189   :  { %3953 = vmatpush1.bf16.msra.mxu0 %v5240_v30  ;;  %v5312_v30 = vcombine.low %v763_v11, %v767_v13  ;;  %v731_v35 = vld [vmem:[#allocation7 + $0x208] sm:$0xff] }
 0x18a   :  { %3994 = vmatpush1.bf16.msra.mxu1 %v5368_v12  ;;  %3954 = vmatprep.subr.bf16.mxu0 %v5233_v34  ;;  %v5440_v12 = vcombine.low %v891_v14, %v895_v15  ;;  %v5305_v34 = vcombine.high %v755_v20, %v759_v21  ;;  %v735_v40 = vld [vmem:[#allocation7 + $0x228] sm:$0xff] }
 0x18b   :  { %3995 = vmatprep.subr.bf16.mxu1 %v5361_v36  ;;  %v5433_v36 = vcombine.high %v883_v23, %v887_v27  ;;  %v859_v53 = vld [vmem:[#allocation7 + $0x608] sm:$0xff] }
 0x18c   :  { %v863_v54 = vld [vmem:[#allocation7 + $0x628] sm:$0xff] }
 0x18d   :  { %3955 = vmatpush1.bf16.msra.mxu0 %v5232_v42  ;;  %v5304_v42 = vcombine.low %v755_v20, %v759_v21  ;;  %v979_v58 = vld [vmem:[#allocation7 + $0x9c8] sm:$0xff] }
 0x18e   :  { %3996 = vmatpush1.bf16.msra.mxu1 %v5360_v43  ;;  %3956 = vmatprep.subr.bf16.mxu0 %v5225_v44  ;;  %v5432_v43 = vcombine.low %v883_v23, %v887_v27  ;;  %v5297_v44 = vcombine.high %v747_v37, %v751_v38  ;;  %v983_v59 = vld [vmem:[#allocation7 + $0x9e8] sm:$0xff] }
 0x18f   :  { %3997 = vmatprep.subr.bf16.mxu1 %v5353_v45  ;;  %v5425_v45 = vcombine.high %v875_v0, %v879_v41  ;;  %v1107_v60 = vld [vmem:[#allocation7 + $0xdc8] sm:$0xff]  ;;  %v5528_v5 = vcombine.low %v979_v58, %v983_v59 }
 0x190   :  { %v1111_v61 = vld [vmem:[#allocation7 + $0xde8] sm:$0xff] }
 0x191   :  { %3957 = vmatpush1.bf16.msra.mxu0 %v5224_v32  ;;  %v5296_v32 = vcombine.low %v747_v37, %v751_v38  ;;  %v971_v3 = vld [vmem:[#allocation7 + $0x988] sm:$0xff] }
 0x192   :  { %3998 = vmatpush1.bf16.msra.mxu1 %v5352_v39  ;;  %3958 = vmatprep.subr.bf16.mxu0 %v5217_v51  ;;  %v5424_v39 = vcombine.low %v875_v0, %v879_v41  ;;  %v5289_v51 = vcombine.high %v739_v47, %v743_v48  ;;  %v975_v4 = vld [vmem:[#allocation7 + $0x9a8] sm:$0xff] }
 0x193   :  { %3999 = vmatprep.subr.bf16.mxu1 %v5345_v33  ;;  %v5417_v33 = vcombine.high %v867_v49, %v871_v31  ;;  %v1099_v6 = vld [vmem:[#allocation7 + $0xd88] sm:$0xff] }
 0x194   :  { %v967_v11 = vld [vmem:[#allocation7 + $0x968] sm:$0xff] }
 0x195   :  { %3959 = vmatpush1.bf16.msra.mxu0 %v5216_v55  ;;  %v5288_v55 = vcombine.low %v739_v47, %v743_v48  ;;  %v1091_v14 = vld [vmem:[#allocation7 + $0xd48] sm:$0xff] }
 0x196   :  { %4000 = vmatpush1.bf16.msra.mxu1 %v5344_v24  ;;  %3960 = vmatprep.subr.bf16.mxu0 %v5337_v22  ;;  %v5416_v24 = vcombine.low %v867_v49, %v871_v31  ;;  %v5281_v22 = vcombine.high %v731_v35, %v735_v40  ;;  %v1095_v15 = vld [vmem:[#allocation7 + $0xd68] sm:$0xff] }
 0x197   :  { %4001 = vmatprep.subr.bf16.mxu1 %v5465_v57  ;;  %v5409_v57 = vcombine.high %v859_v53, %v863_v54  ;;  %v955_v20 = vld [vmem:[#allocation7 + $0x908] sm:$0xff] }
 0x198   :  { %v959_v21 = vld [vmem:[#allocation7 + $0x928] sm:$0xff] }
 0x199   :  { %3961 = vmatpush2.bf16.msra.mxu0 %v5336_v62  ;;  %v5280_v62 = vcombine.low %v731_v35, %v735_v40  ;;  %v1083_v23 = vld [vmem:[#allocation7 + $0xd08] sm:$0xff] }
 0x19a   :  { %4002 = vmatpush2.bf16.msra.mxu1 %v5464_v63  ;;  %3962 = vmatprep.subr.bf16.mxu0 %v5329_v1  ;;  %v5408_v63 = vcombine.low %v859_v53, %v863_v54  ;;  %v5529_v1 = vcombine.high %v979_v58, %v983_v59  ;;  %v1087_v27 = vld [vmem:[#allocation7 + $0xd28] sm:$0xff] }
 0x19b   :  { %4003 = vmatprep.subr.bf16.mxu1 %v5457_v2  ;;  %v5657_v2 = vcombine.high %v1107_v60, %v1111_v61  ;;  %v947_v37 = vld [vmem:[#allocation7 + $0x8c8] sm:$0xff] }
 0x19c   :  { %v951_v38 = vld [vmem:[#allocation7 + $0x8e8] sm:$0xff] }
 0x19d   :  { %3963 = vmatpush2.bf16.msra.mxu0 %v5328_v7  ;;  %v1103_v7 = vld [vmem:[#allocation7 + $0xda8] sm:$0xff] }
 0x19e   :  { %4004 = vmatpush2.bf16.msra.mxu1 %v5456_v8  ;;  %3964 = vmatprep.subr.bf16.mxu0 %v5321_v9  ;;  %v5656_v8 = vcombine.low %v1107_v60, %v1111_v61  ;;  %v5521_v9 = vcombine.high %v971_v3, %v975_v4  ;;  %v5649_v13 = vcombine.high %v1099_v6, %v1103_v7  ;;  %v1075_v0 = vld [vmem:[#allocation7 + $0xcc8] sm:$0xff] }
 0x19f   :  { %4005 = vmatprep.subr.bf16.mxu1 %v5449_v10  ;;  %v963_v10 = vld [vmem:[#allocation7 + $0x948] sm:$0xff] }
 0x1a0   :  { %v1079_v41 = vld [vmem:[#allocation7 + $0xce8] sm:$0xff] }
 0x1a1   :  { %3965 = vmatpush2.bf16.msra.mxu0 %v5320_v16  ;;  %v5520_v16 = vcombine.low %v971_v3, %v975_v4  ;;  %v939_v47 = vld [vmem:[#allocation7 + $0x888] sm:$0xff] }
 0x1a2   :  { %4006 = vmatpush2.bf16.msra.mxu1 %v5448_v17  ;;  %3966 = vmatprep.subr.bf16.mxu0 %v5313_v18  ;;  %v5648_v17 = vcombine.low %v1099_v6, %v1103_v7  ;;  %v5513_v18 = vcombine.high %v963_v10, %v967_v11  ;;  %v943_v48 = vld [vmem:[#allocation7 + $0x8a8] sm:$0xff] }
 0x1a3   :  { %4007 = vmatprep.subr.bf16.mxu1 %v5441_v19  ;;  %v5641_v19 = vcombine.high %v1091_v14, %v1095_v15  ;;  %v1067_v49 = vld [vmem:[#allocation7 + $0xc88] sm:$0xff] }
 0x1a4   :  { %v1071_v31 = vld [vmem:[#allocation7 + $0xca8] sm:$0xff] }
 0x1a5   :  { %3967 = vmatpush2.bf16.msra.mxu0 %v5312_v30  ;;  %v5512_v30 = vcombine.low %v963_v10, %v967_v11  ;;  %v931_v35 = vld [vmem:[#allocation7 + $0x848] sm:$0xff] }
 0x1a6   :  { %4008 = vmatpush2.bf16.msra.mxu1 %v5440_v12  ;;  %3968 = vmatprep.subr.bf16.mxu0 %v5305_v34  ;;  %v5640_v12 = vcombine.low %v1091_v14, %v1095_v15  ;;  %v5505_v34 = vcombine.high %v955_v20, %v959_v21  ;;  %v935_v40 = vld [vmem:[#allocation7 + $0x868] sm:$0xff] }
 0x1a7   :  { %4009 = vmatprep.subr.bf16.mxu1 %v5433_v36  ;;  %v5633_v36 = vcombine.high %v1083_v23, %v1087_v27  ;;  %v1059_v53 = vld [vmem:[#allocation7 + $0xc48] sm:$0xff] }
 0x1a8   :  { %v1063_v54 = vld [vmem:[#allocation7 + $0xc68] sm:$0xff] }
 0x1a9   :  { %3969 = vmatpush2.bf16.msra.mxu0 %v5304_v42  ;;  %v5504_v42 = vcombine.low %v955_v20, %v959_v21  ;;  %v923_v58 = vld [vmem:[#allocation7 + $0x808] sm:$0xff] }
 0x1aa   :  { %4010 = vmatpush2.bf16.msra.mxu1 %v5432_v43  ;;  %3970 = vmatprep.subr.bf16.mxu0 %v5297_v44  ;;  %v5632_v43 = vcombine.low %v1083_v23, %v1087_v27  ;;  %v5497_v44 = vcombine.high %v947_v37, %v951_v38  ;;  %v927_v59 = vld [vmem:[#allocation7 + $0x828] sm:$0xff] }
 0x1ab   :  { %4011 = vmatprep.subr.bf16.mxu1 %v5425_v45  ;;  %v5625_v45 = vcombine.high %v1075_v0, %v1079_v41  ;;  %v1051_v60 = vld [vmem:[#allocation7 + $0xc08] sm:$0xff]  ;;  %v5472_v7 = vcombine.low %v923_v58, %v927_v59 }
 0x1ac   :  { %v1055_v61 = vld [vmem:[#allocation7 + $0xc28] sm:$0xff] }
 0x1ad   :  { %3971 = vmatpush2.bf16.msra.mxu0 %v5296_v32  ;;  %v5496_v32 = vcombine.low %v947_v37, %v951_v38  ;;  %v1043_v3 = vld [vmem:[#allocation7 + $0xbc8] sm:$0xff] }
 0x1ae   :  { %4012 = vmatpush2.bf16.msra.mxu1 %v5424_v39  ;;  %3972 = vmatprep.subr.bf16.mxu0 %v5289_v51  ;;  %v5624_v39 = vcombine.low %v1075_v0, %v1079_v41  ;;  %v5489_v51 = vcombine.high %v939_v47, %v943_v48  ;;  %v1047_v4 = vld [vmem:[#allocation7 + $0xbe8] sm:$0xff] }
 0x1af   :  { %4013 = vmatprep.subr.bf16.mxu1 %v5417_v33  ;;  %v5617_v33 = vcombine.high %v1067_v49, %v1071_v31  ;;  %v1175_v6 = vld [vmem:[#allocation7 + $0xfe8] sm:$0xff] }
 0x1b0   :  { %v1035_v11 = vld [vmem:[#allocation7 + $0xb88] sm:$0xff] }
 0x1b1   :  { %3973 = vmatpush2.bf16.msra.mxu0 %v5288_v55  ;;  %v5488_v55 = vcombine.low %v939_v47, %v943_v48  ;;  %v1163_v14 = vld [vmem:[#allocation7 + $0xf88] sm:$0xff] }
 0x1b2   :  { %4014 = vmatpush2.bf16.msra.mxu1 %v5416_v24  ;;  %3974 = vmatprep.subr.bf16.mxu0 %v5281_v22  ;;  %v5616_v24 = vcombine.low %v1067_v49, %v1071_v31  ;;  %v5481_v22 = vcombine.high %v931_v35, %v935_v40  ;;  %v1167_v15 = vld [vmem:[#allocation7 + $0xfa8] sm:$0xff] }
 0x1b3   :  { %4015 = vmatprep.subr.bf16.mxu1 %v5409_v57  ;;  %v5609_v57 = vcombine.high %v1059_v53, %v1063_v54  ;;  %v1027_v20 = vld [vmem:[#allocation7 + $0xb48] sm:$0xff] }
 0x1b4   :  { %v1031_v21 = vld [vmem:[#allocation7 + $0xb68] sm:$0xff] }
 0x1b5   :  { %3975 = vmatpush2.bf16.msra.mxu0 %v5280_v62  ;;  %v5480_v62 = vcombine.low %v931_v35, %v935_v40  ;;  %v1155_v23 = vld [vmem:[#allocation7 + $0xf48] sm:$0xff] }
 0x1b6   :  { %4016 = vmatpush2.bf16.msra.mxu1 %v5408_v63  ;;  %4026 = vmatprep.subr.bf16.mxu0 %v5529_v1  ;;  %v5608_v63 = vcombine.low %v1059_v53, %v1063_v54  ;;  %v5473_v1 = vcombine.high %v923_v58, %v927_v59  ;;  %v1159_v27 = vld [vmem:[#allocation7 + $0xf68] sm:$0xff] }
 0x1b7   :  { %4067 = vmatprep.subr.bf16.mxu1 %v5657_v2  ;;  %v5601_v2 = vcombine.high %v1051_v60, %v1055_v61  ;;  %v1019_v37 = vld [vmem:[#allocation7 + $0xb08] sm:$0xff] }
 0x1b8   :  { %3977 = vmatmul.mubr.bf16.vlgmr.msra.gmra.mxu0 %v6207_v28  ;;  %v1023_v38 = vld [vmem:[#allocation7 + $0xb28] sm:$0xff] }
 0x1b9   :  { %4018 = vmatmul.mubr.bf16.vlgmr.msra.gmra.mxu1 %v6203_v25  ;;  %4027 = vmatpush1.bf16.msra.mxu0 %v5528_v5  ;;  %v1171_v5 = vld [vmem:[#allocation7 + $0xfc8] sm:$0xff] }
 0x1ba   :  { %4058 = vmatprep.mubr.bf16.mxu0 %v6225_v46  ;;  %4068 = vmatpush1.bf16.msra.mxu1 %v5656_v8  ;;  %v5600_v8 = vcombine.low %v1051_v60, %v1055_v61  ;;  %v5721_v10 = vcombine.high %v1171_v5, %v1175_v6  ;;  %v1147_v0 = vld [vmem:[#allocation7 + $0xf08] sm:$0xff] }
 0x1bb   :  { %4099 = vmatprep.mubr.bf16.mxu1 %v6227_v50  ;;  %4028 = vmatprep.subr.bf16.mxu0 %v5521_v9  ;;  %v5593_v9 = vcombine.high %v1043_v3, %v1047_v4  ;;  %v1151_v41 = vld [vmem:[#allocation7 + $0xf28] sm:$0xff] }
 0x1bc   :  { %4069 = vmatprep.subr.bf16.mxu1 %v5649_v13  ;;  %v1039_v13 = vld [vmem:[#allocation7 + $0xba8] sm:$0xff] }
 0x1bd   :  { %4029 = vmatpush1.bf16.msra.mxu0 %v5520_v16  ;;  %v5592_v16 = vcombine.low %v1043_v3, %v1047_v4  ;;  %v1011_v47 = vld [vmem:[#allocation7 + $0xac8] sm:$0xff] }
 0x1be   :  { %4070 = vmatpush1.bf16.msra.mxu1 %v5648_v17  ;;  %4030 = vmatprep.subr.bf16.mxu0 %v5513_v18  ;;  %v5720_v17 = vcombine.low %v1171_v5, %v1175_v6  ;;  %v5585_v18 = vcombine.high %v1035_v11, %v1039_v13  ;;  %v1015_v48 = vld [vmem:[#allocation7 + $0xae8] sm:$0xff] }
 0x1bf   :  { %4071 = vmatprep.subr.bf16.mxu1 %v5641_v19  ;;  %v5713_v19 = vcombine.high %v1163_v14, %v1167_v15  ;;  %v1139_v49 = vld [vmem:[#allocation7 + $0xec8] sm:$0xff] }
 0x1c0   :  { %v1143_v31 = vld [vmem:[#allocation7 + $0xee8] sm:$0xff] }
 0x1c1   :  { %4031 = vmatpush1.bf16.msra.mxu0 %v5512_v30  ;;  %v5584_v30 = vcombine.low %v1035_v11, %v1039_v13  ;;  %v1003_v35 = vld [vmem:[#allocation7 + $0xa88] sm:$0xff] }
 0x1c2   :  { %4072 = vmatpush1.bf16.msra.mxu1 %v5640_v12  ;;  %4032 = vmatprep.subr.bf16.mxu0 %v5505_v34  ;;  %v5712_v12 = vcombine.low %v1163_v14, %v1167_v15  ;;  %v5577_v34 = vcombine.high %v1027_v20, %v1031_v21  ;;  %v1007_v40 = vld [vmem:[#allocation7 + $0xaa8] sm:$0xff]  ;;  %v724_v14 = vld [vmem:[#allocation7 + $0x1d0] sm:$0xff] }
 0x1c3   :  { %4073 = vmatprep.subr.bf16.mxu1 %v5633_v36  ;;  %v5705_v36 = vcombine.high %v1155_v23, %v1159_v27  ;;  %v1131_v53 = vld [vmem:[#allocation7 + $0xe88] sm:$0xff]  ;;  %v728_v15 = vld [vmem:[#allocation7 + $0x1f0] sm:$0xff] }
 0x1c4   :  { %v1135_v54 = vld [vmem:[#allocation7 + $0xea8] sm:$0xff] }
 0x1c5   :  { %4033 = vmatpush1.bf16.msra.mxu0 %v5504_v42  ;;  %v5576_v42 = vcombine.low %v1027_v20, %v1031_v21  ;;  %v995_v58 = vld [vmem:[#allocation7 + $0xa48] sm:$0xff]  ;;  %v5275_v21 = vcombine.high %v724_v14, %v728_v15 }
 0x1c6   :  { %4074 = vmatpush1.bf16.msra.mxu1 %v5632_v43  ;;  %4034 = vmatprep.subr.bf16.mxu0 %v5497_v44  ;;  %v5704_v43 = vcombine.low %v1155_v23, %v1159_v27  ;;  %v5569_v44 = vcombine.high %v1019_v37, %v1023_v38  ;;  %v999_v59 = vld [vmem:[#allocation7 + $0xa68] sm:$0xff]  ;;  %v6248_v23 = vld [vmem:[#allocation8] sm:$0xff] }
 0x1c7   :  { %4075 = vmatprep.subr.bf16.mxu1 %v5625_v45  ;;  %v5697_v45 = vcombine.high %v1147_v0, %v1151_v41  ;;  %v1123_v60 = vld [vmem:[#allocation7 + $0xe48] sm:$0xff] }
 0x1c8   :  { %v1127_v61 = vld [vmem:[#allocation7 + $0xe68] sm:$0xff] }
 0x1c9   :  { %4035 = vmatpush1.bf16.msra.mxu0 %v5496_v32  ;;  %v5568_v32 = vcombine.low %v1019_v37, %v1023_v38  ;;  %v5673_v3 = vcombine.high %v1123_v60, %v1127_v61  ;;  %v987_v4 = vld [vmem:[#allocation7 + $0xa08] sm:$0xff]  ;;  %v844_v38 = vld [vmem:[#allocation7 + $0x590] sm:$0xff] }
 0x1ca   :  { %4076 = vmatpush1.bf16.msra.mxu1 %v5624_v39  ;;  %4036 = vmatprep.subr.bf16.mxu0 %v5489_v51  ;;  %v5696_v39 = vcombine.low %v1147_v0, %v1151_v41  ;;  %v5561_v51 = vcombine.high %v1011_v47, %v1015_v48  ;;  %v991_v5 = vld [vmem:[#allocation7 + $0xa28] sm:$0xff]  ;;  %v848_v0 = vld [vmem:[#allocation7 + $0x5b0] sm:$0xff] }
 0x1cb   :  { %4077 = vmatprep.subr.bf16.mxu1 %v5617_v33  ;;  %v5689_v33 = vcombine.high %v1139_v49, %v1143_v31  ;;  %v1115_v6 = vld [vmem:[#allocation7 + $0xe08] sm:$0xff]  ;;  %v5537_v11 = vcombine.high %v987_v4, %v991_v5 }
 0x1cd   :  { %4037 = vmatpush1.bf16.msra.mxu0 %v5488_v55  ;;  %v5560_v55 = vcombine.low %v1011_v47, %v1015_v48  ;;  %v5395_v48 = vcombine.high %v844_v38, %v848_v0 }
 0x1ce   :  { %4078 = vmatpush1.bf16.msra.mxu1 %v5616_v24  ;;  %4038 = vmatprep.subr.bf16.mxu0 %v5481_v22  ;;  %v5688_v24 = vcombine.low %v1139_v49, %v1143_v31  ;;  %v5553_v22 = vcombine.high %v1003_v35, %v1007_v40  ;;  %v836_v49 = vld [vmem:[#allocation7 + $0x550] sm:$0xff] }
 0x1cf   :  { %4079 = vmatprep.subr.bf16.mxu1 %v5609_v57  ;;  %v5681_v57 = vcombine.high %v1131_v53, %v1135_v54  ;;  %v840_v31 = vld [vmem:[#allocation7 + $0x570] sm:$0xff] }
 0x1d1   :  { %4039 = vmatpush1.bf16.msra.mxu0 %v5480_v62  ;;  %v5552_v62 = vcombine.low %v1003_v35, %v1007_v40  ;;  %v5394_v35 = vcombine.low %v844_v38, %v848_v0 }
 0x1d2   :  { %4080 = vmatpush1.bf16.msra.mxu1 %v5608_v63  ;;  %4040 = vmatprep.subr.bf16.mxu0 %v5473_v1  ;;  %v1180_v63 = vlaneseq  ;;  %v5680_v1 = vcombine.low %v1131_v53, %v1135_v54 }
 0x1d3   :  { %4081 = vmatprep.subr.bf16.mxu1 %v5601_v2  ;;  %v5545_v2 = vcombine.high %v995_v58, %v999_v59 }
 0x1d5   :  { %4041 = vmatpush1.bf16.msra.mxu0 %v5472_v7  ;;  %v1119_v7 = vld [vmem:[#allocation7 + $0xe28] sm:$0xff] }
 0x1d6   :  { %4082 = vmatpush1.bf16.msra.mxu1 %v5600_v8  ;;  %4042 = vmatprep.subr.bf16.mxu0 %v5593_v9  ;;  %v5544_v8 = vcombine.low %v995_v58, %v999_v59  ;;  %v6245_v9 = vshrl.u32 %v1180_v63, 7  ;;  %v5665_v13 = vcombine.high %v1115_v6, %v1119_v7  ;;  %v5664_v20 = vcombine.low %v1115_v6, %v1119_v7  ;;  %v828_v59 = vld [vmem:[#allocation7 + $0x510] sm:$0xff] }
 0x1d7   :  { %4083 = vmatprep.subr.bf16.mxu1 %v5721_v10  ;;  %v5672_v10 = vcombine.low %v1123_v60, %v1127_v61  ;;  %v832_v60 = vld [vmem:[#allocation7 + $0x530] sm:$0xff] }
 0x1d8   :  { %v692_v6 = vld [vmem:[#allocation7 + $0xd0] sm:$0xff] }
 0x1d9   :  { %4043 = vmatpush2.bf16.msra.mxu0 %v5592_v16  ;;  %v852_v16 = vld [vmem:[#allocation7 + $0x5d0] sm:$0xff] }
 0x1da   :  { %4084 = vmatpush2.bf16.msra.mxu1 %v5720_v17  ;;  %4044 = vmatprep.subr.bf16.mxu0 %v5585_v18  ;;  %v856_v17 = vld [vmem:[#allocation7 + $0x5f0] sm:$0xff]  ;;  %v5536_v18 = vcombine.low %v987_v4, %v991_v5  ;;  %v5379_v5 = vcombine.high %v828_v59, %v832_v60 }
 0x1db   :  { %4085 = vmatprep.subr.bf16.mxu1 %v5713_v19  ;;  %v1182_v19 = vsub.s32 0, %v6245_v9  ;;  %v5403_v27 = vcombine.high %v852_v16, %v856_v17  ;;  %v5402_v41 = vcombine.low %v852_v16, %v856_v17  ;;  %v696_v7 = vld [vmem:[#allocation7 + $0xf0] sm:$0xff] }
 0x1dc   :  { %v684_v16 = vld [vmem:[#allocation7 + $0x90] sm:$0xff] }
 0x1dd   :  { %4045 = vmatpush2.bf16.msra.mxu0 %v5584_v30  ;;  %v1186_v30 = vsub.s32 1, %v6245_v9  ;;  %v1183_v37 = vrot.slane %v6248_v23, %v1182_v19  ;;  %v688_v17 = vld [vmem:[#allocation7 + $0xb0] sm:$0xff] }
 0x1de   :  { %4086 = vmatpush2.bf16.msra.mxu1 %v5712_v12  ;;  %4046 = vmatprep.subr.bf16.mxu0 %v5577_v34  ;;  %v716_v12 = vld [vmem:[#allocation7 + $0x190] sm:$0xff]  ;;  %v5234_v38 = vcombine.low %v684_v16, %v688_v17 }
 0x1df   :  { %4087 = vmatprep.subr.bf16.mxu1 %v5705_v36  ;;  %v720_v34 = vld [vmem:[#allocation7 + $0x1b0] sm:$0xff]  ;;  %v5274_v36 = vcombine.low %v724_v14, %v728_v15  ;;  %v5243_v14 = vcombine.high %v692_v6, %v696_v7 }
 0x1e0   :  { %v816_v19 = vld [vmem:[#allocation7 + $0x4b0] sm:$0xff] }
 0x1e1   :  { %4047 = vmatpush2.bf16.msra.mxu0 %v5576_v42  ;;  %v1187_v42 = vrot.slane %v6248_v23, %v1186_v30 }
 0x1e2   :  { %4088 = vmatpush2.bf16.msra.mxu1 %v5704_v43  ;;  %4048 = vmatprep.subr.bf16.mxu0 %v5569_v44  ;;  %v5267_v43 = vcombine.high %v716_v12, %v720_v34  ;;  %v708_v44 = vld [vmem:[#allocation7 + $0x150] sm:$0xff] }
 0x1e3   :  { %4089 = vmatprep.subr.bf16.mxu1 %v5697_v45  ;;  %v712_v45 = vld [vmem:[#allocation7 + $0x170] sm:$0xff] }
 0x1e4   :  { %v5259_v40 = vcombine.high %v708_v44, %v712_v45  ;;  %v5258_v63 = vcombine.low %v708_v44, %v712_v45  ;;  %v672_v44 = vld [vmem:[#allocation7 + $0x30] sm:$0xff] }
 0x1e5   :  { %4049 = vmatpush2.bf16.msra.mxu0 %v5568_v32  ;;  %v796_v45 = vld [vmem:[#allocation7 + $0x410] sm:$0xff] }
 0x1e6   :  { %4090 = vmatpush2.bf16.msra.mxu1 %v5696_v39  ;;  %4050 = vmatprep.subr.bf16.mxu0 %v5561_v51  ;;  %v5266_v51 = vcombine.low %v716_v12, %v720_v34  ;;  %v676_v12 = vld [vmem:[#allocation7 + $0x50] sm:$0xff] }
 0x1e7   :  { %4091 = vmatprep.subr.bf16.mxu1 %v5689_v33  ;;  %v680_v34 = vld [vmem:[#allocation7 + $0x70] sm:$0xff] }
 0x1e9   :  { %4051 = vmatpush2.bf16.msra.mxu0 %v5560_v55 }
 0x1ea   :  { %4092 = vmatpush2.bf16.msra.mxu1 %v5688_v24  ;;  %4052 = vmatprep.subr.bf16.mxu0 %v5553_v22  ;;  %v5387_v24 = vcombine.high %v836_v49, %v840_v31  ;;  %v700_v22 = vld [vmem:[#allocation7 + $0x110] sm:$0xff] }
 0x1eb   :  { %4093 = vmatprep.subr.bf16.mxu1 %v5681_v57  ;;  %v704_v57 = vld [vmem:[#allocation7 + $0x130] sm:$0xff] }
 0x1ed   :  { %4053 = vmatpush2.bf16.msra.mxu0 %v5552_v62 }
 0x1ee   :  { %4094 = vmatpush2.bf16.msra.mxu1 %v5680_v1  ;;  %4054 = vmatprep.subr.bf16.mxu0 %v5545_v2  ;;  %v5386_v2 = vcombine.low %v836_v49, %v840_v31 }
 0x1ef   :  { %4095 = vmatprep.subr.bf16.mxu1 %v5673_v3  ;;  %v5251_v3 = vcombine.high %v700_v22, %v704_v57 }
 0x1f1   :  { %4055 = vmatpush2.bf16.msra.mxu0 %v5544_v8  ;;  %v820_v8 = vld [vmem:[#allocation7 + $0x4d0] sm:$0xff] }
 0x1f2   :  { %4096 = vmatpush2.bf16.msra.mxu1 %v5672_v10  ;;  %4056 = vmatprep.subr.bf16.mxu0 %v5537_v11  ;;  %v824_v10 = vld [vmem:[#allocation7 + $0x4f0] sm:$0xff]  ;;  %v5250_v11 = vcombine.low %v700_v22, %v704_v57 }
 0x1f3   :  { %4097 = vmatprep.subr.bf16.mxu1 %v5665_v13  ;;  %v5378_v13 = vcombine.low %v828_v59, %v832_v60  ;;  %v5371_v15 = vcombine.high %v820_v8, %v824_v10  ;;  %v780_v22 = vld [vmem:[#allocation7 + $0x390] sm:$0xff] }
 0x1f4   :  { %v784_v57 = vld [vmem:[#allocation7 + $0x3b0] sm:$0xff] }
 0x1f5   :  { %4057 = vmatpush2.bf16.msra.mxu0 %v5536_v18  ;;  %v812_v18 = vld [vmem:[#allocation7 + $0x490] sm:$0xff] }
 0x1f6   :  { %4098 = vmatpush2.bf16.msra.mxu1 %v5664_v20  ;;  %4108 = vmatprep.subr.bf16.mxu0 %v5275_v21  ;;  %v5242_v20 = vcombine.low %v692_v6, %v696_v7  ;;  %v5370_v21 = vcombine.low %v820_v8, %v824_v10  ;;  %v5363_v30 = vcombine.high %v812_v18, %v816_v19  ;;  %v912_v59 = vld [vmem:[#allocation7 + $0x7b0] sm:$0xff] }
 0x1f7   :  { %4149 = vmatprep.subr.bf16.mxu1 %v5403_v27  ;;  %v5235_v27 = vcombine.high %v684_v16, %v688_v17  ;;  %v5362_v0 = vcombine.low %v812_v18, %v816_v19  ;;  %v5330_v6 = vcombine.low %v780_v22, %v784_v57 }
 0x1f8   :  { %4059 = vmatmul.mubr.bf16.vlgmr.msra.gmra.mxu0 %v6235_v56  ;;  %v3814_v47 = vpop.f32.mrf.mxu0  ;;  %v3855_v39 = vpop.f32.mrf.mxu1 }
 0x1f9   :  { %4100 = vmatmul.mubr.bf16.vlgmr.msra.gmra.mxu1 %v6233_v52  ;;  %v3815_v32 = vadd.f32 %v3814_v47, %v1183_v37  ;;  %4109 = vmatpush1.bf16.msra.mxu0 %v5274_v36  ;;  %v804_v36 = vld [vmem:[#allocation7 + $0x450] sm:$0xff] }
 0x1fa   :  { %4140 = vmatprep.mubr.bf16.mxu0 %v6205_v26  ;;  %4150 = vmatpush1.bf16.msra.mxu1 %v5402_v41  ;;  %v3816_v33 = vpop.f32.mrf.mxu0  ;;  %v3857_v55 = vpop.f32.mrf.mxu1  ;;  %v808_v37 = vld [vmem:[#allocation7 + $0x470] sm:$0xff]  ;;  %v5227_v41 = vcombine.high %v676_v12, %v680_v34 }
 0x1fb   :  { %v6256_v53 = vadd.f32 %v3855_v39, %v3815_v32  ;;  %4181 = vmatprep.mubr.bf16.mxu1 %v6209_v29  ;;  %v3817_v54 = vadd.f32 %v3816_v33, %v1187_v42  ;;  %4110 = vmatprep.subr.bf16.mxu0 %v5267_v43  ;;  %v5355_v42 = vcombine.high %v804_v36, %v808_v37  ;;  %v668_v43 = vld [vmem:[#allocation7 + $0x10] sm:$0xff] }
 0x1fc   :  { %4151 = vmatprep.subr.bf16.mxu1 %v5395_v48  ;;  %v3818_v58 = vpop.f32.mrf.mxu0  ;;  %v3859_v62 = vpop.f32.mrf.mxu1  ;;  %v800_v47 = vld [vmem:[#allocation7 + $0x430] sm:$0xff]  ;;  %v5226_v48 = vcombine.low %v676_v12, %v680_v34  ;;  %v5354_v49 = vcombine.low %v804_v36, %v808_v37  ;;  %v5219_v31 = vcombine.high %v668_v43, %v672_v44 }
 0x1fd   :  { %v6259_v61 = vadd.f32 %v3857_v55, %v3817_v54  ;;  %4111 = vmatpush1.bf16.msra.mxu0 %v5266_v51  ;;  %v5347_v32 = vcombine.high %v796_v45, %v800_v47  ;;  %v788_v39 = vld [vmem:[#allocation7 + $0x3d0] sm:$0xff]  ;;  %v5346_v54 = vcombine.low %v796_v45, %v800_v47 }
 0x1fe   :  { %4152 = vmatpush1.bf16.msra.mxu1 %v5394_v35  ;;  %v3819_v1 = vpop.f32.mrf.mxu0  ;;  %4112 = vmatprep.subr.bf16.mxu0 %v5259_v40  ;;  %v3860_v4 = vpop.f32.mrf.mxu1  ;;  %v792_v51 = vld [vmem:[#allocation7 + $0x3f0] sm:$0xff]  ;;  %v5218_v40 = vcombine.low %v668_v43, %v672_v44 }
 0x1ff   :  { %4153 = vmatprep.subr.bf16.mxu1 %v5387_v24  ;;  %v916_v33 = vld [vmem:[#allocation7 + $0x7d0] sm:$0xff]  ;;  %v5339_v55 = vcombine.high %v788_v39, %v792_v51  ;;  %v5338_v60 = vcombine.low %v788_v39, %v792_v51 }
 0x200   :  { %v920_v35 = vld [vmem:[#allocation7 + $0x7f0] sm:$0xff] }
 0x201   :  { %4113 = vmatpush1.bf16.msra.mxu0 %v5258_v63  ;;  %v5467_v24 = vcombine.high %v916_v33, %v920_v35  ;;  %v908_v58 = vld [vmem:[#allocation7 + $0x790] sm:$0xff]  ;;  %v5466_v62 = vcombine.low %v916_v33, %v920_v35  ;;  %v5331_v63 = vcombine.high %v780_v22, %v784_v57 }
 0x202   :  { %4154 = vmatpush1.bf16.msra.mxu1 %v5386_v2  ;;  %4114 = vmatprep.subr.bf16.mxu0 %v5251_v3  ;;  %v5459_v1 = vcombine.high %v908_v58, %v912_v59  ;;  %v772_v2 = vld [vmem:[#allocation7 + $0x350] sm:$0xff]  ;;  %v5458_v7 = vcombine.low %v908_v58, %v912_v59 }
 0x203   :  { %4155 = vmatprep.subr.bf16.mxu1 %v5379_v5  ;;  %v776_v3 = vld [vmem:[#allocation7 + $0x370] sm:$0xff] }
 0x204   :  { %v900_v4 = vld [vmem:[#allocation7 + $0x750] sm:$0xff]  ;;  %v5323_v8 = vcombine.high %v772_v2, %v776_v3  ;;  %v5322_v16 = vcombine.low %v772_v2, %v776_v3 }
 0x205   :  { %4115 = vmatpush1.bf16.msra.mxu0 %v5250_v11  ;;  %v904_v5 = vld [vmem:[#allocation7 + $0x770] sm:$0xff] }
 0x206   :  { %4156 = vmatpush1.bf16.msra.mxu1 %v5378_v13  ;;  %4116 = vmatprep.subr.bf16.mxu0 %v5243_v14  ;;  %v5451_v10 = vcombine.high %v900_v4, %v904_v5  ;;  %v764_v11 = vld [vmem:[#allocation7 + $0x310] sm:$0xff]  ;;  %v5450_v17 = vcombine.low %v900_v4, %v904_v5 }
 0x207   :  { %4157 = vmatprep.subr.bf16.mxu1 %v5371_v15  ;;  %v768_v13 = vld [vmem:[#allocation7 + $0x330] sm:$0xff] }
 0x208   :  { %v892_v14 = vld [vmem:[#allocation7 + $0x710] sm:$0xff]  ;;  %v5315_v18 = vcombine.high %v764_v11, %v768_v13  ;;  %v5314_v12 = vcombine.low %v764_v11, %v768_v13 }
 0x209   :  { %4117 = vmatpush1.bf16.msra.mxu0 %v5242_v20  ;;  %v896_v15 = vld [vmem:[#allocation7 + $0x730] sm:$0xff] }
 0x20a   :  { %4158 = vmatpush1.bf16.msra.mxu1 %v5370_v21  ;;  %4118 = vmatprep.subr.bf16.mxu0 %v5235_v27  ;;  %v5443_v19 = vcombine.high %v892_v14, %v896_v15  ;;  %v756_v20 = vld [vmem:[#allocation7 + $0x2d0] sm:$0xff]  ;;  %v5442_v34 = vcombine.low %v892_v14, %v896_v15 }
 0x20b   :  { %4159 = vmatprep.subr.bf16.mxu1 %v5363_v30  ;;  %v760_v21 = vld [vmem:[#allocation7 + $0x2f0] sm:$0xff] }
 0x20c   :  { %v884_v27 = vld [vmem:[#allocation7 + $0x6d0] sm:$0xff]  ;;  %v5307_v36 = vcombine.high %v756_v20, %v760_v21  ;;  %v5306_v43 = vcombine.low %v756_v20, %v760_v21 }
 0x20d   :  { %4119 = vmatpush1.bf16.msra.mxu0 %v5234_v38  ;;  %v888_v30 = vld [vmem:[#allocation7 + $0x6f0] sm:$0xff] }
 0x20e   :  { %4160 = vmatpush1.bf16.msra.mxu1 %v5362_v0  ;;  %4120 = vmatprep.subr.bf16.mxu0 %v5227_v41  ;;  %v5435_v37 = vcombine.high %v884_v27, %v888_v30  ;;  %v748_v38 = vld [vmem:[#allocation7 + $0x290] sm:$0xff]  ;;  %v5434_v44 = vcombine.low %v884_v27, %v888_v30 }
 0x20f   :  { %4161 = vmatprep.subr.bf16.mxu1 %v5355_v42  ;;  %v752_v0 = vld [vmem:[#allocation7 + $0x2b0] sm:$0xff] }
 0x210   :  { %v876_v41 = vld [vmem:[#allocation7 + $0x690] sm:$0xff]  ;;  %v5299_v45 = vcombine.high %v748_v38, %v752_v0  ;;  %v5298_v39 = vcombine.low %v748_v38, %v752_v0 }
 0x211   :  { %4121 = vmatpush1.bf16.msra.mxu0 %v5226_v48  ;;  %v880_v42 = vld [vmem:[#allocation7 + $0x6b0] sm:$0xff] }
 0x212   :  { %4162 = vmatpush1.bf16.msra.mxu1 %v5354_v49  ;;  %4122 = vmatprep.subr.bf16.mxu0 %v5219_v31  ;;  %v5427_v47 = vcombine.high %v876_v41, %v880_v42  ;;  %v740_v48 = vld [vmem:[#allocation7 + $0x250] sm:$0xff]  ;;  %v5426_v51 = vcombine.low %v876_v41, %v880_v42 }
 0x213   :  { %4163 = vmatprep.subr.bf16.mxu1 %v5347_v32  ;;  %v744_v49 = vld [vmem:[#allocation7 + $0x270] sm:$0xff] }
 0x214   :  { %v868_v31 = vld [vmem:[#allocation7 + $0x650] sm:$0xff]  ;;  %v5291_v33 = vcombine.high %v740_v48, %v744_v49  ;;  %v5290_v22 = vcombine.low %v740_v48, %v744_v49 }
 0x215   :  { %4123 = vmatpush1.bf16.msra.mxu0 %v5218_v40  ;;  %v872_v32 = vld [vmem:[#allocation7 + $0x670] sm:$0xff] }
 0x216   :  { %4164 = vmatpush1.bf16.msra.mxu1 %v5346_v54  ;;  %4124 = vmatprep.subr.bf16.mxu0 %v5339_v55  ;;  %v5419_v35 = vcombine.high %v868_v31, %v872_v32  ;;  %v732_v40 = vld [vmem:[#allocation7 + $0x210] sm:$0xff]  ;;  %v5418_v57 = vcombine.low %v868_v31, %v872_v32 }
 0x217   :  { %4165 = vmatprep.subr.bf16.mxu1 %v5467_v24  ;;  %v736_v54 = vld [vmem:[#allocation7 + $0x230] sm:$0xff] }
 0x218   :  { %v860_v55 = vld [vmem:[#allocation7 + $0x610] sm:$0xff]  ;;  %v5283_v58 = vcombine.high %v732_v40, %v736_v54  ;;  %v5282_v2 = vcombine.low %v732_v40, %v736_v54 }
 0x219   :  { %4125 = vmatpush2.bf16.msra.mxu0 %v5338_v60  ;;  %v864_v24 = vld [vmem:[#allocation7 + $0x630] sm:$0xff] }
 0x21a   :  { %4166 = vmatpush2.bf16.msra.mxu1 %v5466_v62  ;;  %4126 = vmatprep.subr.bf16.mxu0 %v5331_v63  ;;  %v5411_v59 = vcombine.high %v860_v55, %v864_v24  ;;  %v980_v60 = vld [vmem:[#allocation7 + $0x9d0] sm:$0xff]  ;;  %v5410_v3 = vcombine.low %v860_v55, %v864_v24 }
 0x21b   :  { %4167 = vmatprep.subr.bf16.mxu1 %v5459_v1  ;;  %v984_v62 = vld [vmem:[#allocation7 + $0x9f0] sm:$0xff] }
 0x21c   :  { %v1108_v63 = vld [vmem:[#allocation7 + $0xdd0] sm:$0xff]  ;;  %v5531_v4 = vcombine.high %v980_v60, %v984_v62 }
 0x21d   :  { %4127 = vmatpush2.bf16.msra.mxu0 %v5330_v6  ;;  %v1112_v1 = vld [vmem:[#allocation7 + $0xdf0] sm:$0xff] }
 0x21e   :  { %4168 = vmatpush2.bf16.msra.mxu1 %v5458_v7  ;;  %4128 = vmatprep.subr.bf16.mxu0 %v5323_v8  ;;  %v5659_v5 = vcombine.high %v1108_v63, %v1112_v1  ;;  %v972_v6 = vld [vmem:[#allocation7 + $0x990] sm:$0xff]  ;;  %v5530_v8 = vcombine.low %v980_v60, %v984_v62  ;;  %v5658_v13 = vcombine.low %v1108_v63, %v1112_v1 }
 0x21f   :  { %4169 = vmatprep.subr.bf16.mxu1 %v5451_v10  ;;  %v976_v7 = vld [vmem:[#allocation7 + $0x9b0] sm:$0xff] }
 0x220   :  { %v1100_v10 = vld [vmem:[#allocation7 + $0xd90] sm:$0xff]  ;;  %v5523_v14 = vcombine.high %v972_v6, %v976_v7  ;;  %v5522_v30 = vcombine.low %v972_v6, %v976_v7 }
 0x221   :  { %4129 = vmatpush2.bf16.msra.mxu0 %v5322_v16  ;;  %v1104_v11 = vld [vmem:[#allocation7 + $0xdb0] sm:$0xff] }
 0x222   :  { %4170 = vmatpush2.bf16.msra.mxu1 %v5450_v17  ;;  %4130 = vmatprep.subr.bf16.mxu0 %v5315_v18  ;;  %v964_v15 = vld [vmem:[#allocation7 + $0x950] sm:$0xff]  ;;  %v5651_v18 = vcombine.high %v1100_v10, %v1104_v11 }
 0x223   :  { %4171 = vmatprep.subr.bf16.mxu1 %v5443_v19  ;;  %v968_v16 = vld [vmem:[#allocation7 + $0x970] sm:$0xff] }
 0x224   :  { %v1092_v19 = vld [vmem:[#allocation7 + $0xd50] sm:$0xff]  ;;  %v5514_v49 = vcombine.low %v964_v15, %v968_v16 }
 0x225   :  { %4131 = vmatpush2.bf16.msra.mxu0 %v5314_v12  ;;  %v1096_v20 = vld [vmem:[#allocation7 + $0xd70] sm:$0xff] }
 0x226   :  { %4172 = vmatpush2.bf16.msra.mxu1 %v5442_v34  ;;  %4132 = vmatprep.subr.bf16.mxu0 %v5307_v36  ;;  %v5650_v34 = vcombine.low %v1100_v10, %v1104_v11  ;;  %v5515_v36 = vcombine.high %v964_v15, %v968_v16  ;;  %v956_v41 = vld [vmem:[#allocation7 + $0x910] sm:$0xff]  ;;  %v5642_v32 = vcombine.low %v1092_v19, %v1096_v20 }
 0x227   :  { %4173 = vmatprep.subr.bf16.mxu1 %v5435_v37  ;;  %v960_v42 = vld [vmem:[#allocation7 + $0x930] sm:$0xff] }
 0x228   :  { %v1076_v40 = vld [vmem:[#allocation7 + $0xcd0] sm:$0xff]  ;;  %v5506_v55 = vcombine.low %v956_v41, %v960_v42 }
 0x229   :  { %4133 = vmatpush2.bf16.msra.mxu0 %v5306_v43  ;;  %v1080_v54 = vld [vmem:[#allocation7 + $0xcf0] sm:$0xff] }
 0x22a   :  { %4174 = vmatpush2.bf16.msra.mxu1 %v5434_v44  ;;  %4134 = vmatprep.subr.bf16.mxu0 %v5299_v45  ;;  %v1084_v44 = vld [vmem:[#allocation7 + $0xd10] sm:$0xff]  ;;  %v5626_v1 = vcombine.low %v1076_v40, %v1080_v54 }
 0x22b   :  { %4175 = vmatprep.subr.bf16.mxu1 %v5427_v47  ;;  %v1088_v45 = vld [vmem:[#allocation7 + $0xd30] sm:$0xff] }
 0x22c   :  { %v5634_v24 = vcombine.low %v1084_v44, %v1088_v45  ;;  %v1068_v60 = vld [vmem:[#allocation7 + $0xc90] sm:$0xff] }
 0x22d   :  { %4135 = vmatpush2.bf16.msra.mxu0 %v5298_v39  ;;  %v5507_v39 = vcombine.high %v956_v41, %v960_v42  ;;  %v1072_v62 = vld [vmem:[#allocation7 + $0xcb0] sm:$0xff] }
 0x22e   :  { %4176 = vmatpush2.bf16.msra.mxu1 %v5426_v51  ;;  %4136 = vmatprep.subr.bf16.mxu0 %v5291_v33  ;;  %v5635_v51 = vcombine.high %v1084_v44, %v1088_v45  ;;  %v948_v33 = vld [vmem:[#allocation7 + $0x8d0] sm:$0xff]  ;;  %v5618_v10 = vcombine.low %v1068_v60, %v1072_v62 }
 0x22f   :  { %4177 = vmatprep.subr.bf16.mxu1 %v5419_v35  ;;  %v952_v35 = vld [vmem:[#allocation7 + $0x8f0] sm:$0xff] }
 0x230   :  { %v5498_v63 = vcombine.low %v948_v33, %v952_v35  ;;  %v1060_v6 = vld [vmem:[#allocation7 + $0xc50] sm:$0xff] }
 0x231   :  { %4137 = vmatpush2.bf16.msra.mxu0 %v5290_v22  ;;  %v5499_v22 = vcombine.high %v948_v33, %v952_v35  ;;  %v1064_v7 = vld [vmem:[#allocation7 + $0xc70] sm:$0xff] }
 0x232   :  { %4178 = vmatpush2.bf16.msra.mxu1 %v5418_v57  ;;  %4138 = vmatprep.subr.bf16.mxu0 %v5283_v58  ;;  %v5627_v57 = vcombine.high %v1076_v40, %v1080_v54  ;;  %v940_v58 = vld [vmem:[#allocation7 + $0x890] sm:$0xff] }
 0x233   :  { %4179 = vmatprep.subr.bf16.mxu1 %v5411_v59  ;;  %v944_v59 = vld [vmem:[#allocation7 + $0x8b0] sm:$0xff] }
 0x234   :  { %v928_v15 = vld [vmem:[#allocation7 + $0x830] sm:$0xff] }
 0x235   :  { %4139 = vmatpush2.bf16.msra.mxu0 %v5282_v2  ;;  %v5491_v2 = vcombine.high %v940_v58, %v944_v59  ;;  %v1052_v16 = vld [vmem:[#allocation7 + $0xc10] sm:$0xff] }
 0x236   :  { %4180 = vmatpush2.bf16.msra.mxu1 %v5410_v3  ;;  %4190 = vmatprep.subr.bf16.mxu0 %v5531_v4  ;;  %v5619_v3 = vcombine.high %v1068_v60, %v1072_v62  ;;  %v932_v4 = vld [vmem:[#allocation7 + $0x850] sm:$0xff] }
 0x237   :  { %4231 = vmatprep.subr.bf16.mxu1 %v5659_v5  ;;  %v936_v5 = vld [vmem:[#allocation7 + $0x870] sm:$0xff] }
 0x238   :  { %v3896_v17 = vpop.f32.mrf.mxu0  ;;  %4141 = vmatmul.mubr.bf16.vlgmr.msra.gmra.mxu0 %v6207_v28  ;;  %v3937_v27 = vpop.f32.mrf.mxu1  ;;  %v5483_v11 = vcombine.high %v932_v4, %v936_v5  ;;  %v1036_v41 = vld [vmem:[#allocation7 + $0xb90] sm:$0xff] }
 0x239   :  { %v3897_v21 = vadd.f32 %v3896_v17, %v6256_v53  ;;  %4182 = vmatmul.mubr.bf16.vlgmr.msra.gmra.mxu1 %v6203_v25  ;;  %4191 = vmatpush1.bf16.msra.mxu0 %v5530_v8  ;;  %v5643_v53 = vcombine.high %v1092_v19, %v1096_v20  ;;  %v5490_v8 = vcombine.low %v940_v58, %v944_v59  ;;  %v1056_v17 = vld [vmem:[#allocation7 + $0xc30] sm:$0xff] }
 0x23a   :  { %4222 = vmatprep.mubr.bf16.mxu0 %v6225_v46  ;;  %4232 = vmatpush1.bf16.msra.mxu1 %v5658_v13  ;;  %v3898_v12 = vpop.f32.mrf.mxu0  ;;  %v3939_v0 = vpop.f32.mrf.mxu1  ;;  %v5611_v13 = vcombine.high %v1060_v6, %v1064_v7  ;;  %v5610_v19 = vcombine.low %v1060_v6, %v1064_v7  ;;  %v1040_v42 = vld [vmem:[#allocation7 + $0xbb0] sm:$0xff] }
 0x23b   :  { %v6265_v37 = vadd.f32 %v3937_v27, %v3897_v21  ;;  %4263 = vmatprep.mubr.bf16.mxu1 %v6227_v50  ;;  %v3899_v38 = vadd.f32 %v3898_v12, %v6259_v61  ;;  %4192 = vmatprep.subr.bf16.mxu0 %v5523_v14  ;;  %v924_v14 = vld [vmem:[#allocation7 + $0x810] sm:$0xff]  ;;  %v5603_v21 = vcombine.high %v1052_v16, %v1056_v17 }
 0x23c   :  { %v3900_v43 = vpop.f32.mrf.mxu0  ;;  %4233 = vmatprep.subr.bf16.mxu1 %v5651_v18  ;;  %v3941_v48 = vpop.f32.mrf.mxu1  ;;  %v5482_v18 = vcombine.low %v932_v4, %v936_v5  ;;  %v5475_v20 = vcombine.high %v924_v14, %v928_v15  ;;  %v1044_v27 = vld [vmem:[#allocation7 + $0xbd0] sm:$0xff]  ;;  %v5586_v33 = vcombine.low %v1036_v41, %v1040_v42 }
 0x23d   :  { %v6269_v47 = vadd.f32 %v3939_v0, %v3899_v38  ;;  %4193 = vmatpush1.bf16.msra.mxu0 %v5522_v30  ;;  %v1048_v30 = vld [vmem:[#allocation7 + $0xbf0] sm:$0xff]  ;;  %v5602_v38 = vcombine.low %v1052_v16, %v1056_v17 }
 0x23e   :  { %4234 = vmatpush1.bf16.msra.mxu1 %v5650_v34  ;;  %v3901_v31 = vpop.f32.mrf.mxu0  ;;  %4194 = vmatprep.subr.bf16.mxu0 %v5515_v36  ;;  %v3942_v61 = vpop.f32.mrf.mxu1  ;;  %v1172_v12 = vld [vmem:[#allocation7 + $0xfd0] sm:$0xff]  ;;  %v5474_v36 = vcombine.low %v924_v14, %v928_v15  ;;  %v5595_v0 = vcombine.high %v1044_v27, %v1048_v30  ;;  %v5594_v45 = vcombine.low %v1044_v27, %v1048_v30 }
 0x23f   :  { %4235 = vmatprep.subr.bf16.mxu1 %v5643_v53  ;;  %v1176_v34 = vld [vmem:[#allocation7 + $0xff0] sm:$0xff] }
 0x240   :  { %v5723_v53 = vcombine.high %v1172_v12, %v1176_v34  ;;  %v1164_v43 = vld [vmem:[#allocation7 + $0xf90] sm:$0xff]  ;;  %v5722_v48 = vcombine.low %v1172_v12, %v1176_v34 }
 0x241   :  { %4195 = vmatpush1.bf16.msra.mxu0 %v5514_v49  ;;  %v1168_v44 = vld [vmem:[#allocation7 + $0xfb0] sm:$0xff]  ;;  %v5587_v49 = vcombine.high %v1036_v41, %v1040_v42 }
 0x242   :  { %4236 = vmatpush1.bf16.msra.mxu1 %v5642_v32  ;;  %4196 = vmatprep.subr.bf16.mxu0 %v5507_v39  ;;  %v5715_v31 = vcombine.high %v1164_v43, %v1168_v44  ;;  %v1028_v32 = vld [vmem:[#allocation7 + $0xb50] sm:$0xff]  ;;  %v5714_v35 = vcombine.low %v1164_v43, %v1168_v44 }
 0x243   :  { %4237 = vmatprep.subr.bf16.mxu1 %v5635_v51  ;;  %v1032_v39 = vld [vmem:[#allocation7 + $0xb70] sm:$0xff] }
 0x244   :  { %v1156_v61 = vld [vmem:[#allocation7 + $0xf50] sm:$0xff]  ;;  %v5579_v40 = vcombine.high %v1028_v32, %v1032_v39  ;;  %v5578_v58 = vcombine.low %v1028_v32, %v1032_v39  ;;  %v1190_v39 = vsub.s32 2, %v6245_v9 }
 0x245   :  { %4197 = vmatpush1.bf16.msra.mxu0 %v5506_v55  ;;  %v1160_v51 = vld [vmem:[#allocation7 + $0xf70] sm:$0xff] }
 0x246   :  { %4238 = vmatpush1.bf16.msra.mxu1 %v5634_v24  ;;  %4198 = vmatprep.subr.bf16.mxu0 %v5499_v22  ;;  %v5707_v54 = vcombine.high %v1156_v61, %v1160_v51  ;;  %v1020_v55 = vld [vmem:[#allocation7 + $0xb10] sm:$0xff]  ;;  %v5706_v59 = vcombine.low %v1156_v61, %v1160_v51 }
 0x247   :  { %4239 = vmatprep.subr.bf16.mxu1 %v5627_v57  ;;  %v1024_v24 = vld [vmem:[#allocation7 + $0xb30] sm:$0xff] }
 0x248   :  { %v1148_v22 = vld [vmem:[#allocation7 + $0xf10] sm:$0xff]  ;;  %v5571_v60 = vcombine.high %v1020_v55, %v1024_v24  ;;  %v5570_v4 = vcombine.low %v1020_v55, %v1024_v24  ;;  %v1191_v55 = vrot.slane %v6248_v23, %v1190_v39 }
 0x249   :  { %4199 = vmatpush1.bf16.msra.mxu0 %v5498_v63  ;;  %v1152_v57 = vld [vmem:[#allocation7 + $0xf30] sm:$0xff] }
 0x24a   :  { %4240 = vmatpush1.bf16.msra.mxu1 %v5626_v1  ;;  %4200 = vmatprep.subr.bf16.mxu0 %v5491_v2  ;;  %v5699_v62 = vcombine.high %v1148_v22, %v1152_v57  ;;  %v1012_v63 = vld [vmem:[#allocation7 + $0xad0] sm:$0xff]  ;;  %v5698_v5 = vcombine.low %v1148_v22, %v1152_v57  ;;  %v845_v22 = vld [vmem:[#allocation7 + $0x598] sm:$0xff] }
 0x24b   :  { %4241 = vmatprep.subr.bf16.mxu1 %v5619_v3  ;;  %v1016_v1 = vld [vmem:[#allocation7 + $0xaf0] sm:$0xff]  ;;  %v849_v57 = vld [vmem:[#allocation7 + $0x5b8] sm:$0xff] }
 0x24c   :  { %v1140_v2 = vld [vmem:[#allocation7 + $0xed0] sm:$0xff]  ;;  %v5563_v6 = vcombine.high %v1012_v63, %v1016_v1  ;;  %v5562_v14 = vcombine.low %v1012_v63, %v1016_v1  ;;  %v713_v63 = vld [vmem:[#allocation7 + $0x178] sm:$0xff] }
 0x24d   :  { %4201 = vmatpush1.bf16.msra.mxu0 %v5490_v8  ;;  %v1144_v3 = vld [vmem:[#allocation7 + $0xef0] sm:$0xff] }
 0x24e   :  { %4242 = vmatpush1.bf16.msra.mxu1 %v5618_v10  ;;  %4202 = vmatprep.subr.bf16.mxu0 %v5483_v11  ;;  %v5691_v7 = vcombine.high %v1140_v2, %v1144_v3  ;;  %v1004_v8 = vld [vmem:[#allocation7 + $0xa90] sm:$0xff]  ;;  %v5690_v15 = vcombine.low %v1140_v2, %v1144_v3  ;;  %v5397_v2 = vcombine.high %v845_v22, %v849_v57  ;;  %v837_v3 = vld [vmem:[#allocation7 + $0x558] sm:$0xff] }
 0x24f   :  { %4243 = vmatprep.subr.bf16.mxu1 %v5611_v13  ;;  %v1008_v10 = vld [vmem:[#allocation7 + $0xab0] sm:$0xff] }
 0x250   :  { %v1132_v11 = vld [vmem:[#allocation7 + $0xe90] sm:$0xff]  ;;  %v5555_v16 = vcombine.high %v1004_v8, %v1008_v10  ;;  %v5554_v27 = vcombine.low %v1004_v8, %v1008_v10 }
 0x251   :  { %4203 = vmatpush1.bf16.msra.mxu0 %v5482_v18  ;;  %v1136_v13 = vld [vmem:[#allocation7 + $0xeb0] sm:$0xff] }
 0x252   :  { %4244 = vmatpush1.bf16.msra.mxu1 %v5610_v19  ;;  %4204 = vmatprep.subr.bf16.mxu0 %v5475_v20  ;;  %v5683_v17 = vcombine.high %v1132_v11, %v1136_v13  ;;  %v996_v18 = vld [vmem:[#allocation7 + $0xa50] sm:$0xff]  ;;  %v5682_v30 = vcombine.low %v1132_v11, %v1136_v13 }
 0x253   :  { %4245 = vmatprep.subr.bf16.mxu1 %v5603_v21  ;;  %v1000_v19 = vld [vmem:[#allocation7 + $0xa70] sm:$0xff] }
 0x254   :  { %v1124_v20 = vld [vmem:[#allocation7 + $0xe50] sm:$0xff]  ;;  %v5547_v12 = vcombine.high %v996_v18, %v1000_v19  ;;  %v5546_v41 = vcombine.low %v996_v18, %v1000_v19  ;;  %v829_v19 = vld [vmem:[#allocation7 + $0x518] sm:$0xff] }
 0x255   :  { %4205 = vmatpush1.bf16.msra.mxu0 %v5474_v36  ;;  %v1128_v21 = vld [vmem:[#allocation7 + $0xe70] sm:$0xff] }
 0x256   :  { %4246 = vmatpush1.bf16.msra.mxu1 %v5602_v38  ;;  %4206 = vmatprep.subr.bf16.mxu0 %v5595_v0  ;;  %v5675_v34 = vcombine.high %v1124_v20, %v1128_v21  ;;  %v988_v36 = vld [vmem:[#allocation7 + $0xa10] sm:$0xff]  ;;  %v5674_v42 = vcombine.low %v1124_v20, %v1128_v21  ;;  %v833_v20 = vld [vmem:[#allocation7 + $0x538] sm:$0xff] }
 0x257   :  { %4247 = vmatprep.subr.bf16.mxu1 %v5723_v53  ;;  %v992_v38 = vld [vmem:[#allocation7 + $0xa30] sm:$0xff] }
 0x258   :  { %v1116_v0 = vld [vmem:[#allocation7 + $0xe10] sm:$0xff]  ;;  %v5539_v43 = vcombine.high %v988_v36, %v992_v38  ;;  %v5538_v32 = vcombine.low %v988_v36, %v992_v38  ;;  %v5381_v36 = vcombine.high %v829_v19, %v833_v20  ;;  %v693_v38 = vld [vmem:[#allocation7 + $0xd8] sm:$0xff] }
 0x259   :  { %4207 = vmatpush2.bf16.msra.mxu0 %v5594_v45  ;;  %v1120_v53 = vld [vmem:[#allocation7 + $0xe30] sm:$0xff]  ;;  %v725_v45 = vld [vmem:[#allocation7 + $0x1d8] sm:$0xff] }
 0x25a   :  { %4248 = vmatpush2.bf16.msra.mxu1 %v5722_v48  ;;  %4208 = vmatprep.subr.bf16.mxu0 %v5587_v49  ;;  %v5667_v44 = vcombine.high %v1116_v0, %v1120_v53  ;;  %v729_v48 = vld [vmem:[#allocation7 + $0x1f8] sm:$0xff]  ;;  %v5666_v61 = vcombine.low %v1116_v0, %v1120_v53 }
 0x25b   :  { %4249 = vmatprep.subr.bf16.mxu1 %v5715_v31  ;;  %v853_v49 = vld [vmem:[#allocation7 + $0x5d8] sm:$0xff]  ;;  %v5277_v51 = vcombine.high %v725_v45, %v729_v48  ;;  %v5276_v24 = vcombine.low %v725_v45, %v729_v48 }
 0x25c   :  { %v857_v31 = vld [vmem:[#allocation7 + $0x5f8] sm:$0xff] }
 0x25d   :  { %4209 = vmatpush2.bf16.msra.mxu0 %v5586_v33  ;;  %v5405_v33 = vcombine.high %v853_v49, %v857_v31  ;;  %v697_v0 = vld [vmem:[#allocation7 + $0xf8] sm:$0xff] }
 0x25e   :  { %4250 = vmatpush2.bf16.msra.mxu1 %v5714_v35  ;;  %4210 = vmatprep.subr.bf16.mxu0 %v5579_v40  ;;  %v1194_v35 = vsub.s32 3, %v6245_v9  ;;  %v717_v40 = vld [vmem:[#allocation7 + $0x198] sm:$0xff]  ;;  %v5244_v39 = vcombine.low %v693_v38, %v697_v0 }
 0x25f   :  { %4251 = vmatprep.subr.bf16.mxu1 %v5707_v54  ;;  %v721_v54 = vld [vmem:[#allocation7 + $0x1b8] sm:$0xff] }
 0x260   :  { %v821_v53 = vld [vmem:[#allocation7 + $0x4d8] sm:$0xff] }
 0x261   :  { %4211 = vmatpush2.bf16.msra.mxu0 %v5578_v58  ;;  %v5404_v58 = vcombine.low %v853_v49, %v857_v31  ;;  %v685_v48 = vld [vmem:[#allocation7 + $0x98] sm:$0xff] }
 0x262   :  { %4252 = vmatpush2.bf16.msra.mxu1 %v5706_v59  ;;  %4212 = vmatprep.subr.bf16.mxu0 %v5571_v60  ;;  %v1195_v59 = vrot.slane %v6248_v23, %v1194_v35  ;;  %v5269_v60 = vcombine.high %v717_v40, %v721_v54  ;;  %v5396_v23 = vcombine.low %v845_v22, %v849_v57  ;;  %v689_v49 = vld [vmem:[#allocation7 + $0xb8] sm:$0xff] }
 0x263   :  { %4253 = vmatprep.subr.bf16.mxu1 %v5699_v62  ;;  %v709_v62 = vld [vmem:[#allocation7 + $0x158] sm:$0xff] }
 0x264   :  { %v5261_v10 = vcombine.high %v709_v62, %v713_v63  ;;  %v813_v31 = vld [vmem:[#allocation7 + $0x498] sm:$0xff] }
 0x265   :  { %4213 = vmatpush2.bf16.msra.mxu0 %v5570_v4  ;;  %v841_v4 = vld [vmem:[#allocation7 + $0x578] sm:$0xff] }
 0x266   :  { %4254 = vmatpush2.bf16.msra.mxu1 %v5698_v5  ;;  %4214 = vmatprep.subr.bf16.mxu0 %v5563_v6  ;;  %v677_v35 = vld [vmem:[#allocation7 + $0x58] sm:$0xff] }
 0x267   :  { %4255 = vmatprep.subr.bf16.mxu1 %v5691_v7  ;;  %v5268_v7 = vcombine.low %v717_v40, %v721_v54  ;;  %v681_v40 = vld [vmem:[#allocation7 + $0x78] sm:$0xff] }
 0x268   :  { %v805_v54 = vld [vmem:[#allocation7 + $0x458] sm:$0xff]  ;;  %v5229_v57 = vcombine.high %v677_v35, %v681_v40 }
 0x269   :  { %4215 = vmatpush2.bf16.msra.mxu0 %v5562_v14 }
 0x26a   :  { %4256 = vmatpush2.bf16.msra.mxu1 %v5690_v15  ;;  %4216 = vmatprep.subr.bf16.mxu0 %v5555_v16  ;;  %v5389_v15 = vcombine.high %v837_v3, %v841_v4  ;;  %v701_v16 = vld [vmem:[#allocation7 + $0x118] sm:$0xff] }
 0x26b   :  { %4257 = vmatprep.subr.bf16.mxu1 %v5683_v17  ;;  %v705_v17 = vld [vmem:[#allocation7 + $0x138] sm:$0xff] }
 0x26d   :  { %4217 = vmatpush2.bf16.msra.mxu0 %v5554_v27  ;;  %v5260_v27 = vcombine.low %v709_v62, %v713_v63  ;;  %v797_v62 = vld [vmem:[#allocation7 + $0x418] sm:$0xff] }
 0x26e   :  { %4258 = vmatpush2.bf16.msra.mxu1 %v5682_v30  ;;  %4218 = vmatprep.subr.bf16.mxu0 %v5547_v12  ;;  %v5388_v12 = vcombine.low %v837_v3, %v841_v4  ;;  %v801_v63 = vld [vmem:[#allocation7 + $0x438] sm:$0xff] }
 0x26f   :  { %4259 = vmatprep.subr.bf16.mxu1 %v5675_v34  ;;  %v5349_v4 = vcombine.high %v797_v62, %v801_v63 }
 0x271   :  { %4219 = vmatpush2.bf16.msra.mxu0 %v5546_v41  ;;  %v825_v41 = vld [vmem:[#allocation7 + $0x4f8] sm:$0xff] }
 0x272   :  { %4260 = vmatpush2.bf16.msra.mxu1 %v5674_v42  ;;  %4220 = vmatprep.subr.bf16.mxu0 %v5539_v43  ;;  %v5252_v42 = vcombine.low %v701_v16, %v705_v17  ;;  %v5380_v43 = vcombine.low %v829_v19, %v833_v20  ;;  %v5373_v45 = vcombine.high %v821_v53, %v825_v41 }
 0x273   :  { %4261 = vmatprep.subr.bf16.mxu1 %v5667_v44  ;;  %v5245_v44 = vcombine.high %v693_v38, %v697_v0 }
 0x275   :  { %4221 = vmatpush2.bf16.msra.mxu0 %v5538_v32  ;;  %v817_v32 = vld [vmem:[#allocation7 + $0x4b8] sm:$0xff] }
 0x276   :  { %4262 = vmatpush2.bf16.msra.mxu1 %v5666_v61  ;;  %4272 = vmatprep.subr.bf16.mxu0 %v5277_v51  ;;  %v5372_v61 = vcombine.low %v821_v53, %v825_v41  ;;  %v5237_v51 = vcombine.high %v685_v48, %v689_v49  ;;  %v5364_v22 = vcombine.low %v813_v31, %v817_v32  ;;  %v765_v41 = vld [vmem:[#allocation7 + $0x318] sm:$0xff] }
 0x277   :  { %4313 = vmatprep.subr.bf16.mxu1 %v5405_v33  ;;  %v5365_v33 = vcombine.high %v813_v31, %v817_v32  ;;  %v757_v32 = vld [vmem:[#allocation7 + $0x2d8] sm:$0xff] }
 0x278   :  { %v3978_v1 = vpop.f32.mrf.mxu0  ;;  %4223 = vmatmul.mubr.bf16.vlgmr.msra.gmra.mxu0 %v6235_v56 }
 0x279   :  { %v3979_v5 = vadd.f32 %v3978_v1, %v1191_v55  ;;  %v4019_v6 = vpop.f32.mrf.mxu1  ;;  %4264 = vmatmul.mubr.bf16.vlgmr.msra.gmra.mxu1 %v6233_v52  ;;  %4273 = vmatpush1.bf16.msra.mxu0 %v5276_v24  ;;  %v809_v55 = vld [vmem:[#allocation7 + $0x478] sm:$0xff]  ;;  %v5236_v24 = vcombine.low %v685_v48, %v689_v49  ;;  %v5228_v1 = vcombine.low %v677_v35, %v681_v40 }
 0x27a   :  { %4304 = vmatprep.mubr.bf16.mxu0 %v6205_v26  ;;  %4314 = vmatpush1.bf16.msra.mxu1 %v5404_v58  ;;  %v3980_v8 = vpop.f32.mrf.mxu0  ;;  %v5357_v58 = vcombine.high %v805_v54, %v809_v55 }
 0x27b   :  { %v6278_v11 = vadd.f32 %v4019_v6, %v3979_v5  ;;  %4345 = vmatprep.mubr.bf16.mxu1 %v6209_v29  ;;  %v3981_v13 = vadd.f32 %v3980_v8, %v1195_v59  ;;  %v4021_v14 = vpop.f32.mrf.mxu1  ;;  %4274 = vmatprep.subr.bf16.mxu0 %v5269_v60  ;;  %v5253_v29 = vcombine.high %v701_v16, %v705_v17  ;;  %v669_v59 = vld [vmem:[#allocation7 + $0x18] sm:$0xff] }
 0x27c   :  { %v3982_v18 = vpop.f32.mrf.mxu0  ;;  %4315 = vmatprep.subr.bf16.mxu1 %v5397_v2  ;;  %v673_v60 = vld [vmem:[#allocation7 + $0x38] sm:$0xff]  ;;  %v5356_v2 = vcombine.low %v805_v54, %v809_v55 }
 0x27d   :  { %v6281_v21 = vadd.f32 %v4021_v14, %v3981_v13  ;;  %v4023_v26 = vpop.f32.mrf.mxu1  ;;  %4275 = vmatpush1.bf16.msra.mxu0 %v5268_v7  ;;  %v5221_v3 = vcombine.high %v669_v59, %v673_v60  ;;  %v789_v5 = vld [vmem:[#allocation7 + $0x3d8] sm:$0xff] }
 0x27e   :  { %4316 = vmatpush1.bf16.msra.mxu1 %v5396_v23  ;;  %v3983_v30 = vpop.f32.mrf.mxu0  ;;  %4276 = vmatprep.subr.bf16.mxu0 %v5261_v10  ;;  %v793_v6 = vld [vmem:[#allocation7 + $0x3f8] sm:$0xff]  ;;  %v5220_v23 = vcombine.low %v669_v59, %v673_v60  ;;  %v5348_v10 = vcombine.low %v797_v62, %v801_v63 }
 0x27f   :  { %v4024_v34 = vpop.f32.mrf.mxu1  ;;  %4317 = vmatprep.subr.bf16.mxu1 %v5389_v15  ;;  %v917_v7 = vld [vmem:[#allocation7 + $0x7d8] sm:$0xff]  ;;  %v5341_v13 = vcombine.high %v789_v5, %v793_v6  ;;  %v5340_v19 = vcombine.low %v789_v5, %v793_v6 }
 0x280   :  { %v921_v8 = vld [vmem:[#allocation7 + $0x7f8] sm:$0xff] }
 0x281   :  { %4277 = vmatpush1.bf16.msra.mxu0 %v5260_v27  ;;  %v5469_v14 = vcombine.high %v917_v7, %v921_v8  ;;  %v781_v15 = vld [vmem:[#allocation7 + $0x398] sm:$0xff]  ;;  %v5468_v20 = vcombine.low %v917_v7, %v921_v8 }
 0x282   :  { %4318 = vmatpush1.bf16.msra.mxu1 %v5388_v12  ;;  %4278 = vmatprep.subr.bf16.mxu0 %v5253_v29  ;;  %v785_v16 = vld [vmem:[#allocation7 + $0x3b8] sm:$0xff] }
 0x283   :  { %4319 = vmatprep.subr.bf16.mxu1 %v5381_v36  ;;  %v909_v17 = vld [vmem:[#allocation7 + $0x798] sm:$0xff]  ;;  %v5333_v26 = vcombine.high %v781_v15, %v785_v16  ;;  %v5332_v36 = vcombine.low %v781_v15, %v785_v16 }
 0x284   :  { %v913_v18 = vld [vmem:[#allocation7 + $0x7b8] sm:$0xff] }
 0x285   :  { %4279 = vmatpush1.bf16.msra.mxu0 %v5252_v42  ;;  %v5461_v27 = vcombine.high %v909_v17, %v913_v18  ;;  %v773_v30 = vld [vmem:[#allocation7 + $0x358] sm:$0xff]  ;;  %v5460_v38 = vcombine.low %v909_v17, %v913_v18 }
 0x286   :  { %4320 = vmatpush1.bf16.msra.mxu1 %v5380_v43  ;;  %4280 = vmatprep.subr.bf16.mxu0 %v5245_v44  ;;  %v777_v12 = vld [vmem:[#allocation7 + $0x378] sm:$0xff] }
 0x287   :  { %4321 = vmatprep.subr.bf16.mxu1 %v5373_v45  ;;  %v901_v29 = vld [vmem:[#allocation7 + $0x758] sm:$0xff]  ;;  %v5325_v0 = vcombine.high %v773_v30, %v777_v12  ;;  %v5324_v45 = vcombine.low %v773_v30, %v777_v12 }
 0x288   :  { %v905_v34 = vld [vmem:[#allocation7 + $0x778] sm:$0xff] }
 0x289   :  { %4281 = vmatpush1.bf16.msra.mxu0 %v5244_v39  ;;  %v5453_v53 = vcombine.high %v901_v29, %v905_v34  ;;  %v769_v42 = vld [vmem:[#allocation7 + $0x338] sm:$0xff]  ;;  %v5452_v48 = vcombine.low %v901_v29, %v905_v34 }
 0x28a   :  { %4322 = vmatpush1.bf16.msra.mxu1 %v5372_v61  ;;  %4282 = vmatprep.subr.bf16.mxu0 %v5237_v51  ;;  %v893_v43 = vld [vmem:[#allocation7 + $0x718] sm:$0xff]  ;;  %v5317_v49 = vcombine.high %v765_v41, %v769_v42 }
 0x28b   :  { %4323 = vmatprep.subr.bf16.mxu1 %v5365_v33  ;;  %v897_v44 = vld [vmem:[#allocation7 + $0x738] sm:$0xff]  ;;  %v5316_v33 = vcombine.low %v765_v41, %v769_v42 }
 0x28c   :  { %v5445_v31 = vcombine.high %v893_v43, %v897_v44  ;;  %v761_v39 = vld [vmem:[#allocation7 + $0x2f8] sm:$0xff]  ;;  %v5444_v35 = vcombine.low %v893_v43, %v897_v44 }
 0x28d   :  { %4283 = vmatpush1.bf16.msra.mxu0 %v5236_v24  ;;  %v885_v61 = vld [vmem:[#allocation7 + $0x6d8] sm:$0xff]  ;;  %v5309_v40 = vcombine.high %v757_v32, %v761_v39 }
 0x28e   :  { %4324 = vmatpush1.bf16.msra.mxu1 %v5364_v22  ;;  %4284 = vmatprep.subr.bf16.mxu0 %v5229_v57  ;;  %v889_v51 = vld [vmem:[#allocation7 + $0x6f8] sm:$0xff] }
 0x28f   :  { %4325 = vmatprep.subr.bf16.mxu1 %v5357_v58  ;;  %v5437_v54 = vcombine.high %v885_v61, %v889_v51  ;;  %v749_v55 = vld [vmem:[#allocation7 + $0x298] sm:$0xff]  ;;  %v5308_v58 = vcombine.low %v757_v32, %v761_v39  ;;  %v5436_v59 = vcombine.low %v885_v61, %v889_v51 }
 0x290   :  { %v753_v24 = vld [vmem:[#allocation7 + $0x2b8] sm:$0xff] }
 0x291   :  { %4285 = vmatpush1.bf16.msra.mxu0 %v5228_v1  ;;  %v877_v22 = vld [vmem:[#allocation7 + $0x698] sm:$0xff]  ;;  %v5301_v60 = vcombine.high %v749_v55, %v753_v24 }
 0x292   :  { %4326 = vmatpush1.bf16.msra.mxu1 %v5356_v2  ;;  %4286 = vmatprep.subr.bf16.mxu0 %v5221_v3  ;;  %v881_v57 = vld [vmem:[#allocation7 + $0x6b8] sm:$0xff] }
 0x293   :  { %4327 = vmatprep.subr.bf16.mxu1 %v5349_v4  ;;  %v5429_v62 = vcombine.high %v877_v22, %v881_v57  ;;  %v741_v63 = vld [vmem:[#allocation7 + $0x258] sm:$0xff]  ;;  %v5300_v4 = vcombine.low %v749_v55, %v753_v24  ;;  %v5428_v5 = vcombine.low %v877_v22, %v881_v57 }
 0x294   :  { %v745_v1 = vld [vmem:[#allocation7 + $0x278] sm:$0xff] }
 0x295   :  { %4287 = vmatpush1.bf16.msra.mxu0 %v5220_v23  ;;  %v869_v2 = vld [vmem:[#allocation7 + $0x658] sm:$0xff]  ;;  %v5293_v6 = vcombine.high %v741_v63, %v745_v1 }
 0x296   :  { %4328 = vmatpush1.bf16.msra.mxu1 %v5348_v10  ;;  %4288 = vmatprep.subr.bf16.mxu0 %v5341_v13  ;;  %v873_v3 = vld [vmem:[#allocation7 + $0x678] sm:$0xff] }
 0x297   :  { %4329 = vmatprep.subr.bf16.mxu1 %v5469_v14  ;;  %v5421_v7 = vcombine.high %v869_v2, %v873_v3  ;;  %v733_v8 = vld [vmem:[#allocation7 + $0x218] sm:$0xff]  ;;  %v5292_v14 = vcombine.low %v741_v63, %v745_v1  ;;  %v5420_v15 = vcombine.low %v869_v2, %v873_v3 }
 0x298   :  { %v737_v23 = vld [vmem:[#allocation7 + $0x238] sm:$0xff] }
 0x299   :  { %4289 = vmatpush2.bf16.msra.mxu0 %v5340_v19  ;;  %v861_v10 = vld [vmem:[#allocation7 + $0x618] sm:$0xff]  ;;  %v5285_v16 = vcombine.high %v733_v8, %v737_v23 }
 0x29a   :  { %4330 = vmatpush2.bf16.msra.mxu1 %v5468_v20  ;;  %4290 = vmatprep.subr.bf16.mxu0 %v5333_v26  ;;  %v865_v13 = vld [vmem:[#allocation7 + $0x638] sm:$0xff] }
 0x29b   :  { %4331 = vmatprep.subr.bf16.mxu1 %v5461_v27  ;;  %v5413_v17 = vcombine.high %v861_v10, %v865_v13  ;;  %v981_v18 = vld [vmem:[#allocation7 + $0x9d8] sm:$0xff]  ;;  %v5284_v27 = vcombine.low %v733_v8, %v737_v23  ;;  %v5412_v30 = vcombine.low %v861_v10, %v865_v13 }
 0x29c   :  { %v985_v19 = vld [vmem:[#allocation7 + $0x9f8] sm:$0xff] }
 0x29d   :  { %4291 = vmatpush2.bf16.msra.mxu0 %v5332_v36  ;;  %v1109_v20 = vld [vmem:[#allocation7 + $0xdd8] sm:$0xff]  ;;  %v5533_v12 = vcombine.high %v981_v18, %v985_v19 }
 0x29e   :  { %4332 = vmatpush2.bf16.msra.mxu1 %v5460_v38  ;;  %4292 = vmatprep.subr.bf16.mxu0 %v5325_v0  ;;  %v1113_v26 = vld [vmem:[#allocation7 + $0xdf8] sm:$0xff]  ;;  %v5532_v38 = vcombine.low %v981_v18, %v985_v19 }
 0x29f   :  { %4333 = vmatprep.subr.bf16.mxu1 %v5453_v53  ;;  %v5661_v29 = vcombine.high %v1109_v20, %v1113_v26  ;;  %v973_v34 = vld [vmem:[#allocation7 + $0x998] sm:$0xff]  ;;  %v5660_v41 = vcombine.low %v1109_v20, %v1113_v26 }
 0x2a0   :  { %v977_v36 = vld [vmem:[#allocation7 + $0x9b8] sm:$0xff] }
 0x2a1   :  { %4293 = vmatpush2.bf16.msra.mxu0 %v5324_v45  ;;  %v1101_v0 = vld [vmem:[#allocation7 + $0xd98] sm:$0xff]  ;;  %v5525_v42 = vcombine.high %v973_v34, %v977_v36  ;;  %v5524_v61 = vcombine.low %v973_v34, %v977_v36 }
 0x2a2   :  { %4334 = vmatpush2.bf16.msra.mxu1 %v5452_v48  ;;  %4294 = vmatprep.subr.bf16.mxu0 %v5317_v49  ;;  %v1105_v53 = vld [vmem:[#allocation7 + $0xdb8] sm:$0xff] }
 0x2a3   :  { %4335 = vmatprep.subr.bf16.mxu1 %v5445_v31  ;;  %v965_v43 = vld [vmem:[#allocation7 + $0x958] sm:$0xff]  ;;  %v5653_v48 = vcombine.high %v1101_v0, %v1105_v53 }
 0x2a4   :  { %v969_v44 = vld [vmem:[#allocation7 + $0x978] sm:$0xff] }
 0x2a5   :  { %4295 = vmatpush2.bf16.msra.mxu0 %v5316_v33  ;;  %v1093_v49 = vld [vmem:[#allocation7 + $0xd58] sm:$0xff]  ;;  %v5652_v33 = vcombine.low %v1101_v0, %v1105_v53  ;;  %v5516_v57 = vcombine.low %v965_v43, %v969_v44 }
 0x2a6   :  { %4336 = vmatpush2.bf16.msra.mxu1 %v5444_v35  ;;  %4296 = vmatprep.subr.bf16.mxu0 %v5309_v40  ;;  %v1097_v31 = vld [vmem:[#allocation7 + $0xd78] sm:$0xff]  ;;  %v5517_v35 = vcombine.high %v965_v43, %v969_v44 }
 0x2a7   :  { %4337 = vmatprep.subr.bf16.mxu1 %v5437_v54  ;;  %v957_v54 = vld [vmem:[#allocation7 + $0x918] sm:$0xff] }
 0x2a8   :  { %v961_v55 = vld [vmem:[#allocation7 + $0x938] sm:$0xff] }
 0x2a9   :  { %4297 = vmatpush2.bf16.msra.mxu0 %v5308_v58  ;;  %v1085_v24 = vld [vmem:[#allocation7 + $0xd18] sm:$0xff] }
 0x2aa   :  { %4338 = vmatpush2.bf16.msra.mxu1 %v5436_v59  ;;  %4298 = vmatprep.subr.bf16.mxu0 %v5301_v60  ;;  %v1089_v22 = vld [vmem:[#allocation7 + $0xd38] sm:$0xff]  ;;  %v5644_v59 = vcombine.low %v1093_v49, %v1097_v31  ;;  %v5509_v60 = vcombine.high %v957_v54, %v961_v55 }
 0x2ab   :  { %4339 = vmatprep.subr.bf16.mxu1 %v5429_v62  ;;  %v949_v63 = vld [vmem:[#allocation7 + $0x8d8] sm:$0xff] }
 0x2ac   :  { %v953_v1 = vld [vmem:[#allocation7 + $0x8f8] sm:$0xff] }
 0x2ad   :  { %4299 = vmatpush2.bf16.msra.mxu0 %v5300_v4  ;;  %v1077_v2 = vld [vmem:[#allocation7 + $0xcd8] sm:$0xff]  ;;  %v5508_v4 = vcombine.low %v957_v54, %v961_v55 }
 0x2ae   :  { %4340 = vmatpush2.bf16.msra.mxu1 %v5428_v5  ;;  %4300 = vmatprep.subr.bf16.mxu0 %v5293_v6  ;;  %v1081_v3 = vld [vmem:[#allocation7 + $0xcf8] sm:$0xff]  ;;  %v5636_v5 = vcombine.low %v1085_v24, %v1089_v22  ;;  %v5501_v6 = vcombine.high %v949_v63, %v953_v1 }
 0x2af   :  { %4341 = vmatprep.subr.bf16.mxu1 %v5421_v7  ;;  %v5629_v7 = vcombine.high %v1077_v2, %v1081_v3  ;;  %v941_v8 = vld [vmem:[#allocation7 + $0x898] sm:$0xff] }
 0x2b0   :  { %v945_v23 = vld [vmem:[#allocation7 + $0x8b8] sm:$0xff] }
 0x2b1   :  { %4301 = vmatpush2.bf16.msra.mxu0 %v5292_v14  ;;  %v1069_v10 = vld [vmem:[#allocation7 + $0xc98] sm:$0xff]  ;;  %v5500_v14 = vcombine.low %v949_v63, %v953_v1 }
 0x2b2   :  { %4342 = vmatpush2.bf16.msra.mxu1 %v5420_v15  ;;  %4302 = vmatprep.subr.bf16.mxu0 %v5285_v16  ;;  %v1073_v13 = vld [vmem:[#allocation7 + $0xcb8] sm:$0xff]  ;;  %v5628_v15 = vcombine.low %v1077_v2, %v1081_v3  ;;  %v5493_v16 = vcombine.high %v941_v8, %v945_v23 }
 0x2b3   :  { %4343 = vmatprep.subr.bf16.mxu1 %v5413_v17  ;;  %v5621_v17 = vcombine.high %v1069_v10, %v1073_v13  ;;  %v933_v18 = vld [vmem:[#allocation7 + $0x858] sm:$0xff] }
 0x2b4   :  { %v937_v19 = vld [vmem:[#allocation7 + $0x878] sm:$0xff] }
 0x2b5   :  { %4303 = vmatpush2.bf16.msra.mxu0 %v5284_v27  ;;  %v1061_v20 = vld [vmem:[#allocation7 + $0xc58] sm:$0xff]  ;;  %v5492_v27 = vcombine.low %v941_v8, %v945_v23  ;;  %v5484_v53 = vcombine.low %v933_v18, %v937_v19 }
 0x2b6   :  { %4344 = vmatpush2.bf16.msra.mxu1 %v5412_v30  ;;  %4354 = vmatprep.subr.bf16.mxu0 %v5533_v12  ;;  %v1065_v26 = vld [vmem:[#allocation7 + $0xc78] sm:$0xff]  ;;  %v5620_v30 = vcombine.low %v1069_v10, %v1073_v13  ;;  %v5485_v12 = vcombine.high %v933_v18, %v937_v19 }
 0x2b7   :  { %4395 = vmatprep.subr.bf16.mxu1 %v5661_v29  ;;  %v5613_v29 = vcombine.high %v1061_v20, %v1065_v26  ;;  %v925_v34 = vld [vmem:[#allocation7 + $0x818] sm:$0xff] }
 0x2b8   :  { %v4060_v45 = vpop.f32.mrf.mxu0  ;;  %4305 = vmatmul.mubr.bf16.vlgmr.msra.gmra.mxu0 %v6207_v28  ;;  %v929_v36 = vld [vmem:[#allocation7 + $0x838] sm:$0xff] }
 0x2b9   :  { %v4061_v32 = vadd.f32 %v4060_v45, %v6278_v11  ;;  %v4101_v39 = vpop.f32.mrf.mxu1  ;;  %4346 = vmatmul.mubr.bf16.vlgmr.msra.gmra.mxu1 %v6203_v25  ;;  %4355 = vmatpush1.bf16.msra.mxu0 %v5532_v38  ;;  %v5645_v11 = vcombine.high %v1093_v49, %v1097_v31  ;;  %v1053_v38 = vld [vmem:[#allocation7 + $0xc18] sm:$0xff]  ;;  %v5476_v31 = vcombine.low %v925_v34, %v929_v36 }
 0x2ba   :  { %4386 = vmatprep.mubr.bf16.mxu0 %v6225_v46  ;;  %4396 = vmatpush1.bf16.msra.mxu1 %v5660_v41  ;;  %v6287_v51 = vpop.f32.mrf.mxu0  ;;  %v1057_v0 = vld [vmem:[#allocation7 + $0xc38] sm:$0xff]  ;;  %v5612_v41 = vcombine.low %v1061_v20, %v1065_v26 }
 0x2bb   :  { %v6289_v40 = vadd.f32 %v4101_v39, %v4061_v32  ;;  %4427 = vmatprep.mubr.bf16.mxu1 %v6227_v50  ;;  %v6292_v28 = vpop.f32.mrf.mxu1  ;;  %4356 = vmatprep.subr.bf16.mxu0 %v5525_v42  ;;  %v5637_v50 = vcombine.high %v1085_v24, %v1089_v22  ;;  %v5477_v42 = vcombine.high %v925_v34, %v929_v36  ;;  %v1045_v44 = vld [vmem:[#allocation7 + $0xbd8] sm:$0xff] }
 0x2bc   :  { %v4064_v25 = vpop.f32.mrf.mxu0  ;;  %4397 = vmatprep.subr.bf16.mxu1 %v5653_v48  ;;  %v5605_v43 = vcombine.high %v1053_v38, %v1057_v0  ;;  %v1049_v45 = vld [vmem:[#allocation7 + $0xbf8] sm:$0xff]  ;;  %v5604_v32 = vcombine.low %v1053_v38, %v1057_v0 }
 0x2bd   :  { %v4105_v46 = vpop.f32.mrf.mxu1  ;;  %4357 = vmatpush1.bf16.msra.mxu0 %v5524_v61  ;;  %v1173_v48 = vld [vmem:[#allocation7 + $0xfd8] sm:$0xff]  ;;  %v5597_v39 = vcombine.high %v1045_v44, %v1049_v45  ;;  %v5596_v55 = vcombine.low %v1045_v44, %v1049_v45 }
 0x2be   :  { %4398 = vmatpush1.bf16.msra.mxu1 %v5652_v33  ;;  %v4065_v58 = vpop.f32.mrf.mxu0  ;;  %4358 = vmatprep.subr.bf16.mxu0 %v5517_v35  ;;  %v1177_v49 = vld [vmem:[#allocation7 + $0xff8] sm:$0xff] }
 0x2bf   :  { %v4106_v62 = vpop.f32.mrf.mxu1  ;;  %4399 = vmatprep.subr.bf16.mxu1 %v5645_v11  ;;  %v5725_v61 = vcombine.high %v1173_v48, %v1177_v49  ;;  %v1037_v33 = vld [vmem:[#allocation7 + $0xb98] sm:$0xff]  ;;  %v5724_v25 = vcombine.low %v1173_v48, %v1177_v49 }
 0x2c0   :  { %v1041_v35 = vld [vmem:[#allocation7 + $0xbb8] sm:$0xff] }
 0x2c1   :  { %4359 = vmatpush1.bf16.msra.mxu0 %v5516_v57  ;;  %v1165_v11 = vld [vmem:[#allocation7 + $0xf98] sm:$0xff]  ;;  %v5589_v24 = vcombine.high %v1037_v33, %v1041_v35 }
 0x2c2   :  { %4400 = vmatpush1.bf16.msra.mxu1 %v5644_v59  ;;  %4360 = vmatprep.subr.bf16.mxu0 %v5509_v60  ;;  %v1169_v54 = vld [vmem:[#allocation7 + $0xfb8] sm:$0xff]  ;;  %v5588_v60 = vcombine.low %v1037_v33, %v1041_v35 }
 0x2c3   :  { %4401 = vmatprep.subr.bf16.mxu1 %v5637_v50  ;;  %v5717_v22 = vcombine.high %v1165_v11, %v1169_v54  ;;  %v1029_v46 = vld [vmem:[#allocation7 + $0xb58] sm:$0xff]  ;;  %v5716_v62 = vcombine.low %v1165_v11, %v1169_v54 }
 0x2c4   :  { %v1033_v57 = vld [vmem:[#allocation7 + $0xb78] sm:$0xff] }
 0x2c5   :  { %4361 = vmatpush1.bf16.msra.mxu0 %v5508_v4  ;;  %v1157_v58 = vld [vmem:[#allocation7 + $0xf58] sm:$0xff]  ;;  %v5581_v50 = vcombine.high %v1029_v46, %v1033_v57 }
 0x2c6   :  { %4402 = vmatpush1.bf16.msra.mxu1 %v5636_v5  ;;  %4362 = vmatprep.subr.bf16.mxu0 %v5501_v6  ;;  %v1161_v59 = vld [vmem:[#allocation7 + $0xf78] sm:$0xff]  ;;  %v5580_v5 = vcombine.low %v1029_v46, %v1033_v57  ;;  %v5894_v46 = vld [vmem:[#allocation10 + $0xb8] sm:$0xff]  }
 0x2c7   :  { %4403 = vmatprep.subr.bf16.mxu1 %v5629_v7  ;;  %v5709_v63 = vcombine.high %v1157_v58, %v1161_v59  ;;  %v1021_v1 = vld [vmem:[#allocation7 + $0xb18] sm:$0xff]  ;;  %v5708_v6 = vcombine.low %v1157_v58, %v1161_v59 }
 0x2c8   :  { %v1025_v2 = vld [vmem:[#allocation7 + $0xb38] sm:$0xff] }
 0x2c9   :  { %4363 = vmatpush1.bf16.msra.mxu0 %v5500_v14  ;;  %v1149_v3 = vld [vmem:[#allocation7 + $0xf18] sm:$0xff]  ;;  %v5573_v7 = vcombine.high %v1021_v1, %v1025_v2 }
 0x2ca   :  { %4404 = vmatpush1.bf16.msra.mxu1 %v5628_v15  ;;  %4364 = vmatprep.subr.bf16.mxu0 %v5493_v16  ;;  %v1153_v4 = vld [vmem:[#allocation7 + $0xf38] sm:$0xff]  ;;  %v5572_v15 = vcombine.low %v1021_v1, %v1025_v2  ;;  %v5899_v1 = vld [vmem:[#allocation10 + $0x68] sm:$0xff]  }
 0x2cb   :  { %4405 = vmatprep.subr.bf16.mxu1 %v5621_v17  ;;  %v5701_v8 = vcombine.high %v1149_v3, %v1153_v4  ;;  %v1013_v23 = vld [vmem:[#allocation7 + $0xad8] sm:$0xff]  ;;  %v5700_v16 = vcombine.low %v1149_v3, %v1153_v4  ;;  %v5900_v3 = vld [vmem:[#allocation10 + $0xe8] sm:$0xff]  }
 0x2cc   :  { %v1017_v10 = vld [vmem:[#allocation7 + $0xaf8] sm:$0xff] }
 0x2cd   :  { %4365 = vmatpush1.bf16.msra.mxu0 %v5492_v27  ;;  %v1141_v13 = vld [vmem:[#allocation7 + $0xed8] sm:$0xff]  ;;  %v5565_v17 = vcombine.high %v1013_v23, %v1017_v10 }
 0x2ce   :  { %4406 = vmatpush1.bf16.msra.mxu1 %v5620_v30  ;;  %4366 = vmatprep.subr.bf16.mxu0 %v5485_v12  ;;  %v1145_v14 = vld [vmem:[#allocation7 + $0xef8] sm:$0xff]  ;;  %v5564_v30 = vcombine.low %v1013_v23, %v1017_v10  ;;  %v5904_v23 = vld [vmem:[#allocation10 + $0xe0] sm:$0xff]  }
 0x2cf   :  { %4407 = vmatprep.subr.bf16.mxu1 %v5613_v29  ;;  %v5693_v18 = vcombine.high %v1141_v13, %v1145_v14  ;;  %v1005_v19 = vld [vmem:[#allocation7 + $0xa98] sm:$0xff]  ;;  %v5692_v12 = vcombine.low %v1141_v13, %v1145_v14  ;;  %v5905_v10 = vld [vmem:[#allocation10 + $0x20] sm:$0xff]   ;;  %v5907_v14 = vld [vmem:[#allocation10 + $0x58] sm:$0xff]  }
 0x2d0   :  { %v1009_v20 = vld [vmem:[#allocation7 + $0xab8] sm:$0xff]  ;;  %v5906_v13 = vld [vmem:[#allocation10 + $0xa0] sm:$0xff]  }
 0x2d1   :  { %4367 = vmatpush1.bf16.msra.mxu0 %v5484_v53  ;;  %v1133_v26 = vld [vmem:[#allocation7 + $0xe98] sm:$0xff]  ;;  %v5557_v29 = vcombine.high %v1005_v19, %v1009_v20 }
 0x2d2   :  { %4408 = vmatpush1.bf16.msra.mxu1 %v5612_v41  ;;  %4368 = vmatprep.subr.bf16.mxu0 %v5477_v42  ;;  %v1137_v27 = vld [vmem:[#allocation7 + $0xeb8] sm:$0xff]  ;;  %v5556_v41 = vcombine.low %v1005_v19, %v1009_v20 }
 0x2d3   :  { %4409 = vmatprep.subr.bf16.mxu1 %v5605_v43  ;;  %v5685_v34 = vcombine.high %v1133_v26, %v1137_v27  ;;  %v997_v36 = vld [vmem:[#allocation7 + $0xa58] sm:$0xff]  ;;  %v5684_v42 = vcombine.low %v1133_v26, %v1137_v27  ;;  %v5915_v27 = vld [vmem:[#allocation10 + $0x48] sm:$0xff]  }
 0x2d4   :  { %v1001_v38 = vld [vmem:[#allocation7 + $0xa78] sm:$0xff] }
 0x2d5   :  { %4369 = vmatpush1.bf16.msra.mxu0 %v5476_v31  ;;  %v1125_v0 = vld [vmem:[#allocation7 + $0xe58] sm:$0xff]  ;;  %v5549_v43 = vcombine.high %v997_v36, %v1001_v38 }
 0x2d6   :  { %4410 = vmatpush1.bf16.msra.mxu1 %v5604_v32  ;;  %4370 = vmatprep.subr.bf16.mxu0 %v5597_v39  ;;  %v1129_v53 = vld [vmem:[#allocation7 + $0xe78] sm:$0xff]  ;;  %v4063_v32 = vadd.f32 %v6287_v51, %v6281_v21  ;;  %v5548_v39 = vcombine.low %v997_v36, %v1001_v38  ;;  %v4437_v21 = vmax.f32 %v6269_v47, 0.0  ;;  %v5920_v36 = vld [vmem:[#allocation10 + $0xc0] sm:$0xff]  }
 0x2d7   :  { %4411 = vmatprep.subr.bf16.mxu1 %v5725_v61  ;;  %v5677_v44 = vcombine.high %v1125_v0, %v1129_v53  ;;  %v989_v45 = vld [vmem:[#allocation7 + $0xa18] sm:$0xff]  ;;  %v5676_v61 = vcombine.low %v1125_v0, %v1129_v53  ;;  %v5921_v38 = vld [vmem:[#allocation10] sm:$0xff]   ;;  %v4436_v0 = vmax.f32 %v6265_v37, 0.0 }
 0x2d8   :  { %v993_v48 = vld [vmem:[#allocation7 + $0xa38] sm:$0xff]  ;;  %v4104_v11 = vadd.f32 %v6292_v28, %v4063_v32  ;;  %v4445_v58 = vpack.c.bf16 %v4437_v21, %v4437_v21  ;;  %v5922_v53 = vld [vmem:[#allocation10 + $0x80] sm:$0xff]   ;;  %v5947_v21 = vld [vmem:[#allocation10 + $0x1d8] sm:$0xff]  }
 0x2d9   :  { %4371 = vmatpush2.bf16.msra.mxu0 %v5596_v55  ;;  %v1117_v49 = vld [vmem:[#allocation7 + $0xe18] sm:$0xff]  ;;  %v5541_v33 = vcombine.high %v989_v45, %v993_v48  ;;  %v5540_v54 = vcombine.low %v989_v45, %v993_v48  ;;  %v4444_v45 = vpack.c.bf16 %v4436_v0, %v4436_v0 }
 0x2da   :  { %4412 = vmatpush2.bf16.msra.mxu1 %v5724_v25  ;;  %4372 = vmatprep.subr.bf16.mxu0 %v5589_v24  ;;  %v1121_v31 = vld [vmem:[#allocation7 + $0xe38] sm:$0xff]  ;;  %v5891_v25 = vld [vmem:[#allocation10 + $0x78] sm:$0xff]   ;;  %v4439_v51 = vmax.f32 %v4104_v11, 0.0  ;;  %v5944_v11 = vld [vmem:[#allocation10 + $0x1a8] sm:$0xff]  }
 0x2db   :  { %4413 = vmatprep.subr.bf16.mxu1 %v5717_v22  ;;  %v5669_v35 = vcombine.high %v1117_v49, %v1121_v31  ;;  %v5668_v55 = vcombine.low %v1117_v49, %v1121_v31  ;;  %v5892_v24 = vld [vmem:[#allocation10 + $0xf8] sm:$0xff]   ;;  %v5895_v57 = vld [vmem:[#allocation10 + $0x70] sm:$0xff]  }
 0x2dc   :  { %v5893_v22 = vld [vmem:[#allocation10 + $0x38] sm:$0xff]   ;;  %v5896_v59 = vld [vmem:[#allocation10 + $0xf0] sm:$0xff]  }
 0x2dd   :  { %4373 = vmatpush2.bf16.msra.mxu0 %v5588_v60  ;;  %v4447_v60 = vpack.c.bf16 %v4439_v51, %v4439_v51  ;;  %v5897_v47 = vld [vmem:[#allocation10 + $0x30] sm:$0xff]   ;;  %v5940_v49 = vld [vmem:[#allocation10 + $0x1b8] sm:$0xff]  }
 0x2de   :  { %4414 = vmatpush2.bf16.msra.mxu1 %v5716_v62  ;;  %4374 = vmatprep.subr.bf16.mxu0 %v5581_v50  ;;  %v5912_v19 = vld [vmem:[#allocation10 + $0xd0] sm:$0xff]   ;;  %v5932_v51 = vld [vmem:[#allocation10 + $0x118] sm:$0xff]  }
 0x2df   :  { %4415 = vmatprep.subr.bf16.mxu1 %v5709_v63  ;;  %v5898_v63 = vld [vmem:[#allocation10 + $0xb0] sm:$0xff]  }
 0x2e0   :  { %v5913_v20 = vld [vmem:[#allocation10 + $0x10] sm:$0xff]  }
 0x2e1   :  { %4375 = vmatpush2.bf16.msra.mxu0 %v5580_v5  ;;  %v5901_v5 = vld [vmem:[#allocation10 + $0x28] sm:$0xff]   ;;  %v5914_v26 = vld [vmem:[#allocation10 + $0x90] sm:$0xff]  }
 0x2e2   :  { %4416 = vmatpush2.bf16.msra.mxu1 %v5708_v6  ;;  %4376 = vmatprep.subr.bf16.mxu0 %v5573_v7  ;;  %v5902_v6 = vld [vmem:[#allocation10 + $0xa8] sm:$0xff]   ;;  %v5903_v7 = vld [vmem:[#allocation10 + $0x60] sm:$0xff]   ;;  %v5925_v48 = vld [vmem:[#allocation10 + $0x170] sm:$0xff]  }
 0x2e3   :  { %4417 = vmatprep.subr.bf16.mxu1 %v5701_v8  ;;  %v5941_v32 = vld [vmem:[#allocation10 + $0x1f0] sm:$0xff]  }
 0x2e4   :  { %v5926_v37 = vld [vmem:[#allocation10 + $0x130] sm:$0xff]  }
 0x2e5   :  { %4377 = vmatpush2.bf16.msra.mxu0 %v5572_v15  ;;  %v5908_v15 = vld [vmem:[#allocation10 + $0xd8] sm:$0xff]  }
 0x2e6   :  { %4418 = vmatpush2.bf16.msra.mxu1 %v5700_v16  ;;  %4378 = vmatprep.subr.bf16.mxu0 %v5565_v17  ;;  %v5909_v16 = vld [vmem:[#allocation10 + $0x18] sm:$0xff]  }
 0x2e7   :  { %4419 = vmatprep.subr.bf16.mxu1 %v5693_v18  ;;  %v5910_v17 = vld [vmem:[#allocation10 + $0x98] sm:$0xff]   ;;  %v5911_v18 = vld [vmem:[#allocation10 + $0x50] sm:$0xff]  }
 0x2e9   :  { %4379 = vmatpush2.bf16.msra.mxu0 %v5564_v30  ;;  %v5916_v30 = vld [vmem:[#allocation10 + $0xc8] sm:$0xff]  }
 0x2ea   :  { %4420 = vmatpush2.bf16.msra.mxu1 %v5692_v12  ;;  %4380 = vmatprep.subr.bf16.mxu0 %v5557_v29  ;;  %v5917_v12 = vld [vmem:[#allocation10 + $0x8] sm:$0xff]  }
 0x2eb   :  { %4421 = vmatprep.subr.bf16.mxu1 %v5685_v34  ;;  %v5918_v29 = vld [vmem:[#allocation10 + $0x88] sm:$0xff]   ;;  %v5919_v34 = vld [vmem:[#allocation10 + $0x40] sm:$0xff]  }
 0x2ed   :  { %4381 = vmatpush2.bf16.msra.mxu0 %v5556_v41  ;;  %v5923_v41 = vld [vmem:[#allocation10 + $0x178] sm:$0xff]  }
 0x2ee   :  { %4422 = vmatpush2.bf16.msra.mxu1 %v5684_v42  ;;  %4382 = vmatprep.subr.bf16.mxu0 %v5549_v43  ;;  %v4438_v42 = vmax.f32 %v6289_v40, 0.0  ;;  %v5939_v43 = vld [vmem:[#allocation10 + $0x1f8] sm:$0xff]   ;;  %v5942_v40 = vld [vmem:[#allocation10 + $0x1b0] sm:$0xff]  }
 0x2ef   :  { %4423 = vmatprep.subr.bf16.mxu1 %v5677_v44  ;;  %v5924_v44 = vld [vmem:[#allocation10 + $0x138] sm:$0xff]  }
 0x2f0   :  { %v4446_v31 = vpack.c.bf16 %v4438_v42, %v4438_v42 }
 0x2f1   :  { %4383 = vmatpush2.bf16.msra.mxu0 %v5548_v39  ;;  %v5927_v39 = vld [vmem:[#allocation10 + $0x168] sm:$0xff]  }
 0x2f2   :  { %4424 = vmatpush2.bf16.msra.mxu1 %v5676_v61  ;;  %4384 = vmatprep.subr.bf16.mxu0 %v5541_v33  ;;  %v5943_v61 = vld [vmem:[#allocation10 + $0x1e8] sm:$0xff]  }
 0x2f3   :  { %4425 = vmatprep.subr.bf16.mxu1 %v5669_v35  ;;  %v5928_v33 = vld [vmem:[#allocation10 + $0x128] sm:$0xff]   ;;  %v5929_v35 = vld [vmem:[#allocation10 + $0x160] sm:$0xff]  }
 0x2f5   :  { %4385 = vmatpush2.bf16.msra.mxu0 %v5540_v54  ;;  %v5945_v54 = vld [vmem:[#allocation10 + $0x1e0] sm:$0xff]  }
 0x2f6   :  { %4426 = vmatpush2.bf16.msra.mxu1 %v5668_v55  ;;  %5791 = vmatprep.subr.bf16.mxu0 %v5891_v25  ;;  %v5930_v55 = vld [vmem:[#allocation10 + $0x120] sm:$0xff]   ;;  %v5931_v25 = vld [vmem:[#allocation10 + $0x158] sm:$0xff]  }
 0x2f7   :  { %5813 = vmatprep.subr.bf16.mxu1 %v5892_v24  ;;  %v5946_v24 = vld [vmem:[#allocation10 + $0x1a0] sm:$0xff]  }
 0x2f8   :  { %v6298_v28 = vpop.f32.mrf.mxu0  ;;  %4387 = vmatmul.mubr.bf16.vlgmr.msra.gmra.mxu0 %v6235_v56 }
 0x2f9   :  { %v6301_v62 = vpop.f32.mrf.mxu1  ;;  %4428 = vmatmul.mubr.bf16.vlgmr.msra.gmra.mxu1 %v6233_v52  ;;  %5792 = vmatpush3.bf16.msra.mxu0 %v5893_v22  ;;  %v5933_v22 = vld [vmem:[#allocation10 + $0x150] sm:$0xff]  }
 0x2fa   :  { %5003 = vmatprep.mubr.bf16.mxu0 %v4445_v58  ;;  %5814 = vmatpush3.bf16.msra.mxu1 %v5894_v46  ;;  %v6304_v50 = vpop.f32.mrf.mxu0  ;;  %v5948_v46 = vld [vmem:[#allocation10 + $0x198] sm:$0xff]   ;;  %v5935_v58 = vld [vmem:[#allocation10 + $0x148] sm:$0xff]  }
 0x2fb   :  { %5043 = vmatprep.mubr.bf16.mxu1 %v4447_v60  ;;  %v6306_v2 = vpop.f32.mrf.mxu1  ;;  %5793 = vmatprep.subr.bf16.mxu0 %v5895_v57  ;;  %v5934_v57 = vld [vmem:[#allocation10 + $0x110] sm:$0xff]   ;;  %v1202_v60 = vsub.s32 5, %v6245_v9 }
 0x2fc   :  { %v4146_v56 = vpop.f32.mrf.mxu0  ;;  %5815 = vmatprep.subr.bf16.mxu1 %v5896_v59  ;;  %v1198_v59 = vsub.s32 4, %v6245_v9 }
 0x2fd   :  { %v4187_v4 = vpop.f32.mrf.mxu1  ;;  %5794 = vmatpush3.bf16.msra.mxu0 %v5897_v47  ;;  %v5936_v47 = vld [vmem:[#allocation10 + $0x108] sm:$0xff]  }
 0x2fe   :  { %5816 = vmatpush3.bf16.msra.mxu1 %v5898_v63  ;;  %v4147_v52 = vpop.f32.mrf.mxu0  ;;  %5795 = vmatprep.subr.bf16.mxu0 %v5899_v1  ;;  %v5937_v63 = vld [vmem:[#allocation10 + $0x140] sm:$0xff]   ;;  %v5955_v1 = vld [vmem:[#allocation8] sm:$0xff] }
 0x2ff   :  { %v4188_v8 = vpop.f32.mrf.mxu1  ;;  %5817 = vmatprep.subr.bf16.mxu1 %v5900_v3  ;;  %v1199_v3 = vrot.slane %v5955_v1, %v1198_v59  ;;  %v1203_v56 = vrot.slane %v5955_v1, %v1202_v60  ;;  %v5938_v4 = vld [vmem:[#allocation10 + $0x100] sm:$0xff]  }
 0x300   :  { %v5949_v8 = vld [vmem:[#allocation10 + $0x1d0] sm:$0xff]  }
 0x301   :  { %5796 = vmatpush3.bf16.msra.mxu0 %v5901_v5  ;;  %v4143_v5 = vadd.f32 %v6298_v28, %v1199_v3  ;;  %v4145_v52 = vadd.f32 %v6304_v50, %v1203_v56  ;;  %v5951_v28 = vld [vmem:[#allocation10 + $0x1c8] sm:$0xff]  }
 0x302   :  { %5818 = vmatpush3.bf16.msra.mxu1 %v5902_v6  ;;  %5797 = vmatprep.subr.bf16.mxu0 %v5903_v7 }
 0x303   :  { %5819 = vmatprep.subr.bf16.mxu1 %v5904_v23  ;;  %v4184_v6 = vadd.f32 %v6301_v62, %v4143_v5  ;;  %v4186_v23 = vadd.f32 %v6306_v2, %v4145_v52  ;;  %v5953_v2 = vld [vmem:[#allocation10 + $0x1c0] sm:$0xff]  }
 0x305   :  { %5798 = vmatpush3.bf16.msra.mxu0 %v5905_v10 }
 0x306   :  { %5820 = vmatpush3.bf16.msra.mxu1 %v5906_v13  ;;  %5799 = vmatprep.subr.bf16.mxu0 %v5907_v14  ;;  %v5950_v14 = vld [vmem:[#allocation10 + $0x190] sm:$0xff]  }
 0x307   :  { %5821 = vmatprep.subr.bf16.mxu1 %v5908_v15 }
 0x309   :  { %5800 = vmatpush3.bf16.msra.mxu0 %v5909_v16 }
 0x30a   :  { %5822 = vmatpush3.bf16.msra.mxu1 %v5910_v17  ;;  %5801 = vmatprep.subr.bf16.mxu0 %v5911_v18 }
 0x30b   :  { %5823 = vmatprep.subr.bf16.mxu1 %v5912_v19 }
 0x30d   :  { %5802 = vmatpush3.bf16.msra.mxu0 %v5913_v20 }
 0x30e   :  { %5824 = vmatpush3.bf16.msra.mxu1 %v5914_v26  ;;  %5803 = vmatprep.subr.bf16.mxu0 %v5915_v27  ;;  %v5952_v26 = vld [vmem:[#allocation10 + $0x188] sm:$0xff]  }
 0x30f   :  { %5825 = vmatprep.subr.bf16.mxu1 %v5916_v30 }
 0x311   :  { %5804 = vmatpush3.bf16.msra.mxu0 %v5917_v12 }
 0x312   :  { %5826 = vmatpush3.bf16.msra.mxu1 %v5918_v29  ;;  %5805 = vmatprep.subr.bf16.mxu0 %v5919_v34  ;;  %v5954_v34 = vld [vmem:[#allocation10 + $0x180] sm:$0xff]  }
 0x313   :  { %5827 = vmatprep.subr.bf16.mxu1 %v5920_v36 }
 0x315   :  { %5806 = vmatpush3.bf16.msra.mxu0 %v5921_v38 }
 0x316   :  { %5828 = vmatpush3.bf16.msra.mxu1 %v5922_v53  ;;  %5835 = vmatprep.subr.bf16.mxu0 %v5923_v41 }
 0x317   :  { %5857 = vmatprep.subr.bf16.mxu1 %v5939_v43 }
 0x318   :  { %5004 = vmatmul.mubr.bf16.vlgmr.msra.gmra.mxu0 %v4444_v45 }
 0x319   :  { %5044 = vmatmul.mubr.bf16.vlgmr.msra.gmra.mxu1 %v4446_v31  ;;  %5836 = vmatpush3.bf16.msra.mxu0 %v5924_v44 }
 0x31a   :  { %5837 = vmatprep.subr.bf16.mxu0 %v5925_v48  ;;  %5858 = vmatpush3.bf16.msra.mxu1 %v5940_v49  ;;  %v1206_v48 = vsub.s32 6, %v6245_v9  ;;  %v1210_v49 = vsub.s32 7, %v6245_v9 }
 0x31b   :  { %5859 = vmatprep.subr.bf16.mxu1 %v5941_v32 }
 0x31c   :  { %v1207_v31 = vrot.slane %v5955_v1, %v1206_v48  ;;  %v1211_v32 = vrot.slane %v5955_v1, %v1210_v49  ;;  %v5726_v1 = vld [vmem:[#allocation11] ss:$0 sm:$0xff] }
 0x31d   :  { %5838 = vmatpush3.bf16.msra.mxu0 %v5926_v37 }
 0x31e   :  { %5839 = vmatprep.subr.bf16.mxu0 %v5927_v39  ;;  %5860 = vmatpush3.bf16.msra.mxu1 %v5942_v40 }
 0x31f   :  { %5861 = vmatprep.subr.bf16.mxu1 %v5943_v61 }
 0x321   :  { %5840 = vmatpush3.bf16.msra.mxu0 %v5928_v33 }
 0x322   :  { %5841 = vmatprep.subr.bf16.mxu0 %v5929_v35  ;;  %5862 = vmatpush3.bf16.msra.mxu1 %v5944_v11 }
 0x323   :  { %5863 = vmatprep.subr.bf16.mxu1 %v5945_v54 }
 0x325   :  { %5842 = vmatpush3.bf16.msra.mxu0 %v5930_v55 }
 0x326   :  { %5843 = vmatprep.subr.bf16.mxu0 %v5931_v25  ;;  %5864 = vmatpush3.bf16.msra.mxu1 %v5946_v24 }
 0x327   :  { %5865 = vmatprep.subr.bf16.mxu1 %v5947_v21 }
 0x329   :  { %5844 = vmatpush3.bf16.msra.mxu0 %v5932_v51 }
 0x32a   :  { %5845 = vmatprep.subr.bf16.mxu0 %v5933_v22  ;;  %5866 = vmatpush3.bf16.msra.mxu1 %v5948_v46 }
 0x32b   :  { %5867 = vmatprep.subr.bf16.mxu1 %v5949_v8 }
 0x32d   :  { %5846 = vmatpush3.bf16.msra.mxu0 %v5934_v57 }
 0x32e   :  { %5847 = vmatprep.subr.bf16.mxu0 %v5935_v58  ;;  %5868 = vmatpush3.bf16.msra.mxu1 %v5950_v14 }
 0x32f   :  { %5869 = vmatprep.subr.bf16.mxu1 %v5951_v28 }
 0x331   :  { %5848 = vmatpush3.bf16.msra.mxu0 %v5936_v47 }
 0x332   :  { %5849 = vmatprep.subr.bf16.mxu0 %v5937_v63  ;;  %5870 = vmatpush3.bf16.msra.mxu1 %v5952_v26 }
 0x333   :  { %5871 = vmatprep.subr.bf16.mxu1 %v5953_v2 }
 0x335   :  { %5850 = vmatpush3.bf16.msra.mxu0 %v5938_v4 }
 0x336   :  { %5872 = vmatpush3.bf16.msra.mxu1 %v5954_v34 }
 0x338   :  { %v4224_v7 = vpop.f32.mrf.mxu0 }
 0x339   :  { %v4225_v10 = vadd.f32 %v4224_v7, %v4184_v6  ;;  %v4265_v13 = vpop.f32.mrf.mxu1 }
 0x33a   :  { %v4226_v15 = vpop.f32.mrf.mxu0 }
 0x33b   :  { %v4266_v16 = vadd.f32 %v4265_v13, %v4225_v10  ;;  %v4227_v17 = vadd.f32 %v4226_v15, %v4186_v23  ;;  %v4267_v18 = vpop.f32.mrf.mxu1 }
 0x33c   :  { %v4228_v19 = vpop.f32.mrf.mxu0 }
 0x33d   :  { %v4268_v20 = vadd.f32 %v4267_v18, %v4227_v17  ;;  %v4269_v50 = vpop.f32.mrf.mxu1  ;;  %v4440_v27 = vmax.f32 %v4266_v16, 0.0 }
 0x33e   :  { %v4229_v62 = vpop.f32.mrf.mxu0 }
 0x33f   :  { %v4441_v30 = vmax.f32 %v4268_v20, 0.0  ;;  %v4270_v12 = vpop.f32.mrf.mxu1  ;;  %v4448_v36 = vpack.c.bf16 %v4440_v27, %v4440_v27 }
 0x341   :  { %v4449_v29 = vpack.c.bf16 %v4441_v30, %v4441_v30 }
 0x343   :  { %5083 = vmatprep.mubr.bf16.mxu0 %v4449_v29 }
 0x344   :  { %5084 = vmatmul.mubr.bf16.vlgmr.msra.gmra.mxu0 %v4448_v36 }
 0x378   :  { %v4306_v38 = vpop.f32.mrf.mxu0 }
 0x379   :  { %v4347_v0 = vpop.f32.mrf.mxu1  ;;  %v4307_v37 = vadd.f32 %v4306_v38, %v1207_v31 }
 0x37a   :  { %v4308_v53 = vpop.f32.mrf.mxu0 }
 0x37b   :  { %v4349_v41 = vpop.f32.mrf.mxu1  ;;  %v4309_v39 = vadd.f32 %v4308_v53, %v1211_v32  ;;  %v4348_v40 = vadd.f32 %v4347_v0, %v4307_v37 }
 0x37c   :  { %v4310_v42 = vpop.f32.mrf.mxu0 }
 0x37d   :  { %v4351_v43 = vpop.f32.mrf.mxu1  ;;  %v4350_v33 = vadd.f32 %v4349_v41, %v4309_v39 }
 0x37e   :  { %v4311_v44 = vpop.f32.mrf.mxu0 }
 0x37f   :  { %v4352_v45 = vpop.f32.mrf.mxu1 }
 0x3b8   :  { %v4388_v61 = vpop.f32.mrf.mxu0 }
 0x3b9   :  { %v4389_v35 = vadd.f32 %v4388_v61, %v4348_v40  ;;  %v4429_v11 = vpop.f32.mrf.mxu1 }
 0x3ba   :  { %v4390_v54 = vpop.f32.mrf.mxu0 }
 0x3bb   :  { %v4430_v55 = vadd.f32 %v4429_v11, %v4389_v35  ;;  %v4391_v25 = vadd.f32 %v4390_v54, %v4350_v33  ;;  %v4431_v24 = vpop.f32.mrf.mxu1 }
 0x3bc   :  { %v4392_v21 = vpop.f32.mrf.mxu0 }
 0x3bd   :  { %v4432_v51 = vadd.f32 %v4431_v24, %v4391_v25  ;;  %v4433_v22 = vpop.f32.mrf.mxu1  ;;  %v4442_v46 = vmax.f32 %v4430_v55, 0.0 }
 0x3be   :  { %v4393_v57 = vpop.f32.mrf.mxu0 }
 0x3bf   :  { %v4443_v58 = vmax.f32 %v4432_v51, 0.0  ;;  %v4434_v9 = vpop.f32.mrf.mxu1  ;;  %v4450_v60 = vpack.c.bf16 %v4442_v46, %v4442_v46 }
 0x3c1   :  { %v4451_v59 = vpack.c.bf16 %v4443_v58, %v4443_v58 }
 0x3c3   :  { %5123 = vmatprep.mubr.bf16.mxu1 %v4451_v59 }
 0x3c4   :  { %5124 = vmatmul.mubr.bf16.vlgmr.msra.gmra.mxu1 %v4450_v60 }
 0x3d8   :  { %v5807_v47 = vpop.f32.mrf.mxu0 }
 0x3d9   :  { %v5829_v63 = vpop.f32.mrf.mxu1 }
 0x3da   :  { %v5808_v3 = vpop.f32.mrf.mxu0 }
 0x3db   :  { %v5809_v56 = vadd.f32 %v5808_v3, %v5807_v47  ;;  %v5830_v4 = vpop.f32.mrf.mxu1 }
 0x3dc   :  { %v5831_v5 = vadd.f32 %v5830_v4, %v5829_v63  ;;  %v5810_v52 = vpop.f32.mrf.mxu0 }
 0x3dd   :  { %v5006_v6 = vadd.f32 %v5809_v56, %v5726_v1  ;;  %v5832_v7 = vpop.f32.mrf.mxu1 }
 0x3de   :  { %v5811_v8 = vpop.f32.mrf.mxu0 }
 0x3df   :  { %v5046_v23 = vadd.f32 %v5831_v5, %v5006_v6  ;;  %v5833_v10 = vpop.f32.mrf.mxu1 }
 0x404   :  { %v5851_v13 = vpop.f32.mrf.mxu0 }
 0x406   :  { %v5852_v14 = vpop.f32.mrf.mxu0 }
 0x407   :  { %v5853_v15 = vadd.f32 %v5852_v14, %v5851_v13 }
 0x408   :  { %v5854_v16 = vpop.f32.mrf.mxu0 }
 0x409   :  { %v5086_v17 = vadd.f32 %v5853_v15, %v5046_v23 }
 0x40a   :  { %v5855_v18 = vpop.f32.mrf.mxu0 }
 0x484   :  { %v5873_v19 = vpop.f32.mrf.mxu1 }
 0x486   :  { %v5874_v28 = vpop.f32.mrf.mxu1 }
 0x487   :  { %v5875_v20 = vadd.f32 %v5874_v28, %v5873_v19 }
 0x488   :  { %v5876_v50 = vpop.f32.mrf.mxu1 }
 0x489   :  { %v5126_v26 = vadd.f32 %v5875_v20, %v5086_v17 }
 0x48a   :  { %v5877_v27 = vpop.f32.mrf.mxu1 }
 0x48b   :  { %5131 = vst [vmem:[#allocation13] sm:$0xff] %v5126_v26 }
 0x48c   :  { %6087 = shalt.err (!%p6084_p6)
}
 0x48d   :  { %5141 = dma.vmem_to_hbm [thread:$0]  %s5139_s5, 128, %s6327_s6, [#allocation4]  }
 0x48e   :  { %6104 = dma.done.wait [#allocation4], 128  }
 0x48f   :  { %6105 = vsyncadd [#allocation4], 4294967168 }
 0x490   :  { %5145 = vsyncpa [#allocation3], 1 }
 0x491   :  { %5146 = vsyncpa [#allocation6], 1 }
 0x492   :  { %5147 = vsyncpa [#allocation9], 1 }
 0x493   :  { %5148 = vsyncpa [#allocation12], 1 }
 0x494   :  { %5149 = vsyncpa [#allocation4], 1 }

</bundles_post_ra>
